<compile_context>
chip_gen: v5e
topology: v5e:2x2
jax: 0.10.0
libtpu: 0.0.40
codegen_flags: <defaults>
</compile_context>

<pallas_src>
import math
import functools

import jax
import jax.numpy as jnp
from jax.experimental import pallas as pl
from jax.experimental.pallas import tpu as pltpu


# ----------------------------------------------------------------------------
# helpers
# ----------------------------------------------------------------------------
def _round_up(x, m):
    return ((x + m - 1) // m) * m


def _pick_tile(dim, prefs=(256, 128, 64, 32, 16, 8)):
    """Largest preferred tile that divides `dim`, else the full dim (legal)."""
    for p in prefs:
        if dim % p == 0:
            return p
    return dim


def _gelu_tanh(x):
    # TODO(synk): tanh-approx GELU (lowers to EUP); nn.GELU() default is the
    # exact erf form -- difference is ~1e-3 absolute.
    c = math.sqrt(2.0 / math.pi)
    return 0.5 * x * (1.0 + jnp.tanh(c * (x + 0.044715 * x * x * x)))


# ----------------------------------------------------------------------------
# Pallas kernel: fused [LayerNorm] -> matmul [-> +bias] [-> GELU] [-> +residual]
# ----------------------------------------------------------------------------
def fused_matmul(x, w, bias=None, *, ln=None, act=None, residual=None,
                 ln_eps=1e-5):
    """y = act(LN(x) @ w + bias) + residual in a single Pallas kernel.

    x: (M, K) f32; w: (K, N); bias: (N,) or None; ln: (gamma, beta) or None;
    act: None | 'gelu'; residual: (M, N) or None.

    K is kept whole per block so the LayerNorm prologue can reduce over the
    feature axis in-kernel.  N is zero-padded to a multiple of 128 so stores
    are lane-dense; the pad is sliced off before returning.
    # TODO(synk): add a K-tiled reduction grid for very large K (K<=4096 fits
    # comfortably in VMEM with these block sizes).
    """
    M, K = x.shape
    K2, N = w.shape
    assert K == K2
    Np = _round_up(N, 128)
    if Np != N:
        w = jnp.pad(w, ((0, 0), (0, Np - N)))
        if bias is not None:
            bias = jnp.pad(bias, (0, Np - N))
        if residual is not None:
            residual = jnp.pad(residual, ((0, 0), (0, Np - N)))

    tm = _pick_tile(M)
    tn = _pick_tile(Np, (256, 128))
    grid = (M // tm, Np // tn)

    has_ln = ln is not None
    has_bias = bias is not None
    has_res = residual is not None

    def kernel(*refs):
        idx = 0
        x_ref = refs[idx]; idx += 1
        w_ref = refs[idx]; idx += 1
        if has_ln:
            g_ref = refs[idx]; idx += 1
            bt_ref = refs[idx]; idx += 1
        if has_bias:
            bias_ref = refs[idx]; idx += 1
        if has_res:
            res_ref = refs[idx]; idx += 1
        o_ref = refs[idx]

        xv = x_ref[...].astype(jnp.float32)
        if has_ln:
            mean = jnp.mean(xv, axis=-1, keepdims=True)
            var = jnp.mean(jnp.square(xv - mean), axis=-1, keepdims=True)
            xv = (xv - mean) * jax.lax.rsqrt(var + ln_eps)
            xv = xv * g_ref[...] + bt_ref[...]
        acc = jnp.dot(xv, w_ref[...], preferred_element_type=jnp.float32)
        if has_bias:
            acc = acc + bias_ref[...]
        if act == 'gelu':
            acc = _gelu_tanh(acc)
        if has_res:
            acc = acc + res_ref[...].astype(jnp.float32)
        o_ref[...] = acc.astype(o_ref.dtype)

    in_specs = [
        pl.BlockSpec((tm, K), lambda i, j: (i, 0)),
        pl.BlockSpec((K, tn), lambda i, j: (0, j)),
    ]
    args = [x, w]
    if has_ln:
        gamma, beta = ln
        in_specs += [pl.BlockSpec((1, K), lambda i, j: (0, 0)),
                     pl.BlockSpec((1, K), lambda i, j: (0, 0))]
        args += [gamma.reshape(1, K).astype(jnp.float32),
                 beta.reshape(1, K).astype(jnp.float32)]
    if has_bias:
        in_specs.append(pl.BlockSpec((1, tn), lambda i, j: (0, j)))
        args.append(bias.reshape(1, Np).astype(jnp.float32))
    if has_res:
        in_specs.append(pl.BlockSpec((tm, tn), lambda i, j: (i, j)))
        args.append(residual)

    out = pl.pallas_call(
        kernel,
        out_shape=jax.ShapeDtypeStruct((M, Np), x.dtype),
        grid_spec=pltpu.PrefetchScalarGridSpec(
            num_scalar_prefetch=0,
            grid=grid,
            in_specs=in_specs,
            out_specs=pl.BlockSpec((tm, tn), lambda i, j: (i, j)),
        ),
        compiler_params=pltpu.CompilerParams(
            dimension_semantics=("parallel", "parallel")),
    )(*args)
    if Np != N:
        out = out[:, :N]
    return out


# ----------------------------------------------------------------------------
# Pallas kernel: key scores  s_k[h] = (normalizer * k_h) @ proj^T
# (needed ahead of the attention kernel because FAVOR+ keys use a *global*
#  max shift over all batches/heads/positions)
# ----------------------------------------------------------------------------
def favor_k_scores(qkv, projT_pad, *, heads, dh, dim, normalizer):
    R, W = qkv.shape
    m_pad = projT_pad.shape[1]
    tr = _pick_tile(R)
    grid = (R // tr,)

    def kernel(qkv_ref, p_ref, s_ref):
        kv = qkv_ref[...].astype(jnp.float32)
        p = p_ref[...]
        for hh in range(heads):
            c0 = dim + hh * dh                      # key section, head hh
            yk = kv[:, c0:c0 + dh] * normalizer
            s_ref[hh] = jnp.dot(yk, p, preferred_element_type=jnp.float32)

    return pl.pallas_call(
        kernel,
        out_shape=jax.ShapeDtypeStruct((heads, R, m_pad), jnp.float32),
        grid_spec=pltpu.PrefetchScalarGridSpec(
            num_scalar_prefetch=0,
            grid=grid,
            in_specs=[
                pl.BlockSpec((tr, W), lambda i: (i, 0)),
                pl.BlockSpec((dh, m_pad), lambda i: (0, 0)),
            ],
            out_specs=pl.BlockSpec((heads, tr, m_pad), lambda i: (0, i, 0)),
        ),
        compiler_params=pltpu.CompilerParams(
            dimension_semantics=("parallel",)),
    )(qkv, projT_pad)


# ----------------------------------------------------------------------------
# Pallas kernel: fused FAVOR+ feature maps + non-causal linear attention
# ----------------------------------------------------------------------------
def performer_attention(qkv, s_k, projT_pad, shift, *, batch, seq, heads, dh,
                        dim, m_real, normalizer, ratio, kernel_eps):
    """qkv: (b*n, 3*dim) rows ordered (batch, seq), columns [q | k | v].
    s_k:  (heads, b*n, m_pad) key scores.  shift: (1, 1) global key-score max.
    Returns (b*n, dim) already in 'b n (h d)' layout (no transposes needed).
    # TODO(synk): tile over the sequence axis (two-pass k-sum/context
    # accumulation) for long sequences; whole-sequence blocks are used here.
    """
    R, W = qkv.shape
    m_pad = projT_pad.shape[1]

    def kernel(qkv_ref, s_ref, p_ref, shift_ref, o_ref):
        kv = qkv_ref[...].astype(jnp.float32)       # (n, 3*dim)
        p = p_ref[...]                              # (dh, m_pad)
        shift_k = shift_ref[...]                    # (1, 1)
        col = jax.lax.broadcasted_iota(jnp.int32, (seq, m_pad), 1)
        valid = col < m_real
        neg_inf = jnp.full((seq, m_pad), -jnp.inf, jnp.float32)

        for hh in range(heads):
            qc = hh * dh
            kc = dim + hh * dh
            vc = 2 * dim + hh * dh
            yq = kv[:, qc:qc + dh] * normalizer      # (n, dh)
            yk = kv[:, kc:kc + dh] * normalizer
            vh = kv[:, vc:vc + dh]                   # (n, dh)

            diag_q = 0.5 * jnp.sum(yq * yq, axis=-1, keepdims=True)
            diag_k = 0.5 * jnp.sum(yk * yk, axis=-1, keepdims=True)

            # query features: per-row max shift
            sq = jnp.dot(yq, p, preferred_element_type=jnp.float32)
            shift_q = jnp.max(jnp.where(valid, sq, neg_inf), axis=-1,
                              keepdims=True)
            qp = ratio * (jnp.exp(jnp.where(valid, sq - diag_q - shift_q, 0.0))
                          + kernel_eps)
            qp = jnp.where(valid, qp, 0.0)

            # key features: global max shift (precomputed)
            sk = s_ref[hh]                           # (n, m_pad)
            kp = ratio * (jnp.exp(jnp.where(valid, sk - diag_k - shift_k, 0.0))
                          + kernel_eps)
            kp = jnp.where(valid, kp, 0.0)

            # linear attention for this head
            k_sum = jnp.sum(kp, axis=0, keepdims=True)           # (1, m_pad)
            d = jnp.sum(qp * k_sum, axis=-1, keepdims=True)      # (n, 1)
            ctx = jax.lax.dot_general(kp, vh, (((0,), (0,)), ((), ())),
                                      preferred_element_type=jnp.float32)
            out_h = jnp.dot(qp, ctx, preferred_element_type=jnp.float32)
            out_h = out_h * pl.reciprocal(d, approx=True)
            o_ref[:, qc:qc + dh] = out_h.astype(o_ref.dtype)

    return pl.pallas_call(
        kernel,
        out_shape=jax.ShapeDtypeStruct((R, dim), qkv.dtype),
        grid_spec=pltpu.PrefetchScalarGridSpec(
            num_scalar_prefetch=0,
            grid=(batch,),
            in_specs=[
                pl.BlockSpec((seq, W), lambda bi: (bi, 0)),
                pl.BlockSpec((heads, seq, m_pad), lambda bi: (0, bi, 0)),
                pl.BlockSpec((dh, m_pad), lambda bi: (0, 0)),
                pl.BlockSpec((1, 1), lambda bi: (0, 0)),
            ],
            out_specs=pl.BlockSpec((seq, dim), lambda bi: (bi, 0)),
        ),
        compiler_params=pltpu.CompilerParams(
            dimension_semantics=("parallel",)),
    )(qkv, s_k, projT_pad, shift)


# ----------------------------------------------------------------------------
# Performer math (glue around the Pallas kernels)
# ----------------------------------------------------------------------------
def gaussian_orthogonal_random_matrix(key, nb_rows, nb_columns, scaling=0):
    nb_full_blocks = nb_rows // nb_columns
    keys = jax.random.split(key, nb_full_blocks + 2)
    blocks = []
    for i in range(nb_full_blocks):
        blk = jax.random.normal(keys[i], (nb_columns, nb_columns), jnp.float32)
        q, _ = jnp.linalg.qr(blk)
        blocks.append(q.T)
    remaining = nb_rows - nb_full_blocks * nb_columns
    if remaining > 0:
        blk = jax.random.normal(keys[nb_full_blocks],
                                (nb_columns, nb_columns), jnp.float32)
        q, _ = jnp.linalg.qr(blk)
        blocks.append(q.T[:remaining])
    final_matrix = jnp.concatenate(blocks, axis=0)
    if scaling == 0:
        multiplier = jnp.linalg.norm(
            jax.random.normal(keys[-1], (nb_rows, nb_columns), jnp.float32),
            axis=1)
    elif scaling == 1:
        multiplier = math.sqrt(float(nb_columns)) * jnp.ones((nb_rows,),
                                                             jnp.float32)
    else:
        raise ValueError(f"Invalid scaling {scaling}")
    return multiplier[:, None] * final_matrix


def performer_lm_forward(params, tokens, *, heads, nb_features):
    b, n = tokens.shape
    dim = params['token_emb'].shape[-1]
    dh = dim // heads
    m_pad = _round_up(nb_features, 128)
    normalizer = 1.0 / (dh ** 0.25)
    ratio = 1.0 / math.sqrt(float(nb_features))
    kernel_eps = 1e-4

    # embedding gather stays in JAX
    x = params['token_emb'][tokens] + params['pos_emb'][:n][None, :, :]
    x = x.reshape(b * n, dim)

    for layer in params['layers']:
        # proj (m, dh) -> proj^T zero-padded to lane-dense (dh, 128k); padded
        # feature columns are masked to exactly zero inside the kernels.
        projT_pad = jnp.pad(layer['proj'].T,
                            ((0, 0), (0, m_pad - nb_features)))

        # --- attention block: x = x + to_out(FAVOR(LN(x))) -------------------
        qkv = fused_matmul(x, layer['qkv_w'],
                           ln=(layer['ln1_g'], layer['ln1_b']))
        s_k = favor_k_scores(qkv, projT_pad, heads=heads, dh=dh, dim=dim,
                             normalizer=normalizer)
        # global max over *real* key scores (matches torch.max(data_dash))
        shift = jnp.max(s_k[..., :nb_features]).reshape(1, 1)
        attn = performer_attention(
            qkv, s_k, projT_pad, shift,
            batch=b, seq=n, heads=heads, dh=dh, dim=dim,
            m_real=nb_features, normalizer=normalizer, ratio=ratio,
            kernel_eps=kernel_eps)
        x = fused_matmul(attn, layer['out_w'], layer['out_b'], residual=x)

        # --- feed-forward block: x = x + W2(GELU(W1(LN(x)))) -----------------
        h1 = fused_matmul(x, layer['ff1_w'], layer['ff1_b'],
                          ln=(layer['ln2_g'], layer['ln2_b']), act='gelu')
        x = fused_matmul(h1, layer['ff2_w'], layer['ff2_b'], residual=x)

    # --- to_logits: LayerNorm + Linear (fused) --------------------------------
    logits = fused_matmul(x, params['logits_w'], params['logits_b'],
                          ln=(params['final_ln_g'], params['final_ln_b']))
    return logits.reshape(b, n, -1)


# ----------------------------------------------------------------------------
# deterministic parameter initialization
# ----------------------------------------------------------------------------
def init_params(key, *, num_tokens, max_seq_len, dim, depth, heads, ff_mult,
                nb_features):
    dh = dim // heads
    keys = list(jax.random.split(key, 4 + depth * 8))
    kit = iter(keys)
    nk = lambda: next(kit)

    def dense(k, fan_in, fan_out):
        bound = 1.0 / math.sqrt(fan_in)
        return jax.random.uniform(k, (fan_in, fan_out), jnp.float32,
                                  -bound, bound)

    params = {
        'token_emb': jax.random.normal(nk(), (num_tokens, dim), jnp.float32),
        'pos_emb': jax.random.normal(nk(), (max_seq_len, dim), jnp.float32),
        'layers': [],
        'final_ln_g': jnp.ones((dim,), jnp.float32),
        'final_ln_b': jnp.zeros((dim,), jnp.float32),
        'logits_w': dense(nk(), dim, num_tokens),
        'logits_b': jnp.zeros((num_tokens,), jnp.float32),
    }
    for _ in range(depth):
        layer = {
            'ln1_g': jnp.ones((dim,), jnp.float32),
            'ln1_b': jnp.zeros((dim,), jnp.float32),
            'qkv_w': dense(nk(), dim, 3 * dim),
            'out_w': dense(nk(), dim, dim),
            'out_b': jnp.zeros((dim,), jnp.float32),
            # redraw_projection=True draws a fresh matrix each forward; here we
            # draw it deterministically once per layer.
            'proj': gaussian_orthogonal_random_matrix(nk(), nb_features, dh),
            'ln2_g': jnp.ones((dim,), jnp.float32),
            'ln2_b': jnp.zeros((dim,), jnp.float32),
            'ff1_w': dense(nk(), dim, ff_mult * dim),
            'ff1_b': jnp.zeros((ff_mult * dim,), jnp.float32),
            'ff2_w': dense(nk(), ff_mult * dim, dim),
            'ff2_b': jnp.zeros((dim,), jnp.float32),
        }
        params['layers'].append(layer)
    return params


# ----------------------------------------------------------------------------
# main
# ----------------------------------------------------------------------------
if __name__ == "__main__":
    NUM_TOKENS = 256
    MAX_SEQ_LEN = 64
    DIM = 64
    DEPTH = 2
    HEADS = 4
    FF_MULT = 4
    DIM_HEAD = DIM // HEADS
    NB_FEATURES = int(DIM_HEAD * math.log(DIM_HEAD))  # FastAttention default

    BATCH = 2
    SEQ = 16

    root = jax.random.PRNGKey(0)
    k_params, k_tokens = jax.random.split(root)

    params = init_params(
        k_params, num_tokens=NUM_TOKENS, max_seq_len=MAX_SEQ_LEN, dim=DIM,
        depth=DEPTH, heads=HEADS, ff_mult=FF_MULT, nb_features=NB_FEATURES)

    tokens = jax.random.randint(k_tokens, (BATCH, SEQ), 0, NUM_TOKENS,
                                dtype=jnp.int32)

    fwd = jax.jit(functools.partial(performer_lm_forward,
                                    heads=HEADS, nb_features=NB_FEATURES))
    logits = fwd(params, tokens)
    logits = jax.block_until_ready(logits)

    assert logits.shape == (BATCH, SEQ, NUM_TOKENS)
    assert bool(jnp.all(jnp.isfinite(logits)))
    print("KERNEL_OK")
</pallas_src>

<mosaic_0001>
module attributes {stable_mosaic.version = 11 : i64} {
  func.func @kernel(%arg0: i32, %arg1: i32, %arg2: memref<32x64xf32, #tpu.memory_space<vmem>>, %arg3: memref<64x256xf32, #tpu.memory_space<vmem>>, %arg4: memref<1x64xf32, #tpu.memory_space<vmem>>, %arg5: memref<1x64xf32, #tpu.memory_space<vmem>>, %arg6: memref<32x256xf32, #tpu.memory_space<vmem>>) attributes {dimension_semantics = [#tpu.dimension_semantics<parallel>, #tpu.dimension_semantics<parallel>], iteration_bounds = array<i64: 1, 1>, scalar_prefetch = 0 : i64, scratch_operands = 0 : i64, tpu.core_type = #tpu.core_type<tc>, window_params = [{transform_indices = @transform_0, window_bounds = array<i64: 32, 64>}, {transform_indices = @transform_1, window_bounds = array<i64: 64, 256>}, {pipeline_mode = #tpu.pipeline_mode<synchronous>, transform_indices = @transform_2, window_bounds = array<i64: 1, 64>}, {pipeline_mode = #tpu.pipeline_mode<synchronous>, transform_indices = @transform_3, window_bounds = array<i64: 1, 64>}, {transform_indices = @transform_4, window_bounds = array<i64: 32, 256>}]} {
    %c0 = arith.constant 0 : index
    %c0_0 = arith.constant 0 : index
    %0 = vector.load %arg2[%c0, %c0_0] : memref<32x64xf32, #tpu.memory_space<vmem>>, vector<32x64xf32>
    %cst = arith.constant dense<0.000000e+00> : vector<32xf32>
    %1 = vector.multi_reduction <add>, %0, %cst [1] : vector<32x64xf32> to vector<32xf32>
    %2 = vector.shape_cast %1 : vector<32xf32> to vector<32x1xf32>
    %cst_1 = arith.constant 6.400000e+01 : f32
    %3 = vector.broadcast %cst_1 : f32 to vector<32x1xf32>
    %4 = arith.divf %2, %3 : vector<32x1xf32>
    %5 = vector.broadcast %4 : vector<32x1xf32> to vector<32x64xf32>
    %6 = arith.subf %0, %5 : vector<32x64xf32>
    %7 = arith.mulf %6, %6 : vector<32x64xf32>
    %cst_2 = arith.constant dense<0.000000e+00> : vector<32xf32>
    %8 = vector.multi_reduction <add>, %7, %cst_2 [1] : vector<32x64xf32> to vector<32xf32>
    %9 = vector.shape_cast %8 : vector<32xf32> to vector<32x1xf32>
    %cst_3 = arith.constant 6.400000e+01 : f32
    %10 = vector.broadcast %cst_3 : f32 to vector<32x1xf32>
    %11 = arith.divf %9, %10 : vector<32x1xf32>
    %12 = vector.broadcast %4 : vector<32x1xf32> to vector<32x64xf32>
    %13 = arith.subf %0, %12 : vector<32x64xf32>
    %cst_4 = arith.constant 9.99999974E-6 : f32
    %14 = vector.broadcast %cst_4 : f32 to vector<32x1xf32>
    %15 = arith.addf %11, %14 : vector<32x1xf32>
    %16 = math.rsqrt %15 : vector<32x1xf32>
    %17 = vector.broadcast %16 : vector<32x1xf32> to vector<32x64xf32>
    %18 = arith.mulf %13, %17 : vector<32x64xf32>
    %c0_5 = arith.constant 0 : index
    %c0_6 = arith.constant 0 : index
    %19 = vector.load %arg4[%c0_5, %c0_6] : memref<1x64xf32, #tpu.memory_space<vmem>>, vector<1x64xf32>
    %20 = vector.broadcast %19 : vector<1x64xf32> to vector<32x64xf32>
    %21 = arith.mulf %18, %20 : vector<32x64xf32>
    %c0_7 = arith.constant 0 : index
    %c0_8 = arith.constant 0 : index
    %22 = vector.load %arg5[%c0_7, %c0_8] : memref<1x64xf32, #tpu.memory_space<vmem>>, vector<1x64xf32>
    %23 = vector.broadcast %22 : vector<1x64xf32> to vector<32x64xf32>
    %24 = arith.addf %21, %23 : vector<32x64xf32>
    %c0_9 = arith.constant 0 : index
    %c0_10 = arith.constant 0 : index
    %25 = vector.load %arg3[%c0_9, %c0_10] : memref<64x256xf32, #tpu.memory_space<vmem>>, vector<64x256xf32>
    %cst_11 = arith.constant dense<0.000000e+00> : vector<32x256xf32>
    %26 = tpu.matmul %24, %25, %cst_11 {dimension_numbers = #tpu.dot_dimension_numbers<[1], [0], [0], [1], [0, 0, 1, 1], [], []>} : vector<32x64xf32>, vector<64x256xf32>, vector<32x256xf32> -> vector<32x256xf32>
    %c0_12 = arith.constant 0 : index
    %c0_13 = arith.constant 0 : index
    %27 = vector.load %arg6[%c0_12, %c0_13] : memref<32x256xf32, #tpu.memory_space<vmem>>, vector<32x256xf32>
    tpu.vector_store %arg6[%c0_12, %c0_13], %26 {strides = array<i32>} : memref<32x256xf32, #tpu.memory_space<vmem>>, vector<32x256xf32>,
    return
  }
  func.func @transform_0(%arg0: i32, %arg1: i32) -> (i32, i32) {
    %c0_i32 = arith.constant 0 : i32
    %c0_i32_0 = arith.constant 0 : i32
    return %arg0, %c0_i32 : i32, i32
  }
  func.func @transform_1(%arg0: i32, %arg1: i32) -> (i32, i32) {
    %c0_i32 = arith.constant 0 : i32
    %c0_i32_0 = arith.constant 0 : i32
    return %c0_i32, %arg1 : i32, i32
  }
  func.func @transform_2(%arg0: i32, %arg1: i32) -> (i32, i32) {
    %c0_i32 = arith.constant 0 : i32
    %c0_i32_0 = arith.constant 0 : i32
    %c0_i32_1 = arith.constant 0 : i32
    return %c0_i32, %c0_i32_0 : i32, i32
  }
  func.func @transform_3(%arg0: i32, %arg1: i32) -> (i32, i32) {
    %c0_i32 = arith.constant 0 : i32
    %c0_i32_0 = arith.constant 0 : i32
    %c0_i32_1 = arith.constant 0 : i32
    return %c0_i32, %c0_i32_0 : i32, i32
  }
  func.func @transform_4(%arg0: i32, %arg1: i32) -> (i32, i32) {
    %c0_i32 = arith.constant 0 : i32
    return %arg0, %arg1 : i32, i32
  }
}

module attributes {stable_mosaic.version = 11 : i64} {
  func.func @kernel(%arg0: i32, %arg1: memref<32x192xf32, #tpu.memory_space<vmem>>, %arg2: memref<16x128xf32, #tpu.memory_space<vmem>>, %arg3: memref<4x32x128xf32, #tpu.memory_space<vmem>>) attributes {dimension_semantics = [#tpu.dimension_semantics<parallel>], iteration_bounds = array<i64: 1>, scalar_prefetch = 0 : i64, scratch_operands = 0 : i64, tpu.core_type = #tpu.core_type<tc>, window_params = [{transform_indices = @transform_0, window_bounds = array<i64: 32, 192>}, {pipeline_mode = #tpu.pipeline_mode<synchronous>, transform_indices = @transform_1, window_bounds = array<i64: 16, 128>}, {transform_indices = @transform_2, window_bounds = array<i64: 4, 32, 128>}]} {
    %c0 = arith.constant 0 : index
    %c0_0 = arith.constant 0 : index
    %0 = vector.load %arg1[%c0, %c0_0] : memref<32x192xf32, #tpu.memory_space<vmem>>, vector<32x192xf32>
    %c0_1 = arith.constant 0 : index
    %c0_2 = arith.constant 0 : index
    %1 = vector.load %arg2[%c0_1, %c0_2] : memref<16x128xf32, #tpu.memory_space<vmem>>, vector<16x128xf32>
    %2 = vector.extract_strided_slice %0 {offsets = [0, 64], sizes = [32, 16], strides = [1, 1]} : vector<32x192xf32> to vector<32x16xf32>
    %cst = arith.constant 5.000000e-01 : f32
    %3 = vector.broadcast %cst : f32 to vector<32x16xf32>
    %4 = arith.mulf %2, %3 : vector<32x16xf32>
    %cst_3 = arith.constant dense<0.000000e+00> : vector<32x128xf32>
    %5 = tpu.matmul %4, %1, %cst_3 {dimension_numbers = #tpu.dot_dimension_numbers<[1], [0], [0], [1], [0, 0, 1, 1], [], []>} : vector<32x16xf32>, vector<16x128xf32>, vector<32x128xf32> -> vector<32x128xf32>
    %c0_4 = arith.constant 0 : index
    %c0_5 = arith.constant 0 : index
    %c0_6 = arith.constant 0 : index
    %6 = vector.load %arg3[%c0_4, %c0_5, %c0_6] : memref<4x32x128xf32, #tpu.memory_space<vmem>>, vector<1x32x128xf32>
    %7 = vector.shape_cast %6 : vector<1x32x128xf32> to vector<32x128xf32>
    %8 = vector.shape_cast %5 : vector<32x128xf32> to vector<1x32x128xf32>
    tpu.vector_store %arg3[%c0_4, %c0_5, %c0_6], %8 {strides = array<i32>} : memref<4x32x128xf32, #tpu.memory_space<vmem>>, vector<1x32x128xf32>,
    %9 = vector.extract_strided_slice %0 {offsets = [0, 80], sizes = [32, 16], strides = [1, 1]} : vector<32x192xf32> to vector<32x16xf32>
    %cst_7 = arith.constant 5.000000e-01 : f32
    %10 = vector.broadcast %cst_7 : f32 to vector<32x16xf32>
    %11 = arith.mulf %9, %10 : vector<32x16xf32>
    %cst_8 = arith.constant dense<0.000000e+00> : vector<32x128xf32>
    %12 = tpu.matmul %11, %1, %cst_8 {dimension_numbers = #tpu.dot_dimension_numbers<[1], [0], [0], [1], [0, 0, 1, 1], [], []>} : vector<32x16xf32>, vector<16x128xf32>, vector<32x128xf32> -> vector<32x128xf32>
    %c1 = arith.constant 1 : index
    %c0_9 = arith.constant 0 : index
    %c0_10 = arith.constant 0 : index
    %13 = vector.load %arg3[%c1, %c0_9, %c0_10] : memref<4x32x128xf32, #tpu.memory_space<vmem>>, vector<1x32x128xf32>
    %14 = vector.shape_cast %13 : vector<1x32x128xf32> to vector<32x128xf32>
    %15 = vector.shape_cast %12 : vector<32x128xf32> to vector<1x32x128xf32>
    tpu.vector_store %arg3[%c1, %c0_9, %c0_10], %15 {strides = array<i32>} : memref<4x32x128xf32, #tpu.memory_space<vmem>>, vector<1x32x128xf32>,
    %16 = vector.extract_strided_slice %0 {offsets = [0, 96], sizes = [32, 16], strides = [1, 1]} : vector<32x192xf32> to vector<32x16xf32>
    %cst_11 = arith.constant 5.000000e-01 : f32
    %17 = vector.broadcast %cst_11 : f32 to vector<32x16xf32>
    %18 = arith.mulf %16, %17 : vector<32x16xf32>
    %cst_12 = arith.constant dense<0.000000e+00> : vector<32x128xf32>
    %19 = tpu.matmul %18, %1, %cst_12 {dimension_numbers = #tpu.dot_dimension_numbers<[1], [0], [0], [1], [0, 0, 1, 1], [], []>} : vector<32x16xf32>, vector<16x128xf32>, vector<32x128xf32> -> vector<32x128xf32>
    %c2 = arith.constant 2 : index
    %c0_13 = arith.constant 0 : index
    %c0_14 = arith.constant 0 : index
    %20 = vector.load %arg3[%c2, %c0_13, %c0_14] : memref<4x32x128xf32, #tpu.memory_space<vmem>>, vector<1x32x128xf32>
    %21 = vector.shape_cast %20 : vector<1x32x128xf32> to vector<32x128xf32>
    %22 = vector.shape_cast %19 : vector<32x128xf32> to vector<1x32x128xf32>
    tpu.vector_store %arg3[%c2, %c0_13, %c0_14], %22 {strides = array<i32>} : memref<4x32x128xf32, #tpu.memory_space<vmem>>, vector<1x32x128xf32>,
    %23 = vector.extract_strided_slice %0 {offsets = [0, 112], sizes = [32, 16], strides = [1, 1]} : vector<32x192xf32> to vector<32x16xf32>
    %cst_15 = arith.constant 5.000000e-01 : f32
    %24 = vector.broadcast %cst_15 : f32 to vector<32x16xf32>
    %25 = arith.mulf %23, %24 : vector<32x16xf32>
    %cst_16 = arith.constant dense<0.000000e+00> : vector<32x128xf32>
    %26 = tpu.matmul %25, %1, %cst_16 {dimension_numbers = #tpu.dot_dimension_numbers<[1], [0], [0], [1], [0, 0, 1, 1], [], []>} : vector<32x16xf32>, vector<16x128xf32>, vector<32x128xf32> -> vector<32x128xf32>
    %c3 = arith.constant 3 : index
    %c0_17 = arith.constant 0 : index
    %c0_18 = arith.constant 0 : index
    %27 = vector.load %arg3[%c3, %c0_17, %c0_18] : memref<4x32x128xf32, #tpu.memory_space<vmem>>, vector<1x32x128xf32>
    %28 = vector.shape_cast %27 : vector<1x32x128xf32> to vector<32x128xf32>
    %29 = vector.shape_cast %26 : vector<32x128xf32> to vector<1x32x128xf32>
    tpu.vector_store %arg3[%c3, %c0_17, %c0_18], %29 {strides = array<i32>} : memref<4x32x128xf32, #tpu.memory_space<vmem>>, vector<1x32x128xf32>,
    return
  }
  func.func @transform_0(%arg0: i32) -> (i32, i32) {
    %c0_i32 = arith.constant 0 : i32
    %c0_i32_0 = arith.constant 0 : i32
    return %arg0, %c0_i32 : i32, i32
  }
  func.func @transform_1(%arg0: i32) -> (i32, i32) {
    %c0_i32 = arith.constant 0 : i32
    %c0_i32_0 = arith.constant 0 : i32
    %c0_i32_1 = arith.constant 0 : i32
    return %c0_i32, %c0_i32_0 : i32, i32
  }
  func.func @transform_2(%arg0: i32) -> (i32, i32, i32) {
    %c0_i32 = arith.constant 0 : i32
    %c0_i32_0 = arith.constant 0 : i32
    %c0_i32_1 = arith.constant 0 : i32
    return %c0_i32, %arg0, %c0_i32_0 : i32, i32, i32
  }
}

module attributes {stable_mosaic.version = 11 : i64} {
  func.func @kernel(%arg0: i32, %arg1: memref<16x192xf32, #tpu.memory_space<vmem>>, %arg2: memref<4x16x128xf32, #tpu.memory_space<vmem>>, %arg3: memref<16x128xf32, #tpu.memory_space<vmem>>, %arg4: memref<1x1xf32, #tpu.memory_space<vmem>>, %arg5: memref<16x64xf32, #tpu.memory_space<vmem>>) attributes {dimension_semantics = [#tpu.dimension_semantics<parallel>], iteration_bounds = array<i64: 2>, scalar_prefetch = 0 : i64, scratch_operands = 0 : i64, tpu.core_type = #tpu.core_type<tc>, window_params = [{transform_indices = @transform_0, window_bounds = array<i64: 16, 192>}, {transform_indices = @transform_1, window_bounds = array<i64: 4, 16, 128>}, {pipeline_mode = #tpu.pipeline_mode<synchronous>, transform_indices = @transform_2, window_bounds = array<i64: 16, 128>}, {pipeline_mode = #tpu.pipeline_mode<synchronous>, transform_indices = @transform_3, window_bounds = array<i64: 1, 1>}, {transform_indices = @transform_4, window_bounds = array<i64: 16, 64>}]} {
    %c0 = arith.constant 0 : index
    %c0_0 = arith.constant 0 : index
    %0 = vector.load %arg1[%c0, %c0_0] : memref<16x192xf32, #tpu.memory_space<vmem>>, vector<16x192xf32>
    %c0_1 = arith.constant 0 : index
    %c0_2 = arith.constant 0 : index
    %1 = vector.load %arg3[%c0_1, %c0_2] : memref<16x128xf32, #tpu.memory_space<vmem>>, vector<16x128xf32>
    %c0_3 = arith.constant 0 : index
    %c0_4 = arith.constant 0 : index
    %2 = vector.load %arg4[%c0_3, %c0_4] : memref<1x1xf32, #tpu.memory_space<vmem>>, vector<1x1xf32>
    %3 = tpu.iota {dimensions = array<i32: 1>} : vector<16x128xi32>
    %c44_i32 = arith.constant 44 : i32
    %4 = vector.broadcast %c44_i32 : i32 to vector<16x128xi32>
    %5 = arith.cmpi slt, %3, %4 : vector<16x128xi32>
    %cst = arith.constant 0xFF800000 : f32
    %6 = vector.broadcast %cst : f32 to vector<16x128xf32>
    %7 = vector.extract_strided_slice %0 {offsets = [0, 0], sizes = [16, 16], strides = [1, 1]} : vector<16x192xf32> to vector<16x16xf32>
    %cst_5 = arith.constant 5.000000e-01 : f32
    %8 = vector.broadcast %cst_5 : f32 to vector<16x16xf32>
    %9 = arith.mulf %7, %8 : vector<16x16xf32>
    %10 = vector.extract_strided_slice %0 {offsets = [0, 64], sizes = [16, 16], strides = [1, 1]} : vector<16x192xf32> to vector<16x16xf32>
    %cst_6 = arith.constant 5.000000e-01 : f32
    %11 = vector.broadcast %cst_6 : f32 to vector<16x16xf32>
    %12 = arith.mulf %10, %11 : vector<16x16xf32>
    %13 = vector.extract_strided_slice %0 {offsets = [0, 128], sizes = [16, 16], strides = [1, 1]} : vector<16x192xf32> to vector<16x16xf32>
    %14 = arith.mulf %9, %9 : vector<16x16xf32>
    %cst_7 = arith.constant dense<0.000000e+00> : vector<16xf32>
    %15 = vector.multi_reduction <add>, %14, %cst_7 [1] : vector<16x16xf32> to vector<16xf32>
    %16 = vector.shape_cast %15 : vector<16xf32> to vector<16x1xf32>
    %cst_8 = arith.constant 5.000000e-01 : f32
    %17 = vector.broadcast %cst_8 : f32 to vector<16x1xf32>
    %18 = arith.mulf %17, %16 : vector<16x1xf32>
    %19 = arith.mulf %12, %12 : vector<16x16xf32>
    %cst_9 = arith.constant dense<0.000000e+00> : vector<16xf32>
    %20 = vector.multi_reduction <add>, %19, %cst_9 [1] : vector<16x16xf32> to vector<16xf32>
    %21 = vector.shape_cast %20 : vector<16xf32> to vector<16x1xf32>
    %cst_10 = arith.constant 5.000000e-01 : f32
    %22 = vector.broadcast %cst_10 : f32 to vector<16x1xf32>
    %23 = arith.mulf %22, %21 : vector<16x1xf32>
    %cst_11 = arith.constant dense<0.000000e+00> : vector<16x128xf32>
    %24 = tpu.matmul %9, %1, %cst_11 {dimension_numbers = #tpu.dot_dimension_numbers<[1], [0], [0], [1], [0, 0, 1, 1], [], []>} : vector<16x16xf32>, vector<16x128xf32>, vector<16x128xf32> -> vector<16x128xf32>
    %25 = arith.select %5, %24, %6 : vector<16x128xi1>, vector<16x128xf32>
    %cst_12 = arith.constant dense<0xFF800000> : vector<16xf32>
    %26 = vector.multi_reduction <maximumf>, %25, %cst_12 [1] : vector<16x128xf32> to vector<16xf32>
    %27 = vector.shape_cast %26 : vector<16xf32> to vector<16x1xf32>
    %28 = vector.broadcast %18 : vector<16x1xf32> to vector<16x128xf32>
    %29 = arith.subf %24, %28 : vector<16x128xf32>
    %30 = vector.broadcast %27 : vector<16x1xf32> to vector<16x128xf32>
    %31 = arith.subf %29, %30 : vector<16x128xf32>
    %cst_13 = arith.constant 0.000000e+00 : f32
    %32 = vector.broadcast %cst_13 : f32 to vector<16x128xf32>
    %33 = arith.select %5, %31, %32 : vector<16x128xi1>, vector<16x128xf32>
    %34 = math.exp %33 : vector<16x128xf32>
    %cst_14 = arith.constant 9.99999974E-5 : f32
    %35 = vector.broadcast %cst_14 : f32 to vector<16x128xf32>
    %36 = arith.addf %34, %35 : vector<16x128xf32>
    %cst_15 = arith.constant 0.150755674 : f32
    %37 = vector.broadcast %cst_15 : f32 to vector<16x128xf32>
    %38 = arith.mulf %37, %36 : vector<16x128xf32>
    %cst_16 = arith.constant 0.000000e+00 : f32
    %39 = vector.broadcast %cst_16 : f32 to vector<16x128xf32>
    %40 = arith.select %5, %38, %39 : vector<16x128xi1>, vector<16x128xf32>
    %c0_17 = arith.constant 0 : index
    %c0_18 = arith.constant 0 : index
    %c0_19 = arith.constant 0 : index
    %41 = vector.load %arg2[%c0_17, %c0_18, %c0_19] : memref<4x16x128xf32, #tpu.memory_space<vmem>>, vector<1x16x128xf32>
    %42 = vector.shape_cast %41 : vector<1x16x128xf32> to vector<16x128xf32>
    %43 = vector.broadcast %23 : vector<16x1xf32> to vector<16x128xf32>
    %44 = arith.subf %42, %43 : vector<16x128xf32>
    %45 = vector.broadcast %2 : vector<1x1xf32> to vector<16x128xf32>
    %46 = arith.subf %44, %45 : vector<16x128xf32>
    %cst_20 = arith.constant 0.000000e+00 : f32
    %47 = vector.broadcast %cst_20 : f32 to vector<16x128xf32>
    %48 = arith.select %5, %46, %47 : vector<16x128xi1>, vector<16x128xf32>
    %49 = math.exp %48 : vector<16x128xf32>
    %cst_21 = arith.constant 9.99999974E-5 : f32
    %50 = vector.broadcast %cst_21 : f32 to vector<16x128xf32>
    %51 = arith.addf %49, %50 : vector<16x128xf32>
    %cst_22 = arith.constant 0.150755674 : f32
    %52 = vector.broadcast %cst_22 : f32 to vector<16x128xf32>
    %53 = arith.mulf %52, %51 : vector<16x128xf32>
    %cst_23 = arith.constant 0.000000e+00 : f32
    %54 = vector.broadcast %cst_23 : f32 to vector<16x128xf32>
    %55 = arith.select %5, %53, %54 : vector<16x128xi1>, vector<16x128xf32>
    %cst_24 = arith.constant dense<0.000000e+00> : vector<128xf32>
    %56 = vector.multi_reduction <add>, %55, %cst_24 [0] : vector<16x128xf32> to vector<128xf32>
    %57 = vector.shape_cast %56 : vector<128xf32> to vector<1x128xf32>
    %58 = vector.broadcast %57 : vector<1x128xf32> to vector<16x128xf32>
    %59 = arith.mulf %40, %58 : vector<16x128xf32>
    %cst_25 = arith.constant dense<0.000000e+00> : vector<16xf32>
    %60 = vector.multi_reduction <add>, %59, %cst_25 [1] : vector<16x128xf32> to vector<16xf32>
    %61 = vector.shape_cast %60 : vector<16xf32> to vector<16x1xf32>
    %cst_26 = arith.constant dense<0.000000e+00> : vector<128x16xf32>
    %62 = tpu.matmul %55, %13, %cst_26 {dimension_numbers = #tpu.dot_dimension_numbers<[0], [0], [1], [1], [0, 1, 1, 1], [], []>} : vector<16x128xf32>, vector<16x16xf32>, vector<128x16xf32> -> vector<128x16xf32>
    %cst_27 = arith.constant dense<0.000000e+00> : vector<16x16xf32>
    %63 = tpu.matmul %40, %62, %cst_27 {dimension_numbers = #tpu.dot_dimension_numbers<[1], [0], [0], [1], [0, 0, 1, 1], [], []>} : vector<16x128xf32>, vector<128x16xf32>, vector<16x16xf32> -> vector<16x16xf32>
    %64 = tpu.reciprocal %61 {approx = true} : vector<16x1xf32> -> vector<16x1xf32>
    %65 = vector.broadcast %64 : vector<16x1xf32> to vector<16x16xf32>
    %66 = arith.mulf %63, %65 : vector<16x16xf32>
    %c0_28 = arith.constant 0 : index
    %c0_29 = arith.constant 0 : index
    %67 = vector.load %arg5[%c0_28, %c0_29] : memref<16x64xf32, #tpu.memory_space<vmem>>, vector<16x16xf32>
    tpu.vector_store %arg5[%c0_28, %c0_29], %66 {strides = array<i32>} : memref<16x64xf32, #tpu.memory_space<vmem>>, vector<16x16xf32>,
    %68 = vector.extract_strided_slice %0 {offsets = [0, 16], sizes = [16, 16], strides = [1, 1]} : vector<16x192xf32> to vector<16x16xf32>
    %cst_30 = arith.constant 5.000000e-01 : f32
    %69 = vector.broadcast %cst_30 : f32 to vector<16x16xf32>
    %70 = arith.mulf %68, %69 : vector<16x16xf32>
    %71 = vector.extract_strided_slice %0 {offsets = [0, 80], sizes = [16, 16], strides = [1, 1]} : vector<16x192xf32> to vector<16x16xf32>
    %cst_31 = arith.constant 5.000000e-01 : f32
    %72 = vector.broadcast %cst_31 : f32 to vector<16x16xf32>
    %73 = arith.mulf %71, %72 : vector<16x16xf32>
    %74 = vector.extract_strided_slice %0 {offsets = [0, 144], sizes = [16, 16], strides = [1, 1]} : vector<16x192xf32> to vector<16x16xf32>
    %75 = arith.mulf %70, %70 : vector<16x16xf32>
    %cst_32 = arith.constant dense<0.000000e+00> : vector<16xf32>
    %76 = vector.multi_reduction <add>, %75, %cst_32 [1] : vector<16x16xf32> to vector<16xf32>
    %77 = vector.shape_cast %76 : vector<16xf32> to vector<16x1xf32>
    %cst_33 = arith.constant 5.000000e-01 : f32
    %78 = vector.broadcast %cst_33 : f32 to vector<16x1xf32>
    %79 = arith.mulf %78, %77 : vector<16x1xf32>
    %80 = arith.mulf %73, %73 : vector<16x16xf32>
    %cst_34 = arith.constant dense<0.000000e+00> : vector<16xf32>
    %81 = vector.multi_reduction <add>, %80, %cst_34 [1] : vector<16x16xf32> to vector<16xf32>
    %82 = vector.shape_cast %81 : vector<16xf32> to vector<16x1xf32>
    %cst_35 = arith.constant 5.000000e-01 : f32
    %83 = vector.broadcast %cst_35 : f32 to vector<16x1xf32>
    %84 = arith.mulf %83, %82 : vector<16x1xf32>
    %cst_36 = arith.constant dense<0.000000e+00> : vector<16x128xf32>
    %85 = tpu.matmul %70, %1, %cst_36 {dimension_numbers = #tpu.dot_dimension_numbers<[1], [0], [0], [1], [0, 0, 1, 1], [], []>} : vector<16x16xf32>, vector<16x128xf32>, vector<16x128xf32> -> vector<16x128xf32>
    %86 = arith.select %5, %85, %6 : vector<16x128xi1>, vector<16x128xf32>
    %cst_37 = arith.constant dense<0xFF800000> : vector<16xf32>
    %87 = vector.multi_reduction <maximumf>, %86, %cst_37 [1] : vector<16x128xf32> to vector<16xf32>
    %88 = vector.shape_cast %87 : vector<16xf32> to vector<16x1xf32>
    %89 = vector.broadcast %79 : vector<16x1xf32> to vector<16x128xf32>
    %90 = arith.subf %85, %89 : vector<16x128xf32>
    %91 = vector.broadcast %88 : vector<16x1xf32> to vector<16x128xf32>
    %92 = arith.subf %90, %91 : vector<16x128xf32>
    %cst_38 = arith.constant 0.000000e+00 : f32
    %93 = vector.broadcast %cst_38 : f32 to vector<16x128xf32>
    %94 = arith.select %5, %92, %93 : vector<16x128xi1>, vector<16x128xf32>
    %95 = math.exp %94 : vector<16x128xf32>
    %cst_39 = arith.constant 9.99999974E-5 : f32
    %96 = vector.broadcast %cst_39 : f32 to vector<16x128xf32>
    %97 = arith.addf %95, %96 : vector<16x128xf32>
    %cst_40 = arith.constant 0.150755674 : f32
    %98 = vector.broadcast %cst_40 : f32 to vector<16x128xf32>
    %99 = arith.mulf %98, %97 : vector<16x128xf32>
    %cst_41 = arith.constant 0.000000e+00 : f32
    %100 = vector.broadcast %cst_41 : f32 to vector<16x128xf32>
    %101 = arith.select %5, %99, %100 : vector<16x128xi1>, vector<16x128xf32>
    %c1 = arith.constant 1 : index
    %c0_42 = arith.constant 0 : index
    %c0_43 = arith.constant 0 : index
    %102 = vector.load %arg2[%c1, %c0_42, %c0_43] : memref<4x16x128xf32, #tpu.memory_space<vmem>>, vector<1x16x128xf32>
    %103 = vector.shape_cast %102 : vector<1x16x128xf32> to vector<16x128xf32>
    %104 = vector.broadcast %84 : vector<16x1xf32> to vector<16x128xf32>
    %105 = arith.subf %103, %104 : vector<16x128xf32>
    %106 = vector.broadcast %2 : vector<1x1xf32> to vector<16x128xf32>
    %107 = arith.subf %105, %106 : vector<16x128xf32>
    %cst_44 = arith.constant 0.000000e+00 : f32
    %108 = vector.broadcast %cst_44 : f32 to vector<16x128xf32>
    %109 = arith.select %5, %107, %108 : vector<16x128xi1>, vector<16x128xf32>
    %110 = math.exp %109 : vector<16x128xf32>
    %cst_45 = arith.constant 9.99999974E-5 : f32
    %111 = vector.broadcast %cst_45 : f32 to vector<16x128xf32>
    %112 = arith.addf %110, %111 : vector<16x128xf32>
    %cst_46 = arith.constant 0.150755674 : f32
    %113 = vector.broadcast %cst_46 : f32 to vector<16x128xf32>
    %114 = arith.mulf %113, %112 : vector<16x128xf32>
    %cst_47 = arith.constant 0.000000e+00 : f32
    %115 = vector.broadcast %cst_47 : f32 to vector<16x128xf32>
    %116 = arith.select %5, %114, %115 : vector<16x128xi1>, vector<16x128xf32>
    %cst_48 = arith.constant dense<0.000000e+00> : vector<128xf32>
    %117 = vector.multi_reduction <add>, %116, %cst_48 [0] : vector<16x128xf32> to vector<128xf32>
    %118 = vector.shape_cast %117 : vector<128xf32> to vector<1x128xf32>
    %119 = vector.broadcast %118 : vector<1x128xf32> to vector<16x128xf32>
    %120 = arith.mulf %101, %119 : vector<16x128xf32>
    %cst_49 = arith.constant dense<0.000000e+00> : vector<16xf32>
    %121 = vector.multi_reduction <add>, %120, %cst_49 [1] : vector<16x128xf32> to vector<16xf32>
    %122 = vector.shape_cast %121 : vector<16xf32> to vector<16x1xf32>
    %cst_50 = arith.constant dense<0.000000e+00> : vector<128x16xf32>
    %123 = tpu.matmul %116, %74, %cst_50 {dimension_numbers = #tpu.dot_dimension_numbers<[0], [0], [1], [1], [0, 1, 1, 1], [], []>} : vector<16x128xf32>, vector<16x16xf32>, vector<128x16xf32> -> vector<128x16xf32>
    %cst_51 = arith.constant dense<0.000000e+00> : vector<16x16xf32>
    %124 = tpu.matmul %101, %123, %cst_51 {dimension_numbers = #tpu.dot_dimension_numbers<[1], [0], [0], [1], [0, 0, 1, 1], [], []>} : vector<16x128xf32>, vector<128x16xf32>, vector<16x16xf32> -> vector<16x16xf32>
    %125 = tpu.reciprocal %122 {approx = true} : vector<16x1xf32> -> vector<16x1xf32>
    %126 = vector.broadcast %125 : vector<16x1xf32> to vector<16x16xf32>
    %127 = arith.mulf %124, %126 : vector<16x16xf32>
    %c0_52 = arith.constant 0 : index
    %c16 = arith.constant 16 : index
    %128 = vector.load %arg5[%c0_52, %c16] : memref<16x64xf32, #tpu.memory_space<vmem>>, vector<16x16xf32>
    tpu.vector_store %arg5[%c0_52, %c16], %127 {strides = array<i32>} : memref<16x64xf32, #tpu.memory_space<vmem>>, vector<16x16xf32>,
    %129 = vector.extract_strided_slice %0 {offsets = [0, 32], sizes = [16, 16], strides = [1, 1]} : vector<16x192xf32> to vector<16x16xf32>
    %cst_53 = arith.constant 5.000000e-01 : f32
    %130 = vector.broadcast %cst_53 : f32 to vector<16x16xf32>
    %131 = arith.mulf %129, %130 : vector<16x16xf32>
    %132 = vector.extract_strided_slice %0 {offsets = [0, 96], sizes = [16, 16], strides = [1, 1]} : vector<16x192xf32> to vector<16x16xf32>
    %cst_54 = arith.constant 5.000000e-01 : f32
    %133 = vector.broadcast %cst_54 : f32 to vector<16x16xf32>
    %134 = arith.mulf %132, %133 : vector<16x16xf32>
    %135 = vector.extract_strided_slice %0 {offsets = [0, 160], sizes = [16, 16], strides = [1, 1]} : vector<16x192xf32> to vector<16x16xf32>
    %136 = arith.mulf %131, %131 : vector<16x16xf32>
    %cst_55 = arith.constant dense<0.000000e+00> : vector<16xf32>
    %137 = vector.multi_reduction <add>, %136, %cst_55 [1] : vector<16x16xf32> to vector<16xf32>
    %138 = vector.shape_cast %137 : vector<16xf32> to vector<16x1xf32>
    %cst_56 = arith.constant 5.000000e-01 : f32
    %139 = vector.broadcast %cst_56 : f32 to vector<16x1xf32>
    %140 = arith.mulf %139, %138 : vector<16x1xf32>
    %141 = arith.mulf %134, %134 : vector<16x16xf32>
    %cst_57 = arith.constant dense<0.000000e+00> : vector<16xf32>
    %142 = vector.multi_reduction <add>, %141, %cst_57 [1] : vector<16x16xf32> to vector<16xf32>
    %143 = vector.shape_cast %142 : vector<16xf32> to vector<16x1xf32>
    %cst_58 = arith.constant 5.000000e-01 : f32
    %144 = vector.broadcast %cst_58 : f32 to vector<16x1xf32>
    %145 = arith.mulf %144, %143 : vector<16x1xf32>
    %cst_59 = arith.constant dense<0.000000e+00> : vector<16x128xf32>
    %146 = tpu.matmul %131, %1, %cst_59 {dimension_numbers = #tpu.dot_dimension_numbers<[1], [0], [0], [1], [0, 0, 1, 1], [], []>} : vector<16x16xf32>, vector<16x128xf32>, vector<16x128xf32> -> vector<16x128xf32>
    %147 = arith.select %5, %146, %6 : vector<16x128xi1>, vector<16x128xf32>
    %cst_60 = arith.constant dense<0xFF800000> : vector<16xf32>
    %148 = vector.multi_reduction <maximumf>, %147, %cst_60 [1] : vector<16x128xf32> to vector<16xf32>
    %149 = vector.shape_cast %148 : vector<16xf32> to vector<16x1xf32>
    %150 = vector.broadcast %140 : vector<16x1xf32> to vector<16x128xf32>
    %151 = arith.subf %146, %150 : vector<16x128xf32>
    %152 = vector.broadcast %149 : vector<16x1xf32> to vector<16x128xf32>
    %153 = arith.subf %151, %152 : vector<16x128xf32>
    %cst_61 = arith.constant 0.000000e+00 : f32
    %154 = vector.broadcast %cst_61 : f32 to vector<16x128xf32>
    %155 = arith.select %5, %153, %154 : vector<16x128xi1>, vector<16x128xf32>
    %156 = math.exp %155 : vector<16x128xf32>
    %cst_62 = arith.constant 9.99999974E-5 : f32
    %157 = vector.broadcast %cst_62 : f32 to vector<16x128xf32>
    %158 = arith.addf %156, %157 : vector<16x128xf32>
    %cst_63 = arith.constant 0.150755674 : f32
    %159 = vector.broadcast %cst_63 : f32 to vector<16x128xf32>
    %160 = arith.mulf %159, %158 : vector<16x128xf32>
    %cst_64 = arith.constant 0.000000e+00 : f32
    %161 = vector.broadcast %cst_64 : f32 to vector<16x128xf32>
    %162 = arith.select %5, %160, %161 : vector<16x128xi1>, vector<16x128xf32>
    %c2 = arith.constant 2 : index
    %c0_65 = arith.constant 0 : index
    %c0_66 = arith.constant 0 : index
    %163 = vector.load %arg2[%c2, %c0_65, %c0_66] : memref<4x16x128xf32, #tpu.memory_space<vmem>>, vector<1x16x128xf32>
    %164 = vector.shape_cast %163 : vector<1x16x128xf32> to vector<16x128xf32>
    %165 = vector.broadcast %145 : vector<16x1xf32> to vector<16x128xf32>
    %166 = arith.subf %164, %165 : vector<16x128xf32>
    %167 = vector.broadcast %2 : vector<1x1xf32> to vector<16x128xf32>
    %168 = arith.subf %166, %167 : vector<16x128xf32>
    %cst_67 = arith.constant 0.000000e+00 : f32
    %169 = vector.broadcast %cst_67 : f32 to vector<16x128xf32>
    %170 = arith.select %5, %168, %169 : vector<16x128xi1>, vector<16x128xf32>
    %171 = math.exp %170 : vector<16x128xf32>
    %cst_68 = arith.constant 9.99999974E-5 : f32
    %172 = vector.broadcast %cst_68 : f32 to vector<16x128xf32>
    %173 = arith.addf %171, %172 : vector<16x128xf32>
    %cst_69 = arith.constant 0.150755674 : f32
    %174 = vector.broadcast %cst_69 : f32 to vector<16x128xf32>
    %175 = arith.mulf %174, %173 : vector<16x128xf32>
    %cst_70 = arith.constant 0.000000e+00 : f32
    %176 = vector.broadcast %cst_70 : f32 to vector<16x128xf32>
    %177 = arith.select %5, %175, %176 : vector<16x128xi1>, vector<16x128xf32>
    %cst_71 = arith.constant dense<0.000000e+00> : vector<128xf32>
    %178 = vector.multi_reduction <add>, %177, %cst_71 [0] : vector<16x128xf32> to vector<128xf32>
    %179 = vector.shape_cast %178 : vector<128xf32> to vector<1x128xf32>
    %180 = vector.broadcast %179 : vector<1x128xf32> to vector<16x128xf32>
    %181 = arith.mulf %162, %180 : vector<16x128xf32>
    %cst_72 = arith.constant dense<0.000000e+00> : vector<16xf32>
    %182 = vector.multi_reduction <add>, %181, %cst_72 [1] : vector<16x128xf32> to vector<16xf32>
    %183 = vector.shape_cast %182 : vector<16xf32> to vector<16x1xf32>
    %cst_73 = arith.constant dense<0.000000e+00> : vector<128x16xf32>
    %184 = tpu.matmul %177, %135, %cst_73 {dimension_numbers = #tpu.dot_dimension_numbers<[0], [0], [1], [1], [0, 1, 1, 1], [], []>} : vector<16x128xf32>, vector<16x16xf32>, vector<128x16xf32> -> vector<128x16xf32>
    %cst_74 = arith.constant dense<0.000000e+00> : vector<16x16xf32>
    %185 = tpu.matmul %162, %184, %cst_74 {dimension_numbers = #tpu.dot_dimension_numbers<[1], [0], [0], [1], [0, 0, 1, 1], [], []>} : vector<16x128xf32>, vector<128x16xf32>, vector<16x16xf32> -> vector<16x16xf32>
    %186 = tpu.reciprocal %183 {approx = true} : vector<16x1xf32> -> vector<16x1xf32>
    %187 = vector.broadcast %186 : vector<16x1xf32> to vector<16x16xf32>
    %188 = arith.mulf %185, %187 : vector<16x16xf32>
    %c0_75 = arith.constant 0 : index
    %c32 = arith.constant 32 : index
    %189 = vector.load %arg5[%c0_75, %c32] : memref<16x64xf32, #tpu.memory_space<vmem>>, vector<16x16xf32>
    tpu.vector_store %arg5[%c0_75, %c32], %188 {strides = array<i32>} : memref<16x64xf32, #tpu.memory_space<vmem>>, vector<16x16xf32>,
    %190 = vector.extract_strided_slice %0 {offsets = [0, 48], sizes = [16, 16], strides = [1, 1]} : vector<16x192xf32> to vector<16x16xf32>
    %cst_76 = arith.constant 5.000000e-01 : f32
    %191 = vector.broadcast %cst_76 : f32 to vector<16x16xf32>
    %192 = arith.mulf %190, %191 : vector<16x16xf32>
    %193 = vector.extract_strided_slice %0 {offsets = [0, 112], sizes = [16, 16], strides = [1, 1]} : vector<16x192xf32> to vector<16x16xf32>
    %cst_77 = arith.constant 5.000000e-01 : f32
    %194 = vector.broadcast %cst_77 : f32 to vector<16x16xf32>
    %195 = arith.mulf %193, %194 : vector<16x16xf32>
    %196 = vector.extract_strided_slice %0 {offsets = [0, 176], sizes = [16, 16], strides = [1, 1]} : vector<16x192xf32> to vector<16x16xf32>
    %197 = arith.mulf %192, %192 : vector<16x16xf32>
    %cst_78 = arith.constant dense<0.000000e+00> : vector<16xf32>
    %198 = vector.multi_reduction <add>, %197, %cst_78 [1] : vector<16x16xf32> to vector<16xf32>
    %199 = vector.shape_cast %198 : vector<16xf32> to vector<16x1xf32>
    %cst_79 = arith.constant 5.000000e-01 : f32
    %200 = vector.broadcast %cst_79 : f32 to vector<16x1xf32>
    %201 = arith.mulf %200, %199 : vector<16x1xf32>
    %202 = arith.mulf %195, %195 : vector<16x16xf32>
    %cst_80 = arith.constant dense<0.000000e+00> : vector<16xf32>
    %203 = vector.multi_reduction <add>, %202, %cst_80 [1] : vector<16x16xf32> to vector<16xf32>
    %204 = vector.shape_cast %203 : vector<16xf32> to vector<16x1xf32>
    %cst_81 = arith.constant 5.000000e-01 : f32
    %205 = vector.broadcast %cst_81 : f32 to vector<16x1xf32>
    %206 = arith.mulf %205, %204 : vector<16x1xf32>
    %cst_82 = arith.constant dense<0.000000e+00> : vector<16x128xf32>
    %207 = tpu.matmul %192, %1, %cst_82 {dimension_numbers = #tpu.dot_dimension_numbers<[1], [0], [0], [1], [0, 0, 1, 1], [], []>} : vector<16x16xf32>, vector<16x128xf32>, vector<16x128xf32> -> vector<16x128xf32>
    %208 = arith.select %5, %207, %6 : vector<16x128xi1>, vector<16x128xf32>
    %cst_83 = arith.constant dense<0xFF800000> : vector<16xf32>
    %209 = vector.multi_reduction <maximumf>, %208, %cst_83 [1] : vector<16x128xf32> to vector<16xf32>
    %210 = vector.shape_cast %209 : vector<16xf32> to vector<16x1xf32>
    %211 = vector.broadcast %201 : vector<16x1xf32> to vector<16x128xf32>
    %212 = arith.subf %207, %211 : vector<16x128xf32>
    %213 = vector.broadcast %210 : vector<16x1xf32> to vector<16x128xf32>
    %214 = arith.subf %212, %213 : vector<16x128xf32>
    %cst_84 = arith.constant 0.000000e+00 : f32
    %215 = vector.broadcast %cst_84 : f32 to vector<16x128xf32>
    %216 = arith.select %5, %214, %215 : vector<16x128xi1>, vector<16x128xf32>
    %217 = math.exp %216 : vector<16x128xf32>
    %cst_85 = arith.constant 9.99999974E-5 : f32
    %218 = vector.broadcast %cst_85 : f32 to vector<16x128xf32>
    %219 = arith.addf %217, %218 : vector<16x128xf32>
    %cst_86 = arith.constant 0.150755674 : f32
    %220 = vector.broadcast %cst_86 : f32 to vector<16x128xf32>
    %221 = arith.mulf %220, %219 : vector<16x128xf32>
    %cst_87 = arith.constant 0.000000e+00 : f32
    %222 = vector.broadcast %cst_87 : f32 to vector<16x128xf32>
    %223 = arith.select %5, %221, %222 : vector<16x128xi1>, vector<16x128xf32>
    %c3 = arith.constant 3 : index
    %c0_88 = arith.constant 0 : index
    %c0_89 = arith.constant 0 : index
    %224 = vector.load %arg2[%c3, %c0_88, %c0_89] : memref<4x16x128xf32, #tpu.memory_space<vmem>>, vector<1x16x128xf32>
    %225 = vector.shape_cast %224 : vector<1x16x128xf32> to vector<16x128xf32>
    %226 = vector.broadcast %206 : vector<16x1xf32> to vector<16x128xf32>
    %227 = arith.subf %225, %226 : vector<16x128xf32>
    %228 = vector.broadcast %2 : vector<1x1xf32> to vector<16x128xf32>
    %229 = arith.subf %227, %228 : vector<16x128xf32>
    %cst_90 = arith.constant 0.000000e+00 : f32
    %230 = vector.broadcast %cst_90 : f32 to vector<16x128xf32>
    %231 = arith.select %5, %229, %230 : vector<16x128xi1>, vector<16x128xf32>
    %232 = math.exp %231 : vector<16x128xf32>
    %cst_91 = arith.constant 9.99999974E-5 : f32
    %233 = vector.broadcast %cst_91 : f32 to vector<16x128xf32>
    %234 = arith.addf %232, %233 : vector<16x128xf32>
    %cst_92 = arith.constant 0.150755674 : f32
    %235 = vector.broadcast %cst_92 : f32 to vector<16x128xf32>
    %236 = arith.mulf %235, %234 : vector<16x128xf32>
    %cst_93 = arith.constant 0.000000e+00 : f32
    %237 = vector.broadcast %cst_93 : f32 to vector<16x128xf32>
    %238 = arith.select %5, %236, %237 : vector<16x128xi1>, vector<16x128xf32>
    %cst_94 = arith.constant dense<0.000000e+00> : vector<128xf32>
    %239 = vector.multi_reduction <add>, %238, %cst_94 [0] : vector<16x128xf32> to vector<128xf32>
    %240 = vector.shape_cast %239 : vector<128xf32> to vector<1x128xf32>
    %241 = vector.broadcast %240 : vector<1x128xf32> to vector<16x128xf32>
    %242 = arith.mulf %223, %241 : vector<16x128xf32>
    %cst_95 = arith.constant dense<0.000000e+00> : vector<16xf32>
    %243 = vector.multi_reduction <add>, %242, %cst_95 [1] : vector<16x128xf32> to vector<16xf32>
    %244 = vector.shape_cast %243 : vector<16xf32> to vector<16x1xf32>
    %cst_96 = arith.constant dense<0.000000e+00> : vector<128x16xf32>
    %245 = tpu.matmul %238, %196, %cst_96 {dimension_numbers = #tpu.dot_dimension_numbers<[0], [0], [1], [1], [0, 1, 1, 1], [], []>} : vector<16x128xf32>, vector<16x16xf32>, vector<128x16xf32> -> vector<128x16xf32>
    %cst_97 = arith.constant dense<0.000000e+00> : vector<16x16xf32>
    %246 = tpu.matmul %223, %245, %cst_97 {dimension_numbers = #tpu.dot_dimension_numbers<[1], [0], [0], [1], [0, 0, 1, 1], [], []>} : vector<16x128xf32>, vector<128x16xf32>, vector<16x16xf32> -> vector<16x16xf32>
    %247 = tpu.reciprocal %244 {approx = true} : vector<16x1xf32> -> vector<16x1xf32>
    %248 = vector.broadcast %247 : vector<16x1xf32> to vector<16x16xf32>
    %249 = arith.mulf %246, %248 : vector<16x16xf32>
    %c0_98 = arith.constant 0 : index
    %c48 = arith.constant 48 : index
    %250 = vector.load %arg5[%c0_98, %c48] : memref<16x64xf32, #tpu.memory_space<vmem>>, vector<16x16xf32>
    tpu.vector_store %arg5[%c0_98, %c48], %249 {strides = array<i32>} : memref<16x64xf32, #tpu.memory_space<vmem>>, vector<16x16xf32>,
    return
  }
  func.func @transform_0(%arg0: i32) -> (i32, i32) {
    %c0_i32 = arith.constant 0 : i32
    %c0_i32_0 = arith.constant 0 : i32
    return %arg0, %c0_i32 : i32, i32
  }
  func.func @transform_1(%arg0: i32) -> (i32, i32, i32) {
    %c0_i32 = arith.constant 0 : i32
    %c0_i32_0 = arith.constant 0 : i32
    %c0_i32_1 = arith.constant 0 : i32
    return %c0_i32, %arg0, %c0_i32_0 : i32, i32, i32
  }
  func.func @transform_2(%arg0: i32) -> (i32, i32) {
    %c0_i32 = arith.constant 0 : i32
    %c0_i32_0 = arith.constant 0 : i32
    %c0_i32_1 = arith.constant 0 : i32
    return %c0_i32, %c0_i32_0 : i32, i32
  }
  func.func @transform_3(%arg0: i32) -> (i32, i32) {
    %c0_i32 = arith.constant 0 : i32
    %c0_i32_0 = arith.constant 0 : i32
    %c0_i32_1 = arith.constant 0 : i32
    return %c0_i32, %c0_i32_0 : i32, i32
  }
  func.func @transform_4(%arg0: i32) -> (i32, i32) {
    %c0_i32 = arith.constant 0 : i32
    %c0_i32_0 = arith.constant 0 : i32
    return %arg0, %c0_i32 : i32, i32
  }
}

module attributes {stable_mosaic.version = 11 : i64} {
  func.func @kernel(%arg0: i32, %arg1: i32, %arg2: memref<32x64xf32, #tpu.memory_space<vmem>>, %arg3: memref<64x128xf32, #tpu.memory_space<vmem>>, %arg4: memref<1x128xf32, #tpu.memory_space<vmem>>, %arg5: memref<32x128xf32, #tpu.memory_space<vmem>>, %arg6: memref<32x128xf32, #tpu.memory_space<vmem>>) attributes {dimension_semantics = [#tpu.dimension_semantics<parallel>, #tpu.dimension_semantics<parallel>], iteration_bounds = array<i64: 1, 1>, scalar_prefetch = 0 : i64, scratch_operands = 0 : i64, tpu.core_type = #tpu.core_type<tc>, window_params = [{transform_indices = @transform_0, window_bounds = array<i64: 32, 64>}, {transform_indices = @transform_1, window_bounds = array<i64: 64, 128>}, {transform_indices = @transform_2, window_bounds = array<i64: 1, 128>}, {transform_indices = @transform_3, window_bounds = array<i64: 32, 128>}, {transform_indices = @transform_4, window_bounds = array<i64: 32, 128>}]} {
    %c0 = arith.constant 0 : index
    %c0_0 = arith.constant 0 : index
    %0 = vector.load %arg2[%c0, %c0_0] : memref<32x64xf32, #tpu.memory_space<vmem>>, vector<32x64xf32>
    %c0_1 = arith.constant 0 : index
    %c0_2 = arith.constant 0 : index
    %1 = vector.load %arg3[%c0_1, %c0_2] : memref<64x128xf32, #tpu.memory_space<vmem>>, vector<64x128xf32>
    %cst = arith.constant dense<0.000000e+00> : vector<32x128xf32>
    %2 = tpu.matmul %0, %1, %cst {dimension_numbers = #tpu.dot_dimension_numbers<[1], [0], [0], [1], [0, 0, 1, 1], [], []>} : vector<32x64xf32>, vector<64x128xf32>, vector<32x128xf32> -> vector<32x128xf32>
    %c0_3 = arith.constant 0 : index
    %c0_4 = arith.constant 0 : index
    %3 = vector.load %arg4[%c0_3, %c0_4] : memref<1x128xf32, #tpu.memory_space<vmem>>, vector<1x128xf32>
    %4 = vector.broadcast %3 : vector<1x128xf32> to vector<32x128xf32>
    %5 = arith.addf %2, %4 : vector<32x128xf32>
    %c0_5 = arith.constant 0 : index
    %c0_6 = arith.constant 0 : index
    %6 = vector.load %arg5[%c0_5, %c0_6] : memref<32x128xf32, #tpu.memory_space<vmem>>, vector<32x128xf32>
    %7 = arith.addf %5, %6 : vector<32x128xf32>
    %c0_7 = arith.constant 0 : index
    %c0_8 = arith.constant 0 : index
    %8 = vector.load %arg6[%c0_7, %c0_8] : memref<32x128xf32, #tpu.memory_space<vmem>>, vector<32x128xf32>
    tpu.vector_store %arg6[%c0_7, %c0_8], %7 {strides = array<i32>} : memref<32x128xf32, #tpu.memory_space<vmem>>, vector<32x128xf32>,
    return
  }
  func.func @transform_0(%arg0: i32, %arg1: i32) -> (i32, i32) {
    %c0_i32 = arith.constant 0 : i32
    %c0_i32_0 = arith.constant 0 : i32
    return %arg0, %c0_i32 : i32, i32
  }
  func.func @transform_1(%arg0: i32, %arg1: i32) -> (i32, i32) {
    %c0_i32 = arith.constant 0 : i32
    %c0_i32_0 = arith.constant 0 : i32
    return %c0_i32, %arg1 : i32, i32
  }
  func.func @transform_2(%arg0: i32, %arg1: i32) -> (i32, i32) {
    %c0_i32 = arith.constant 0 : i32
    %c0_i32_0 = arith.constant 0 : i32
    return %c0_i32, %arg1 : i32, i32
  }
  func.func @transform_3(%arg0: i32, %arg1: i32) -> (i32, i32) {
    %c0_i32 = arith.constant 0 : i32
    return %arg0, %arg1 : i32, i32
  }
  func.func @transform_4(%arg0: i32, %arg1: i32) -> (i32, i32) {
    %c0_i32 = arith.constant 0 : i32
    return %arg0, %arg1 : i32, i32
  }
}

module attributes {stable_mosaic.version = 11 : i64} {
  func.func @kernel(%arg0: i32, %arg1: i32, %arg2: memref<32x64xf32, #tpu.memory_space<vmem>>, %arg3: memref<64x256xf32, #tpu.memory_space<vmem>>, %arg4: memref<1x64xf32, #tpu.memory_space<vmem>>, %arg5: memref<1x64xf32, #tpu.memory_space<vmem>>, %arg6: memref<1x256xf32, #tpu.memory_space<vmem>>, %arg7: memref<32x256xf32, #tpu.memory_space<vmem>>) attributes {dimension_semantics = [#tpu.dimension_semantics<parallel>, #tpu.dimension_semantics<parallel>], iteration_bounds = array<i64: 1, 1>, scalar_prefetch = 0 : i64, scratch_operands = 0 : i64, tpu.core_type = #tpu.core_type<tc>, window_params = [{transform_indices = @transform_0, window_bounds = array<i64: 32, 64>}, {transform_indices = @transform_1, window_bounds = array<i64: 64, 256>}, {pipeline_mode = #tpu.pipeline_mode<synchronous>, transform_indices = @transform_2, window_bounds = array<i64: 1, 64>}, {pipeline_mode = #tpu.pipeline_mode<synchronous>, transform_indices = @transform_3, window_bounds = array<i64: 1, 64>}, {transform_indices = @transform_4, window_bounds = array<i64: 1, 256>}, {transform_indices = @transform_5, window_bounds = array<i64: 32, 256>}]} {
    %c0 = arith.constant 0 : index
    %c0_0 = arith.constant 0 : index
    %0 = vector.load %arg2[%c0, %c0_0] : memref<32x64xf32, #tpu.memory_space<vmem>>, vector<32x64xf32>
    %cst = arith.constant dense<0.000000e+00> : vector<32xf32>
    %1 = vector.multi_reduction <add>, %0, %cst [1] : vector<32x64xf32> to vector<32xf32>
    %2 = vector.shape_cast %1 : vector<32xf32> to vector<32x1xf32>
    %cst_1 = arith.constant 6.400000e+01 : f32
    %3 = vector.broadcast %cst_1 : f32 to vector<32x1xf32>
    %4 = arith.divf %2, %3 : vector<32x1xf32>
    %5 = vector.broadcast %4 : vector<32x1xf32> to vector<32x64xf32>
    %6 = arith.subf %0, %5 : vector<32x64xf32>
    %7 = arith.mulf %6, %6 : vector<32x64xf32>
    %cst_2 = arith.constant dense<0.000000e+00> : vector<32xf32>
    %8 = vector.multi_reduction <add>, %7, %cst_2 [1] : vector<32x64xf32> to vector<32xf32>
    %9 = vector.shape_cast %8 : vector<32xf32> to vector<32x1xf32>
    %cst_3 = arith.constant 6.400000e+01 : f32
    %10 = vector.broadcast %cst_3 : f32 to vector<32x1xf32>
    %11 = arith.divf %9, %10 : vector<32x1xf32>
    %12 = vector.broadcast %4 : vector<32x1xf32> to vector<32x64xf32>
    %13 = arith.subf %0, %12 : vector<32x64xf32>
    %cst_4 = arith.constant 9.99999974E-6 : f32
    %14 = vector.broadcast %cst_4 : f32 to vector<32x1xf32>
    %15 = arith.addf %11, %14 : vector<32x1xf32>
    %16 = math.rsqrt %15 : vector<32x1xf32>
    %17 = vector.broadcast %16 : vector<32x1xf32> to vector<32x64xf32>
    %18 = arith.mulf %13, %17 : vector<32x64xf32>
    %c0_5 = arith.constant 0 : index
    %c0_6 = arith.constant 0 : index
    %19 = vector.load %arg4[%c0_5, %c0_6] : memref<1x64xf32, #tpu.memory_space<vmem>>, vector<1x64xf32>
    %20 = vector.broadcast %19 : vector<1x64xf32> to vector<32x64xf32>
    %21 = arith.mulf %18, %20 : vector<32x64xf32>
    %c0_7 = arith.constant 0 : index
    %c0_8 = arith.constant 0 : index
    %22 = vector.load %arg5[%c0_7, %c0_8] : memref<1x64xf32, #tpu.memory_space<vmem>>, vector<1x64xf32>
    %23 = vector.broadcast %22 : vector<1x64xf32> to vector<32x64xf32>
    %24 = arith.addf %21, %23 : vector<32x64xf32>
    %c0_9 = arith.constant 0 : index
    %c0_10 = arith.constant 0 : index
    %25 = vector.load %arg3[%c0_9, %c0_10] : memref<64x256xf32, #tpu.memory_space<vmem>>, vector<64x256xf32>
    %cst_11 = arith.constant dense<0.000000e+00> : vector<32x256xf32>
    %26 = tpu.matmul %24, %25, %cst_11 {dimension_numbers = #tpu.dot_dimension_numbers<[1], [0], [0], [1], [0, 0, 1, 1], [], []>} : vector<32x64xf32>, vector<64x256xf32>, vector<32x256xf32> -> vector<32x256xf32>
    %c0_12 = arith.constant 0 : index
    %c0_13 = arith.constant 0 : index
    %27 = vector.load %arg6[%c0_12, %c0_13] : memref<1x256xf32, #tpu.memory_space<vmem>>, vector<1x256xf32>
    %28 = vector.broadcast %27 : vector<1x256xf32> to vector<32x256xf32>
    %29 = arith.addf %26, %28 : vector<32x256xf32>
    %c0_14 = arith.constant 0 : index
    %c0_15 = arith.constant 0 : index
    %30 = vector.load %arg7[%c0_14, %c0_15] : memref<32x256xf32, #tpu.memory_space<vmem>>, vector<32x256xf32>
    tpu.vector_store %arg7[%c0_14, %c0_15], %29 {strides = array<i32>} : memref<32x256xf32, #tpu.memory_space<vmem>>, vector<32x256xf32>,
    return
  }
  func.func @transform_0(%arg0: i32, %arg1: i32) -> (i32, i32) {
    %c0_i32 = arith.constant 0 : i32
    %c0_i32_0 = arith.constant 0 : i32
    return %arg0, %c0_i32 : i32, i32
  }
  func.func @transform_1(%arg0: i32, %arg1: i32) -> (i32, i32) {
    %c0_i32 = arith.constant 0 : i32
    %c0_i32_0 = arith.constant 0 : i32
    return %c0_i32, %arg1 : i32, i32
  }
  func.func @transform_2(%arg0: i32, %arg1: i32) -> (i32, i32) {
    %c0_i32 = arith.constant 0 : i32
    %c0_i32_0 = arith.constant 0 : i32
    %c0_i32_1 = arith.constant 0 : i32
    return %c0_i32, %c0_i32_0 : i32, i32
  }
  func.func @transform_3(%arg0: i32, %arg1: i32) -> (i32, i32) {
    %c0_i32 = arith.constant 0 : i32
    %c0_i32_0 = arith.constant 0 : i32
    %c0_i32_1 = arith.constant 0 : i32
    return %c0_i32, %c0_i32_0 : i32, i32
  }
  func.func @transform_4(%arg0: i32, %arg1: i32) -> (i32, i32) {
    %c0_i32 = arith.constant 0 : i32
    %c0_i32_0 = arith.constant 0 : i32
    return %c0_i32, %arg1 : i32, i32
  }
  func.func @transform_5(%arg0: i32, %arg1: i32) -> (i32, i32) {
    %c0_i32 = arith.constant 0 : i32
    return %arg0, %arg1 : i32, i32
  }
}

module attributes {stable_mosaic.version = 11 : i64} {
  func.func @kernel(%arg0: i32, %arg1: i32, %arg2: memref<32x256xf32, #tpu.memory_space<vmem>>, %arg3: memref<256x128xf32, #tpu.memory_space<vmem>>, %arg4: memref<1x128xf32, #tpu.memory_space<vmem>>, %arg5: memref<32x128xf32, #tpu.memory_space<vmem>>, %arg6: memref<32x128xf32, #tpu.memory_space<vmem>>) attributes {dimension_semantics = [#tpu.dimension_semantics<parallel>, #tpu.dimension_semantics<parallel>], iteration_bounds = array<i64: 1, 1>, scalar_prefetch = 0 : i64, scratch_operands = 0 : i64, tpu.core_type = #tpu.core_type<tc>, window_params = [{transform_indices = @transform_0, window_bounds = array<i64: 32, 256>}, {transform_indices = @transform_1, window_bounds = array<i64: 256, 128>}, {transform_indices = @transform_2, window_bounds = array<i64: 1, 128>}, {transform_indices = @transform_3, window_bounds = array<i64: 32, 128>}, {transform_indices = @transform_4, window_bounds = array<i64: 32, 128>}]} {
    %c0 = arith.constant 0 : index
    %c0_0 = arith.constant 0 : index
    %0 = vector.load %arg2[%c0, %c0_0] : memref<32x256xf32, #tpu.memory_space<vmem>>, vector<32x256xf32>
    %c0_1 = arith.constant 0 : index
    %c0_2 = arith.constant 0 : index
    %1 = vector.load %arg3[%c0_1, %c0_2] : memref<256x128xf32, #tpu.memory_space<vmem>>, vector<256x128xf32>
    %cst = arith.constant dense<0.000000e+00> : vector<32x128xf32>
    %2 = tpu.matmul %0, %1, %cst {dimension_numbers = #tpu.dot_dimension_numbers<[1], [0], [0], [1], [0, 0, 1, 1], [], []>} : vector<32x256xf32>, vector<256x128xf32>, vector<32x128xf32> -> vector<32x128xf32>
    %c0_3 = arith.constant 0 : index
    %c0_4 = arith.constant 0 : index
    %3 = vector.load %arg4[%c0_3, %c0_4] : memref<1x128xf32, #tpu.memory_space<vmem>>, vector<1x128xf32>
    %4 = vector.broadcast %3 : vector<1x128xf32> to vector<32x128xf32>
    %5 = arith.addf %2, %4 : vector<32x128xf32>
    %c0_5 = arith.constant 0 : index
    %c0_6 = arith.constant 0 : index
    %6 = vector.load %arg5[%c0_5, %c0_6] : memref<32x128xf32, #tpu.memory_space<vmem>>, vector<32x128xf32>
    %7 = arith.addf %5, %6 : vector<32x128xf32>
    %c0_7 = arith.constant 0 : index
    %c0_8 = arith.constant 0 : index
    %8 = vector.load %arg6[%c0_7, %c0_8] : memref<32x128xf32, #tpu.memory_space<vmem>>, vector<32x128xf32>
    tpu.vector_store %arg6[%c0_7, %c0_8], %7 {strides = array<i32>} : memref<32x128xf32, #tpu.memory_space<vmem>>, vector<32x128xf32>,
    return
  }
  func.func @transform_0(%arg0: i32, %arg1: i32) -> (i32, i32) {
    %c0_i32 = arith.constant 0 : i32
    %c0_i32_0 = arith.constant 0 : i32
    return %arg0, %c0_i32 : i32, i32
  }
  func.func @transform_1(%arg0: i32, %arg1: i32) -> (i32, i32) {
    %c0_i32 = arith.constant 0 : i32
    %c0_i32_0 = arith.constant 0 : i32
    return %c0_i32, %arg1 : i32, i32
  }
  func.func @transform_2(%arg0: i32, %arg1: i32) -> (i32, i32) {
    %c0_i32 = arith.constant 0 : i32
    %c0_i32_0 = arith.constant 0 : i32
    return %c0_i32, %arg1 : i32, i32
  }
  func.func @transform_3(%arg0: i32, %arg1: i32) -> (i32, i32) {
    %c0_i32 = arith.constant 0 : i32
    return %arg0, %arg1 : i32, i32
  }
  func.func @transform_4(%arg0: i32, %arg1: i32) -> (i32, i32) {
    %c0_i32 = arith.constant 0 : i32
    return %arg0, %arg1 : i32, i32
  }
}

module attributes {stable_mosaic.version = 11 : i64} {
  func.func @kernel(%arg0: i32, %arg1: i32, %arg2: memref<32x64xf32, #tpu.memory_space<vmem>>, %arg3: memref<64x256xf32, #tpu.memory_space<vmem>>, %arg4: memref<1x64xf32, #tpu.memory_space<vmem>>, %arg5: memref<1x64xf32, #tpu.memory_space<vmem>>, %arg6: memref<1x256xf32, #tpu.memory_space<vmem>>, %arg7: memref<32x256xf32, #tpu.memory_space<vmem>>) attributes {dimension_semantics = [#tpu.dimension_semantics<parallel>, #tpu.dimension_semantics<parallel>], iteration_bounds = array<i64: 1, 1>, scalar_prefetch = 0 : i64, scratch_operands = 0 : i64, tpu.core_type = #tpu.core_type<tc>, window_params = [{transform_indices = @transform_0, window_bounds = array<i64: 32, 64>}, {transform_indices = @transform_1, window_bounds = array<i64: 64, 256>}, {pipeline_mode = #tpu.pipeline_mode<synchronous>, transform_indices = @transform_2, window_bounds = array<i64: 1, 64>}, {pipeline_mode = #tpu.pipeline_mode<synchronous>, transform_indices = @transform_3, window_bounds = array<i64: 1, 64>}, {transform_indices = @transform_4, window_bounds = array<i64: 1, 256>}, {transform_indices = @transform_5, window_bounds = array<i64: 32, 256>}]} {
    %c0 = arith.constant 0 : index
    %c0_0 = arith.constant 0 : index
    %0 = vector.load %arg2[%c0, %c0_0] : memref<32x64xf32, #tpu.memory_space<vmem>>, vector<32x64xf32>
    %cst = arith.constant dense<0.000000e+00> : vector<32xf32>
    %1 = vector.multi_reduction <add>, %0, %cst [1] : vector<32x64xf32> to vector<32xf32>
    %2 = vector.shape_cast %1 : vector<32xf32> to vector<32x1xf32>
    %cst_1 = arith.constant 6.400000e+01 : f32
    %3 = vector.broadcast %cst_1 : f32 to vector<32x1xf32>
    %4 = arith.divf %2, %3 : vector<32x1xf32>
    %5 = vector.broadcast %4 : vector<32x1xf32> to vector<32x64xf32>
    %6 = arith.subf %0, %5 : vector<32x64xf32>
    %7 = arith.mulf %6, %6 : vector<32x64xf32>
    %cst_2 = arith.constant dense<0.000000e+00> : vector<32xf32>
    %8 = vector.multi_reduction <add>, %7, %cst_2 [1] : vector<32x64xf32> to vector<32xf32>
    %9 = vector.shape_cast %8 : vector<32xf32> to vector<32x1xf32>
    %cst_3 = arith.constant 6.400000e+01 : f32
    %10 = vector.broadcast %cst_3 : f32 to vector<32x1xf32>
    %11 = arith.divf %9, %10 : vector<32x1xf32>
    %12 = vector.broadcast %4 : vector<32x1xf32> to vector<32x64xf32>
    %13 = arith.subf %0, %12 : vector<32x64xf32>
    %cst_4 = arith.constant 9.99999974E-6 : f32
    %14 = vector.broadcast %cst_4 : f32 to vector<32x1xf32>
    %15 = arith.addf %11, %14 : vector<32x1xf32>
    %16 = math.rsqrt %15 : vector<32x1xf32>
    %17 = vector.broadcast %16 : vector<32x1xf32> to vector<32x64xf32>
    %18 = arith.mulf %13, %17 : vector<32x64xf32>
    %c0_5 = arith.constant 0 : index
    %c0_6 = arith.constant 0 : index
    %19 = vector.load %arg4[%c0_5, %c0_6] : memref<1x64xf32, #tpu.memory_space<vmem>>, vector<1x64xf32>
    %20 = vector.broadcast %19 : vector<1x64xf32> to vector<32x64xf32>
    %21 = arith.mulf %18, %20 : vector<32x64xf32>
    %c0_7 = arith.constant 0 : index
    %c0_8 = arith.constant 0 : index
    %22 = vector.load %arg5[%c0_7, %c0_8] : memref<1x64xf32, #tpu.memory_space<vmem>>, vector<1x64xf32>
    %23 = vector.broadcast %22 : vector<1x64xf32> to vector<32x64xf32>
    %24 = arith.addf %21, %23 : vector<32x64xf32>
    %c0_9 = arith.constant 0 : index
    %c0_10 = arith.constant 0 : index
    %25 = vector.load %arg3[%c0_9, %c0_10] : memref<64x256xf32, #tpu.memory_space<vmem>>, vector<64x256xf32>
    %cst_11 = arith.constant dense<0.000000e+00> : vector<32x256xf32>
    %26 = tpu.matmul %24, %25, %cst_11 {dimension_numbers = #tpu.dot_dimension_numbers<[1], [0], [0], [1], [0, 0, 1, 1], [], []>} : vector<32x64xf32>, vector<64x256xf32>, vector<32x256xf32> -> vector<32x256xf32>
    %c0_12 = arith.constant 0 : index
    %c0_13 = arith.constant 0 : index
    %27 = vector.load %arg6[%c0_12, %c0_13] : memref<1x256xf32, #tpu.memory_space<vmem>>, vector<1x256xf32>
    %28 = vector.broadcast %27 : vector<1x256xf32> to vector<32x256xf32>
    %29 = arith.addf %26, %28 : vector<32x256xf32>
    %cst_14 = arith.constant 5.000000e-01 : f32
    %30 = vector.broadcast %cst_14 : f32 to vector<32x256xf32>
    %31 = arith.mulf %30, %29 : vector<32x256xf32>
    %cst_15 = arith.constant 4.471500e-02 : f32
    %32 = vector.broadcast %cst_15 : f32 to vector<32x256xf32>
    %33 = arith.mulf %32, %29 : vector<32x256xf32>
    %34 = arith.mulf %33, %29 : vector<32x256xf32>
    %35 = arith.mulf %34, %29 : vector<32x256xf32>
    %36 = arith.addf %29, %35 : vector<32x256xf32>
    %cst_16 = arith.constant 0.797884583 : f32
    %37 = vector.broadcast %cst_16 : f32 to vector<32x256xf32>
    %38 = arith.mulf %37, %36 : vector<32x256xf32>
    %39 = math.tanh %38 : vector<32x256xf32>
    %cst_17 = arith.constant 1.000000e+00 : f32
    %40 = vector.broadcast %cst_17 : f32 to vector<32x256xf32>
    %41 = arith.addf %40, %39 : vector<32x256xf32>
    %42 = arith.mulf %31, %41 : vector<32x256xf32>
    %c0_18 = arith.constant 0 : index
    %c0_19 = arith.constant 0 : index
    %43 = vector.load %arg7[%c0_18, %c0_19] : memref<32x256xf32, #tpu.memory_space<vmem>>, vector<32x256xf32>
    tpu.vector_store %arg7[%c0_18, %c0_19], %42 {strides = array<i32>} : memref<32x256xf32, #tpu.memory_space<vmem>>, vector<32x256xf32>,
    return
  }
  func.func @transform_0(%arg0: i32, %arg1: i32) -> (i32, i32) {
    %c0_i32 = arith.constant 0 : i32
    %c0_i32_0 = arith.constant 0 : i32
    return %arg0, %c0_i32 : i32, i32
  }
  func.func @transform_1(%arg0: i32, %arg1: i32) -> (i32, i32) {
    %c0_i32 = arith.constant 0 : i32
    %c0_i32_0 = arith.constant 0 : i32
    return %c0_i32, %arg1 : i32, i32
  }
  func.func @transform_2(%arg0: i32, %arg1: i32) -> (i32, i32) {
    %c0_i32 = arith.constant 0 : i32
    %c0_i32_0 = arith.constant 0 : i32
    %c0_i32_1 = arith.constant 0 : i32
    return %c0_i32, %c0_i32_0 : i32, i32
  }
  func.func @transform_3(%arg0: i32, %arg1: i32) -> (i32, i32) {
    %c0_i32 = arith.constant 0 : i32
    %c0_i32_0 = arith.constant 0 : i32
    %c0_i32_1 = arith.constant 0 : i32
    return %c0_i32, %c0_i32_0 : i32, i32
  }
  func.func @transform_4(%arg0: i32, %arg1: i32) -> (i32, i32) {
    %c0_i32 = arith.constant 0 : i32
    %c0_i32_0 = arith.constant 0 : i32
    return %c0_i32, %arg1 : i32, i32
  }
  func.func @transform_5(%arg0: i32, %arg1: i32) -> (i32, i32) {
    %c0_i32 = arith.constant 0 : i32
    return %arg0, %arg1 : i32, i32
  }
}

</mosaic_0001>

<bundles_post_ra>
// kernel: performer_lm_forward.14
= control target key start
LH: loop header
LB: loop body
LE: loop exit
PB: predicated region body
PF: predicated region fallthrough
CT: control target
= control target key end

     0   :  { %s261_s13 = smov 32   ;;  %s262_s14 = smov 64   ;;  %vm33_vm0 = vcmask 130048   ;;  %s370_s0 = inlined_call_operand.vmem [shape: f32[32,192], index: 0, kind: input, shape index: {}]   ;;  %s371_s1 = inlined_call_operand.vmem [shape: f32[16,128], index: 1, kind: input, shape index: {}]   ;;  %s372_s2 = inlined_call_operand.vmem [shape: f32[4,32,128], index: 2, kind: output, shape index: {}]  }
   0x1   :  { %v11_v0 = vld [vmem:[%s370_s0] sm:$0xff]  ;;  %v12_v1 = vld [vmem:[%s370_s0 + $0x10] sm:$0xff]  ;;  %s263_s15 = smov 16   ;;  %s264_s16 = smov 48   ;;  %v16_v4 = vld [vmem:[%s371_s1 + $0x8] sm:$0xff] }
   0x2   :  { %v17_v2 = vmul.f32 0.5, %v11_v0  ;;  %v18_v3 = vmul.f32 0.5, %v12_v1  ;;  %v15_v5 = vld [vmem:[%s371_s1] sm:$0xff]  ;;  %155 = vmatpush.msra.mxu2 %v16_v4  ;;  %56 = vmatpush.msra.mxu0 %v16_v4  ;;  %v14_v8 = vld [vmem:[%s370_s0 + $0x30] sm:$0xff] }
   0x3   :  { %205 = vmatpush.msra.mxu3 %v16_v4  ;;  %105 = vmatpush.msra.mxu1 %v16_v4  ;;  %v13_v6 = vld [vmem:[%s370_s0 + $0x20] sm:$0xff]  ;;  %v20_v9 = vmul.f32 0.5, %v14_v8 }
   0x4   :  { %125 = vrot.lane.b32.xlu0 %v17_v2, %s261_s13  ;;  %25 = vrot.lane.b32.xlu1 %v17_v2, %s262_s14  ;;  %v19_v7 = vmul.f32 0.5, %v13_v6 }
   0x5   :  { %127 = vrot.lane.b32.xlu2 %v18_v3, %s261_s13  ;;  %156 = vmatpush.msra.mxu2 %v15_v5 }
   0x6   :  { %57 = vmatpush.msra.mxu0 %v15_v5  ;;  %206 = vmatpush.msra.mxu3 %v15_v5 }
   0x7   :  { %106 = vmatpush.msra.mxu1 %v15_v5 }
   0xc   :  { %175 = vrot.lane.b32.xlu0 %v17_v2, %s263_s15  ;;  %75 = vrot.lane.b32.xlu1 %v17_v2, %s264_s16 }
   0xd   :  { %177 = vrot.lane.b32.xlu2 %v18_v3, %s263_s15 }
  0x14   :  { %27 = vrot.lane.b32.xlu0 %v18_v3, %s262_s14  ;;  %77 = vrot.lane.b32.xlu1 %v18_v3, %s264_s16 }
  0x15   :  { %129 = vrot.lane.b32.xlu2 %v19_v7, %s261_s13 }
  0x1c   :  { %179 = vrot.lane.b32.xlu0 %v19_v7, %s263_s15  ;;  %29 = vrot.lane.b32.xlu1 %v19_v7, %s262_s14 }
  0x1d   :  { %79 = vrot.lane.b32.xlu2 %v19_v7, %s264_s16 }
  0x24   :  { %131 = vrot.lane.b32.xlu0 %v20_v9, %s261_s13  ;;  %181 = vrot.lane.b32.xlu1 %v20_v9, %s263_s15 }
  0x25   :  { %31 = vrot.lane.b32.xlu2 %v20_v9, %s262_s14 }
  0x2c   :  { %81 = vrot.lane.b32.xlu0 %v20_v9, %s264_s16 }
  0x5f   :  { %v128_v10 = vpop.permute.xlu2 %127 }
  0x67   :  { %v178_v13 = vpop.permute.xlu2 %177 }
  0x6f   :  { %v130_v16 = vpop.permute.xlu2 %129 }
  0x76   :  { %v126_v11 = vpop.permute.xlu0 %125  ;;  %v26_v12 = vpop.permute.xlu1 %25 }
  0x77   :  { %241 = vmatmul.msk.f32.vlgmr.msra.gmra.mxu2 %vm33_vm0, %v126_v11  ;;  %229 = vmatmul.msk.f32.vlgmr.msra.gmra.mxu0 %vm33_vm0, %v26_v12  ;;  %v80_v19 = vpop.permute.xlu2 %79 }
  0x7e   :  { %v176_v14 = vpop.permute.xlu0 %175  ;;  %v76_v15 = vpop.permute.xlu1 %75 }
  0x7f   :  { %242 = vmatmul.msk.f32.gmra.mxu2 %vm33_vm0, %v128_v10  ;;  %249 = vmatmul.msk.f32.vlgmr.msra.gmra.mxu3 %vm33_vm0, %v176_v14  ;;  %v32_v22 = vpop.permute.xlu2 %31 }
  0x80   :  { %233 = vmatmul.msk.f32.vlgmr.msra.gmra.mxu1 %vm33_vm0, %v76_v15 }
  0x86   :  { %v28_v17 = vpop.permute.xlu0 %27  ;;  %v78_v18 = vpop.permute.xlu1 %77 }
  0x87   :  { %230 = vmatmul.msk.f32.gmra.mxu0 %vm33_vm0, %v28_v17  ;;  %250 = vmatmul.msk.f32.gmra.mxu3 %vm33_vm0, %v178_v13 }
  0x88   :  { %234 = vmatmul.msk.f32.gmra.mxu1 %vm33_vm0, %v78_v18  ;;  %243 = vmatmul.msk.f32.gmra.mxu2 %vm33_vm0, %v130_v16 }
  0x8e   :  { %v180_v20 = vpop.permute.xlu0 %179  ;;  %v30_v21 = vpop.permute.xlu1 %29 }
  0x8f   :  { %251 = vmatmul.msk.f32.gmra.mxu3 %vm33_vm0, %v180_v20  ;;  %231 = vmatmul.msk.f32.gmra.mxu0 %vm33_vm0, %v30_v21 }
  0x90   :  { %235 = vmatmul.msk.f32.gmra.mxu1 %vm33_vm0, %v80_v19 }
  0x96   :  { %v132_v23 = vpop.permute.xlu0 %131  ;;  %v182_v24 = vpop.permute.xlu1 %181 }
  0x97   :  { %244 = vmatmul.msk.f32.gmra.mxu2 %vm33_vm0, %v132_v23  ;;  %252 = vmatmul.msk.f32.gmra.mxu3 %vm33_vm0, %v182_v24 }
  0x98   :  { %232 = vmatmul.msk.f32.gmra.mxu0 %vm33_vm0, %v32_v22 }
  0x9e   :  { %v82_v25 = vpop.permute.xlu0 %81 }
  0x9f   :  { %236 = vmatmul.msk.f32.gmra.mxu1 %vm33_vm0, %v82_v25 }
  0xf4   :  { %v59_v26 = vpop.f32.mrf.mxu0 }
  0xf5   :  { %71 = vst [vmem:[%s372_s2] sm:$0xff] %v59_v26 }
  0xfa   :  { %v158_v27 = vpop.f32.mrf.mxu2 }
  0xfb   :  { %245 = vst [vmem:[%s372_s2 + $0x40] sm:$0xff] %v158_v27 }
  0xfd   :  { %v108_v28 = vpop.f32.mrf.mxu1 }
  0xfe   :  { %237 = vst [vmem:[%s372_s2 + $0x20] sm:$0xff] %v108_v28 }
 0x102   :  { %v161_v29 = vpop.f32.mrf.mxu2  ;;  %v208_v30 = vpop.f32.mrf.mxu3 }
 0x103   :  { %246 = vst [vmem:[%s372_s2 + $0x48] sm:$0xff] %v161_v29 }
 0x104   :  { %253 = vst [vmem:[%s372_s2 + $0x60] sm:$0xff] %v208_v30  ;;  %v62_v31 = vpop.f32.mrf.mxu0 }
 0x105   :  { %72 = vst [vmem:[%s372_s2 + $0x8] sm:$0xff] %v62_v31  ;;  %v111_v32 = vpop.f32.mrf.mxu1 }
 0x106   :  { %238 = vst [vmem:[%s372_s2 + $0x28] sm:$0xff] %v111_v32 }
 0x10a   :  { %v211_v33 = vpop.f32.mrf.mxu3 }
 0x10b   :  { %254 = vst [vmem:[%s372_s2 + $0x68] sm:$0xff] %v211_v33  ;;  %v164_v34 = vpop.f32.mrf.mxu2 }
 0x10c   :  { %v65_v35 = vpop.f32.mrf.mxu0  ;;  %247 = vst [vmem:[%s372_s2 + $0x50] sm:$0xff] %v164_v34 }
 0x10d   :  { %73 = vst [vmem:[%s372_s2 + $0x10] sm:$0xff] %v65_v35  ;;  %v114_v36 = vpop.f32.mrf.mxu1 }
 0x10e   :  { %239 = vst [vmem:[%s372_s2 + $0x30] sm:$0xff] %v114_v36 }
 0x112   :  { %v214_v37 = vpop.f32.mrf.mxu3 }
 0x113   :  { %255 = vst [vmem:[%s372_s2 + $0x70] sm:$0xff] %v214_v37 }
 0x115   :  { %v68_v38 = vpop.f32.mrf.mxu0 }
 0x116   :  { %74 = vst [vmem:[%s372_s2 + $0x18] sm:$0xff] %v68_v38 }
 0x11a   :  { %v167_v39 = vpop.f32.mrf.mxu2  ;;  %v217_v40 = vpop.f32.mrf.mxu3 }
 0x11b   :  { %248 = vst [vmem:[%s372_s2 + $0x58] sm:$0xff] %v167_v39 }
 0x11c   :  { %v117_v41 = vpop.f32.mrf.mxu1  ;;  %256 = vst [vmem:[%s372_s2 + $0x78] sm:$0xff] %v217_v40 }
 0x11d   :  { %240 = vst [vmem:[%s372_s2 + $0x38] sm:$0xff] %v117_v41 }

// kernel: performer_lm_forward.13
= control target key start
LH: loop header
LB: loop body
LE: loop exit
PB: predicated region body
PF: predicated region fallthrough
CT: control target
= control target key end

     0   :  { %vm21_vm0 = vcmask 523264   ;;  %v268_v8 = vmov 64.0   ;;  %s430_s0 = inlined_call_operand.vmem [shape: f32[32,64], index: 0, kind: input, shape index: {}]   ;;  %s431_s2 = inlined_call_operand.vmem [shape: f32[1,64], index: 2, kind: input, shape index: {}]   ;;  %s432_s3 = inlined_call_operand.vmem [shape: f32[1,64], index: 3, kind: input, shape index: {}]   ;;  %s433_s1 = inlined_call_operand.vmem [shape: f32[64,256], index: 1, kind: input, shape index: {}]   ;;  %s434_s4 = inlined_call_operand.vmem [shape: f32[32,256], index: 4, kind: output, shape index: {}]  }
   0x1   :  { %v20_v0 = vld [vmem:[%s430_s0 + $0x18] sm:$0xff]  ;;  %v19_v1 = vld [vmem:[%s430_s0 + $0x10] sm:$0xff]  ;;  %v18_v4 = vld [vmem:[%s430_s0 + $0x8] sm:$0xff]  ;;  %258 = vrcp.f32 %v268_v8 }
   0x2   :  { %v31_v2 = vsel %vm21_vm0, %v20_v0, 0.0  ;;  %v28_v3 = vsel %vm21_vm0, %v19_v1, 0.0  ;;  %v17_v5 = vld [vmem:[%s430_s0] sm:$0xff]  ;;  %v25_v6 = vsel %vm21_vm0, %v18_v4, 0.0  ;;  %v147_v35 = vld [vmem:[%s433_s1 + $0x70] sm:$0xff]  ;;  %v148_v36 = vld [vmem:[%s433_s1 + $0x78] sm:$0xff] }
   0x3   :  { %32 = vadd.xlane.f32.xlu1 %v31_v2  ;;  %29 = vadd.xlane.f32.xlu0 %v28_v3  ;;  %v22_v7 = vsel %vm21_vm0, %v17_v5, 0.0  ;;  %v145_v37 = vld [vmem:[%s433_s1 + $0x60] sm:$0xff]  ;;  %v146_v38 = vld [vmem:[%s433_s1 + $0x68] sm:$0xff]  ;;  %v143_v39 = vld [vmem:[%s433_s1 + $0x50] sm:$0xff] }
   0x4   :  { %239 = vmatpush.msra.mxu2 %v147_v35  ;;  %247 = vmatpush.msra.mxu3 %v148_v36  ;;  %v144_v40 = vld [vmem:[%s433_s1 + $0x58] sm:$0xff]  ;;  %v141_v41 = vld [vmem:[%s433_s1 + $0x40] sm:$0xff]  ;;  %v142_v42 = vld [vmem:[%s433_s1 + $0x48] sm:$0xff] }
   0x5   :  { %169 = vmatpush.msra.mxu0 %v147_v35  ;;  %198 = vmatpush.msra.mxu1 %v148_v36  ;;  %v139_v43 = vld [vmem:[%s433_s1 + $0x30] sm:$0xff]  ;;  %v140_v44 = vld [vmem:[%s433_s1 + $0x38] sm:$0xff]  ;;  %v137_v45 = vld [vmem:[%s433_s1 + $0x20] sm:$0xff] }
   0x6   :  { %240 = vmatpush.msra.mxu2 %v145_v37  ;;  %248 = vmatpush.msra.mxu3 %v146_v38  ;;  %v138_v46 = vld [vmem:[%s433_s1 + $0x28] sm:$0xff]  ;;  %v135_v47 = vld [vmem:[%s433_s1 + $0x10] sm:$0xff]  ;;  %v136_v48 = vld [vmem:[%s433_s1 + $0x18] sm:$0xff] }
   0x7   :  { %v259_v9 = vpop.eup %258  ;;  %170 = vmatpush.msra.mxu0 %v145_v37  ;;  %199 = vmatpush.msra.mxu1 %v146_v38  ;;  %v133_v49 = vld [vmem:[%s433_s1] sm:$0xff]  ;;  %v134_v50 = vld [vmem:[%s433_s1 + $0x8] sm:$0xff] }
   0x8   :  { %v35_v10 = vmul.f32 64.0, %v259_v9  ;;  %vm39_vm1 = vweird.f32 %v259_v9  ;;  %241 = vmatpush.msra.mxu2 %v143_v39  ;;  %249 = vmatpush.msra.mxu3 %v144_v40 }
   0x9   :  { %171 = vmatpush.msra.mxu0 %v143_v39  ;;  %200 = vmatpush.msra.mxu1 %v144_v40 }
   0xa   :  { %v36_v11 = vsub.f32 1.0, %v35_v10  ;;  %242 = vmatpush.msra.mxu2 %v141_v41  ;;  %250 = vmatpush.msra.mxu3 %v142_v42 }
   0xb   :  { %26 = vadd.xlane.f32.xlu1 %v25_v6  ;;  %23 = vadd.xlane.f32.xlu0 %v22_v7 }
   0xc   :  { %v37_v12 = vmul.f32 %v259_v9, %v36_v11  ;;  %172 = vmatpush.msra.mxu0 %v141_v41  ;;  %201 = vmatpush.msra.mxu1 %v142_v42 }
   0xd   :  { %243 = vmatpush.msra.mxu2 %v139_v43  ;;  %251 = vmatpush.msra.mxu3 %v140_v44 }
   0xe   :  { %v38_v13 = vadd.f32 %v259_v9, %v37_v12  ;;  %173 = vmatpush.msra.mxu0 %v139_v43  ;;  %202 = vmatpush.msra.mxu1 %v140_v44 }
   0xf   :  { %244 = vmatpush.msra.mxu2 %v137_v45  ;;  %252 = vmatpush.msra.mxu3 %v138_v46 }
  0x10   :  { %v310_v14 = vsel %vm39_vm1, %v259_v9, %v38_v13  ;;  %174 = vmatpush.msra.mxu0 %v137_v45  ;;  %203 = vmatpush.msra.mxu1 %v138_v46 }
  0x11   :  { %245 = vmatpush.msra.mxu2 %v135_v47  ;;  %253 = vmatpush.msra.mxu3 %v136_v48 }
  0x12   :  { %175 = vmatpush.msra.mxu0 %v135_v47  ;;  %204 = vmatpush.msra.mxu1 %v136_v48 }
  0x13   :  { %246 = vmatpush.msra.mxu2 %v133_v49  ;;  %254 = vmatpush.msra.mxu3 %v134_v50 }
  0x14   :  { %176 = vmatpush.msra.mxu0 %v133_v49  ;;  %205 = vmatpush.msra.mxu1 %v134_v50 }
  0x76   :  { %v33_v15 = vpop.xlane.xlu1 %32  ;;  %v30_v16 = vpop.xlane.xlu0 %29 }
  0x77   :  { %v44_v17 = vmul.f32 %v310_v14, %v33_v15  ;;  %v43_v18 = vmul.f32 %v310_v14, %v30_v16  ;;  %v256_v15 = vld [vmem:[%s431_s2] ss:$0 sm:$0xff] }
  0x79   :  { %v314_v19 = vsub.f32 %v20_v0, %v44_v17  ;;  %v316_v20 = vsub.f32 %v19_v1, %v43_v18 }
  0x7b   :  { %v51_v21 = vmul.f32 %v316_v20, %v316_v20  ;;  %v52_v22 = vmul.f32 %v314_v19, %v314_v19 }
  0x7d   :  { %v59_v23 = vsel %vm21_vm0, %v51_v21, 0.0  ;;  %v62_v24 = vsel %vm21_vm0, %v52_v22, 0.0  ;;  %v257_v22 = vld [vmem:[%s432_s3] ss:$0 sm:$0xff] }
  0x7e   :  { %60 = vadd.xlane.f32.xlu2 %v59_v23  ;;  %v27_v25 = vpop.xlane.xlu1 %26  ;;  %63 = vadd.xlane.f32.xlu0 %v62_v24  ;;  %v24_v26 = vpop.xlane.xlu0 %23 }
  0x7f   :  { %v42_v27 = vmul.f32 %v310_v14, %v27_v25  ;;  %v41_v28 = vmul.f32 %v310_v14, %v24_v26 }
  0x81   :  { %v326_v29 = vsub.f32 %v18_v4, %v42_v27  ;;  %v328_v30 = vsub.f32 %v17_v5, %v41_v28 }
  0x83   :  { %v50_v31 = vmul.f32 %v326_v29, %v326_v29  ;;  %v49_v32 = vmul.f32 %v328_v30, %v328_v30 }
  0x85   :  { %v56_v33 = vsel %vm21_vm0, %v50_v31, 0.0  ;;  %v53_v34 = vsel %vm21_vm0, %v49_v32, 0.0 }
  0x86   :  { %57 = vadd.xlane.f32.xlu1 %v56_v33  ;;  %54 = vadd.xlane.f32.xlu2 %v53_v34 }
  0xf1   :  { %v61_v51 = vpop.xlane.xlu2 %60  ;;  %v64_v52 = vpop.xlane.xlu0 %63 }
  0xf2   :  { %v67_v53 = vmul.f32 %v61_v51, %v310_v14  ;;  %v68_v54 = vmul.f32 %v64_v52, %v310_v14 }
  0xf4   :  { %v71_v55 = vadd.f32 1e-05, %v67_v53  ;;  %v72_v56 = vadd.f32 1e-05, %v68_v54 }
  0xf6   :  { %260 = vrsqrt.f32 %v71_v55  ;;  %vm99_vm3 = vweird.f32 %v71_v55  ;;  %vm109_vm4 = vweird.f32 %v72_v56 }
  0xf7   :  { %262 = vrsqrt.f32 %v72_v56 }
  0xf9   :  { %v58_v57 = vpop.xlane.xlu1 %57  ;;  %v55_v58 = vpop.xlane.xlu2 %54 }
  0xfa   :  { %v66_v59 = vmul.f32 %v58_v57, %v310_v14  ;;  %v65_v60 = vmul.f32 %v55_v58, %v310_v14 }
  0xfc   :  { %v261_v61 = vpop.eup %260  ;;  %v70_v62 = vadd.f32 1e-05, %v66_v59  ;;  %v69_v63 = vadd.f32 1e-05, %v65_v60 }
  0xfd   :  { %v263_v0 = vpop.eup %262  ;;  %v94_v1 = vmul.f32 %v261_v61, %v71_v55  ;;  %vm100_vm2 = vweird.f32 %v261_v61 }
  0xfe   :  { %v104_v2 = vmul.f32 %v263_v0, %v72_v56  ;;  %264 = vrsqrt.f32 %v70_v62  ;;  %vm110_vm5 = vweird.f32 %v263_v0  ;;  %vm101_vm6 = vmor %vm99_vm3, %vm100_vm2  ;;  %vm89_vm9 = vweird.f32 %v70_v62 }
  0xff   :  { %v95_v3 = vmul.f32 %v261_v61, %v94_v1  ;;  %266 = vrsqrt.f32 %v69_v63  ;;  %vm111_vm7 = vmor %vm109_vm4, %vm110_vm5  ;;  %vm79_vm11 = vweird.f32 %v69_v63 }
 0x100   :  { %v105_v4 = vmul.f32 %v263_v0, %v104_v2 }
 0x101   :  { %v96_v5 = vmul.f32 0.5, %v95_v3 }
 0x102   :  { %v106_v6 = vmul.f32 0.5, %v105_v4 }
 0x103   :  { %v97_v7 = vsub.f32 1.5, %v96_v5 }
 0x104   :  { %v265_v8 = vpop.eup %264  ;;  %v107_v9 = vsub.f32 1.5, %v106_v6 }
 0x105   :  { %v267_v10 = vpop.eup %266  ;;  %v98_v11 = vmul.f32 %v261_v61, %v97_v7  ;;  %v84_v12 = vmul.f32 %v265_v8, %v70_v62  ;;  %vm90_vm10 = vweird.f32 %v265_v8 }
 0x106   :  { %v108_v13 = vmul.f32 %v263_v0, %v107_v9  ;;  %v74_v14 = vmul.f32 %v267_v10, %v69_v63  ;;  %vm80_vm8 = vweird.f32 %v267_v10  ;;  %vm91_vm13 = vmor %vm89_vm9, %vm90_vm10 }
 0x107   :  { %v102_v16 = vsel %vm101_vm6, %v261_v61, %v98_v11  ;;  %v85_v17 = vmul.f32 %v265_v8, %v84_v12  ;;  %vm81_vm12 = vmor %vm79_vm11, %vm80_vm8 }
 0x108   :  { %v75_v18 = vmul.f32 %v267_v10, %v74_v14  ;;  %v115_v21 = vmul.f32 %v102_v16, %v316_v20  ;;  %v112_v23 = vsel %vm111_vm7, %v263_v0, %v108_v13 }
 0x109   :  { %v86_v24 = vmul.f32 0.5, %v85_v17  ;;  %v116_v32 = vmul.f32 %v112_v23, %v314_v19 }
 0x10a   :  { %v76_v25 = vmul.f32 0.5, %v75_v18  ;;  %v123_v26 = vmul.f32 %v256_v15, %v115_v21 }
 0x10b   :  { %v87_v27 = vsub.f32 1.5, %v86_v24  ;;  %v124_v35 = vmul.f32 %v256_v15, %v116_v32 }
 0x10c   :  { %v77_v28 = vsub.f32 1.5, %v76_v25  ;;  %v131_v31 = vadd.f32 %v257_v22, %v123_v26 }
 0x10d   :  { %v88_v33 = vmul.f32 %v265_v8, %v87_v27  ;;  %v132_v39 = vadd.f32 %v257_v22, %v124_v35 }
 0x10e   :  { %v78_v34 = vmul.f32 %v267_v10, %v77_v28  ;;  %233 = vmatmul.msk.f32.vlgmr.msra.gmra.mxu2 %vm21_vm0, %v131_v31  ;;  %237 = vmatmul.msk.f32.vlgmr.msra.gmra.mxu3 %vm21_vm0, %v131_v31 }
 0x10f   :  { %v92_v37 = vsel %vm91_vm13, %v265_v8, %v88_v33 }
 0x110   :  { %v82_v20 = vsel %vm81_vm12, %v267_v10, %v78_v34  ;;  %v114_v19 = vmul.f32 %v92_v37, %v326_v29 }
 0x111   :  { %v113_v36 = vmul.f32 %v82_v20, %v328_v30 }
 0x112   :  { %v122_v41 = vmul.f32 %v256_v15, %v114_v19 }
 0x113   :  { %v121_v38 = vmul.f32 %v256_v15, %v113_v36 }
 0x114   :  { %v130_v42 = vadd.f32 %v257_v22, %v122_v41 }
 0x115   :  { %v129_v40 = vadd.f32 %v257_v22, %v121_v38 }
 0x116   :  { %234 = vmatmul.msk.f32.gmra.mxu2 %vm21_vm0, %v132_v39  ;;  %238 = vmatmul.msk.f32.gmra.mxu3 %vm21_vm0, %v132_v39 }
 0x117   :  { %231 = vmatmul.msk.f32.vlgmr.msra.gmra.mxu0 %vm21_vm0, %v129_v40  ;;  %235 = vmatmul.msk.f32.vlgmr.msra.gmra.mxu1 %vm21_vm0, %v129_v40 }
 0x11f   :  { %232 = vmatmul.msk.f32.gmra.mxu0 %vm21_vm0, %v130_v42  ;;  %236 = vmatmul.msk.f32.gmra.mxu1 %vm21_vm0, %v130_v42 }
 0x191   :  { %v184_v30 = vpop.f32.mrf.mxu2  ;;  %v213_v43 = vpop.f32.mrf.mxu3 }
 0x192   :  { %223 = vst [vmem:[%s434_s4 + $0x20] sm:$0xff] %v184_v30 }
 0x193   :  { %224 = vst [vmem:[%s434_s4 + $0x28] sm:$0xff] %v213_v43 }
 0x194   :  { %v178_v29 = vpop.f32.mrf.mxu0  ;;  %v207_v44 = vpop.f32.mrf.mxu1 }
 0x195   :  { %219 = vst [vmem:[%s434_s4] sm:$0xff] %v178_v29 }
 0x196   :  { %220 = vst [vmem:[%s434_s4 + $0x8] sm:$0xff] %v207_v44 }
 0x199   :  { %v187_v45 = vpop.f32.mrf.mxu2  ;;  %v216_v46 = vpop.f32.mrf.mxu3 }
 0x19a   :  { %225 = vst [vmem:[%s434_s4 + $0x30] sm:$0xff] %v187_v45 }
 0x19b   :  { %226 = vst [vmem:[%s434_s4 + $0x38] sm:$0xff] %v216_v46 }
 0x19c   :  { %v181_v47 = vpop.f32.mrf.mxu0  ;;  %v210_v48 = vpop.f32.mrf.mxu1 }
 0x19d   :  { %221 = vst [vmem:[%s434_s4 + $0x10] sm:$0xff] %v181_v47 }
 0x19e   :  { %222 = vst [vmem:[%s434_s4 + $0x18] sm:$0xff] %v210_v48 }

// kernel: performer_lm_forward.16
= control target key start
LH: loop header
LB: loop body
LE: loop exit
PB: predicated region body
PF: predicated region fallthrough
CT: control target
= control target key end

     0   :  { %vm33_vm0 = vcmask 523264   ;;  %s208_s1 = inlined_call_operand.vmem [shape: f32[64,128], index: 1, kind: input, shape index: {}]   ;;  %s209_s2 = inlined_call_operand.vmem [shape: f32[1,128], index: 2, kind: input, shape index: {}]   ;;  %s210_s0 = inlined_call_operand.vmem [shape: f32[32,64], index: 0, kind: input, shape index: {}]   ;;  %s211_s3 = inlined_call_operand.vmem [shape: f32[32,128], index: 3, kind: input, shape index: {}]   ;;  %s212_s4 = inlined_call_operand.vmem [shape: f32[32,128], index: 4, kind: output, shape index: {}]  }
   0x1   :  { %v28_v0 = vld [vmem:[%s208_s1 + $0x38] sm:$0xff]  ;;  %v27_v1 = vld [vmem:[%s208_s1 + $0x30] sm:$0xff]  ;;  %v26_v2 = vld [vmem:[%s208_s1 + $0x28] sm:$0xff] }
   0x2   :  { %96 = vmatpush.msra.mxu2 %v28_v0  ;;  %97 = vmatpush.msra.mxu3 %v28_v0  ;;  %v25_v3 = vld [vmem:[%s208_s1 + $0x20] sm:$0xff]  ;;  %v24_v4 = vld [vmem:[%s208_s1 + $0x18] sm:$0xff]  ;;  %v23_v5 = vld [vmem:[%s208_s1 + $0x10] sm:$0xff] }
   0x3   :  { %54 = vmatpush.msra.mxu0 %v28_v0  ;;  %95 = vmatpush.msra.mxu1 %v28_v0  ;;  %v22_v6 = vld [vmem:[%s208_s1 + $0x8] sm:$0xff]  ;;  %v21_v7 = vld [vmem:[%s208_s1] sm:$0xff]  ;;  %v19_v8 = vld [vmem:[%s210_s0 + $0x10] sm:$0xff] }
   0x4   :  { %99 = vmatpush.msra.mxu2 %v27_v1  ;;  %100 = vmatpush.msra.mxu3 %v27_v1  ;;  %v20_v9 = vld [vmem:[%s210_s0 + $0x18] sm:$0xff]  ;;  %v17_v10 = vld [vmem:[%s210_s0] sm:$0xff]  ;;  %v18_v11 = vld [vmem:[%s210_s0 + $0x8] sm:$0xff] }
   0x5   :  { %55 = vmatpush.msra.mxu0 %v27_v1  ;;  %98 = vmatpush.msra.mxu1 %v27_v1  ;;  %v119_v12 = vld [vmem:[%s209_s2] ss:$0 sm:$0xff]  ;;  %v76_v16 = vld [vmem:[%s211_s3 + $0x8] sm:$0xff]  ;;  %v77_v22 = vld [vmem:[%s211_s3 + $0x10] sm:$0xff] }
   0x6   :  { %102 = vmatpush.msra.mxu2 %v26_v2  ;;  %103 = vmatpush.msra.mxu3 %v26_v2  ;;  %v75_v14 = vld [vmem:[%s211_s3] sm:$0xff]  ;;  %v78_v24 = vld [vmem:[%s211_s3 + $0x18] sm:$0xff] }
   0x7   :  { %56 = vmatpush.msra.mxu0 %v26_v2  ;;  %101 = vmatpush.msra.mxu1 %v26_v2 }
   0x8   :  { %105 = vmatpush.msra.mxu2 %v25_v3  ;;  %106 = vmatpush.msra.mxu3 %v25_v3 }
   0x9   :  { %57 = vmatpush.msra.mxu0 %v25_v3  ;;  %104 = vmatpush.msra.mxu1 %v25_v3 }
   0xa   :  { %108 = vmatpush.msra.mxu2 %v24_v4  ;;  %109 = vmatpush.msra.mxu3 %v24_v4 }
   0xb   :  { %58 = vmatpush.msra.mxu0 %v24_v4  ;;  %107 = vmatpush.msra.mxu1 %v24_v4 }
   0xc   :  { %111 = vmatpush.msra.mxu2 %v23_v5  ;;  %112 = vmatpush.msra.mxu3 %v23_v5 }
   0xd   :  { %59 = vmatpush.msra.mxu0 %v23_v5  ;;  %110 = vmatpush.msra.mxu1 %v23_v5 }
   0xe   :  { %114 = vmatpush.msra.mxu2 %v22_v6  ;;  %115 = vmatpush.msra.mxu3 %v22_v6 }
   0xf   :  { %60 = vmatpush.msra.mxu0 %v22_v6  ;;  %113 = vmatpush.msra.mxu1 %v22_v6 }
  0x10   :  { %117 = vmatpush.msra.mxu2 %v21_v7  ;;  %118 = vmatpush.msra.mxu3 %v21_v7 }
  0x11   :  { %93 = vmatmul.msk.f32.vlgmr.msra.gmra.mxu2 %vm33_vm0, %v19_v8  ;;  %94 = vmatmul.msk.f32.vlgmr.msra.gmra.mxu3 %vm33_vm0, %v20_v9 }
  0x12   :  { %61 = vmatpush.msra.mxu0 %v21_v7  ;;  %116 = vmatpush.msra.mxu1 %v21_v7 }
  0x13   :  { %91 = vmatmul.msk.f32.vlgmr.msra.gmra.mxu0 %vm33_vm0, %v17_v10  ;;  %92 = vmatmul.msk.f32.vlgmr.msra.gmra.mxu1 %vm33_vm0, %v18_v11 }
  0x90   :  { %v63_v13 = vpop.f32.mrf.mxu0  ;;  %v66_v15 = vpop.f32.mrf.mxu1 }
  0x91   :  { %v64_v17 = vadd.f32 %v119_v12, %v63_v13  ;;  %v67_v18 = vadd.f32 %v119_v12, %v66_v15 }
  0x93   :  { %v79_v19 = vadd.f32 %v75_v14, %v64_v17  ;;  %v80_v20 = vadd.f32 %v76_v16, %v67_v18 }
  0x94   :  { %v69_v21 = vpop.f32.mrf.mxu2  ;;  %v72_v23 = vpop.f32.mrf.mxu3 }
  0x95   :  { %83 = vst [vmem:[%s212_s4] sm:$0xff] %v79_v19  ;;  %v70_v25 = vadd.f32 %v119_v12, %v69_v21  ;;  %v73_v26 = vadd.f32 %v119_v12, %v72_v23 }
  0x96   :  { %84 = vst [vmem:[%s212_s4 + $0x8] sm:$0xff] %v80_v20 }
  0x97   :  { %v81_v27 = vadd.f32 %v77_v22, %v70_v25  ;;  %v82_v28 = vadd.f32 %v78_v24, %v73_v26 }
  0x99   :  { %85 = vst [vmem:[%s212_s4 + $0x10] sm:$0xff] %v81_v27 }
  0x9a   :  { %86 = vst [vmem:[%s212_s4 + $0x18] sm:$0xff] %v82_v28 }

// kernel: performer_lm_forward.15
= control target key start
LH: loop header
LB: loop body
LE: loop exit
PB: predicated region body
PF: predicated region fallthrough
CT: control target
= control target key end

     0   :  { %s2390_s0 = inlined_call_operand.vmem [shape: f32[32,192], index: 0, kind: input, shape index: {}]   ;;  %s2391_s1 = inlined_call_operand.vmem [shape: f32[4,32,128], index: 1, kind: input, shape index: {}]   ;;  %s2392_s2 = inlined_call_operand.vmem [shape: f32[16,128], index: 2, kind: input, shape index: {}]   ;;  %s2393_s3 = inlined_call_operand.<no memory space> [shape: f32[1,1], index: 3, kind: input, shape index: {}]   ;;  %s2394_s4 = inlined_call_operand.vmem [shape: f32[32,64], index: 4, kind: output, shape index: {}]  }
   0x1   :  { %v9_v0 = vstv %s2393_s3 }
   0x2   :  { %10 = vst [vmem:[#allocation2] sm:$0x1] %v9_v0 }
   0x3   :  { %s1837_s17 = smov 0   ;;  %s1839_s18 = smov 0  }
   0x4   :  { %s1841_s19 = smov 0  }
   0x5 LB: > { %s1574_s3 = sadd.s32 4294967295, %s1799_s19   ;;  %s1854_s20 = sadd.s32 1, %s1799_s19   ;;  %s1799_s19 = sphi %s1841_s19, %s2397_s19   ;;  %s1795_s18 = sphi %s1839_s18, %s2396_s18   ;;  %s1791_s17 = sphi %s1837_s17, %s2395_s17  }
   0x6   : > { %s46_s21 = ssub.s32 %s1799_s19, %s1854_s20  ;;  %s49_s22 = sadd.s32 1, %s1795_s18 }
   0x7   : > { %p47_p0 = scmp.eq.s32.totalorder %s46_s21, 0  ;;  %p56_p1 = scmp.ne.s32.totalorder %s1795_s18, %s1791_s17 }
   0x8   : > { %p57_p2 = scmp.eq.s32.totalorder %s1799_s19, 0  ;;  %p1577_p4 = scmp.ge.s32.totalorder %s1799_s19, 2 }
   0x9   : > { %s1863_s23 = scalar_select %p47_p0, %s1795_s18, %s49_s22  }
   0xa   : > { %p58_p3 = por %p57_p2, %p56_p1  ;;  %156 = sbr.rel (%p1577_p4) target bundleno = 27 (0x1b), region = 24 }
   0xf   : > { %169 = sbr.rel (!%p58_p3) target bundleno = 27 (0x1b), region = 32  ;;  %s171_s24 = sand.u32 (%p58_p3), 1, %s1795_s18  }
  0x10   : > { %s1676_s25 = sshll.u32 (%p58_p3), %s1799_s19, 4  ;;  %s1578_s26 = sshll.u32 (%p58_p3), %s171_s24, 6 }
  0x11   : > { %s176_s29 = scalar_lea.vmem (%p58_p3), %s2391_s1, %s1676_s25  ;;  %s173_s30 = scalar_lea.vmem (%p58_p3), [#allocation3], %s1578_s26 }
  0x12   : > { %v219_v1 = vld [vmem:[%s176_s29] sm:$0xff] (%p58_p3)  ;;  %v221_v2 = vld [vmem:[%s176_s29 + $0x8] sm:$0xff] (%p58_p3) }
  0x13   : > { %v223_v3 = vld [vmem:[%s176_s29 + $0x20] sm:$0xff] (%p58_p3)  ;;  %220 = vst [vmem:[%s173_s30] sm:$0xff] (%p58_p3), %v219_v1  ;;  %v225_v4 = vld [vmem:[%s176_s29 + $0x28] sm:$0xff] (%p58_p3) }
  0x14   : > { %222 = vst [vmem:[%s173_s30 + $0x8] sm:$0xff] %v221_v2  ;;  %v227_v5 = vld [vmem:[%s176_s29 + $0x40] sm:$0xff]  ;;  %v229_v6 = vld [vmem:[%s176_s29 + $0x48] sm:$0xff] }
  0x15   : > { %224 = vst [vmem:[%s173_s30 + $0x10] sm:$0xff] %v223_v3  ;;  %v231_v7 = vld [vmem:[%s176_s29 + $0x60] sm:$0xff]  ;;  %v233_v8 = vld [vmem:[%s176_s29 + $0x68] sm:$0xff] }
  0x16   : > { %226 = vst [vmem:[%s173_s30 + $0x18] sm:$0xff] %v225_v4 }
  0x17   : > { %228 = vst [vmem:[%s173_s30 + $0x20] sm:$0xff] %v227_v5 }
  0x18   : > { %230 = vst [vmem:[%s173_s30 + $0x28] sm:$0xff] %v229_v6 }
  0x19   : > { %232 = vst [vmem:[%s173_s30 + $0x30] sm:$0xff] %v231_v7 }
  0x1a   : > { %234 = vst [vmem:[%s173_s30 + $0x38] sm:$0xff] %v233_v8 }
  0x1b PF: > { %p1581_p5 = scmp.ge.s32.totalorder %s1799_s19, 1  ;;  %p239_p6 = scmp.lt.s32.totalorder %s1799_s19, 3 }
  0x1d   : > { %p240_p7 = pnand %p1581_p5, %p239_p6 }
  0x1e   : > { %s1583_s5 = sshll.u32 (!%p240_p7), %s1574_s3, 1  ;;  %s1801_s14 = smov (!%p240_p7), 64  }
  0x1f   : > { %243 = sbr.rel (%p240_p7) target bundleno = 1792 (0x700), region = 70  ;;  %p278_p8 = scmp.lt.s32.totalorder (!%p240_p7), %s1583_s5, 3 }
  0x20   : > { %s1802_s15 = smov (!%p240_p7), 48   ;;  %s246_s16 = sand.u32 (!%p240_p7), 1, %s1791_s17  }
  0x21   : > { %s1582_s19 = sshll.u32 (!%p240_p7), %s246_s16, 6  ;;  %s1804_s17 = smov (!%p240_p7), 112  }
  0x22   : > { %s1933_s3 = scalar_lea.vmem (!%p240_p7), [#allocation3], %s1582_s19  ;;  %s1805_s21 = smov (!%p240_p7), 32  }
  0x23   : > { %s1806_s22 = smov (!%p240_p7), 16   ;;  %s1807_s24 = smov (!%p240_p7), 96  }
  0x24   : > { %v296_v9 = vld [vmem:[%s2392_s2 + $0x8] sm:$0xff]  ;;  %v295_v10 = vld [vmem:[%s2392_s2] sm:$0xff]  ;;  %s2399_s5 = smov (!%p278_p8, %s1583_s5), 3  ;;  %vm305_vm0 = vcmask 130048   ;;  %v1803_v18 = vmov 0   ;;  %v298_v23 = vlaneseq  ;;  %v1610_v53 = vld [vmem:[%s1933_s3 + $0x10] sm:$0xff] }
  0x25   : > { %350 = vmatpush.msra.mxu0 %v296_v9  ;;  %642 = vmatpush.msra.mxu3 %v296_v9  ;;  %s1677_s10 = sshll.u32 %s2399_s5, 4  ;;  %v1728_v17 = vld [vmem:[#allocation2] ss:$0 sm:$0xff]  ;;  %v381_v33 = vld [vmem:[%s1933_s3] sm:$0xff]  ;;  %v382_v40 = vld [vmem:[%s1933_s3 + $0x8] sm:$0xff]  ;;  %s1808_s25 = smov 80  }
  0x26   : > { %946 = vmatpush.msra.mxu2 %v296_v9  ;;  %s1887_s13 = scalar_lea.vmem %s2390_s0, %s1677_s10  ;;  %1711 = vset.pattern.permute.xlu2 %v1803_v18  ;;  %v1914_v25 = vand.u32 127, %v298_v23  ;;  %s1587_s26 = sshll.u32 %s2399_s5, 3  ;;  %vm893_vm2 = vcmask 261248   ;;  %vm1195_vm3 = vcmask 392448   ;;  %vm1497_vm4 = vcmask 523648  }
  0x27   : > { %351 = vmatpush.msra.mxu0 %v295_v10  ;;  %643 = vmatpush.msra.mxu3 %v295_v10  ;;  %v291_v11 = vld [vmem:[%s1887_s13] sm:$0xff]  ;;  %v293_v13 = vld [vmem:[%s1887_s13 + $0x10] sm:$0xff]  ;;  %v294_v45 = vld [vmem:[%s1887_s13 + $0x18] sm:$0xff]  ;;  %s2323_s29 = scalar_lea.vmem %s2394_s4, %s1587_s26 }
  0x28   : > { %947 = vmatpush.msra.mxu2 %v295_v10  ;;  %v1890_v12 = vmul.f32 0.5, %v291_v11  ;;  %v1900_v15 = vmul.f32 0.5, %v293_v13  ;;  %388 = vperm.xlu2 %1711, %v1728_v17   ;;  %vm300_vm1 = vcmp.lt.s32.totalorder %v1914_v25, 44  ;;  %v292_v50 = vld [vmem:[%s1887_s13 + $0x8] sm:$0xff] }
  0x29   : > { %512 = vmatpush.msra.mxu1 %v294_v45  ;;  %v1963_v7 = vpack.i.bf16 %v292_v50, %v294_v45 }
  0x2a   : > { %1248 = vmatpush.msrb.mxu2 %v296_v9  ;;  %v1895_v14 = vmul.f32 %v1890_v12, %v1890_v12  ;;  %1588 = vmatmul.msk.f32.vlgmr.msra.gmra.mxu0 %vm305_vm0, %v1890_v12  ;;  %v1904_v16 = vmul.f32 %v1900_v15, %v1900_v15  ;;  %v1611_v9 = vld [vmem:[%s1933_s3 + $0x18] sm:$0xff] }
  0x2b   : > { %513 = vmatpush.msra.mxu1 %v292_v50 }
  0x2c   : > { %1249 = vmatpush.msrb.mxu2 %v295_v10  ;;  %316 = vrot.lane.b32.xlu0 %v1895_v14, %s1801_s14  ;;  %v309_v29 = vsel %vm305_vm0, %v1904_v16, 0.0  ;;  %v306_v45 = vsel %vm305_vm0, %v1895_v14, 0.0 }
  0x32   : > { %1589 = vmatmul.msk.f32.gmra.mxu0 %vm305_vm0, %v1900_v15 }
  0x34   : > { %318 = vrot.lane.b32.xlu0 %v1904_v16, %s1801_s14 }
  0x3c   : > { %606 = vrot.lane.b32.xlu0 %v1895_v14, %s1802_s15 }
  0x82   : > { %v1936_v35 = vpop.permute.xlu2 %388 }
  0x9e   : > { %v317_v19 = vpop.permute.xlu0 %316 }
  0x9f   : > { %v322_v20 = vsel %vm305_vm0, %v317_v19, 0.0 }
  0xa0   : > { %323 = vadd.xlane.f32.xlu1 %v322_v20 }
  0xa6   : > { %v319_v21 = vpop.permute.xlu0 %318 }
  0xa7   : > { %v325_v22 = vsel %vm305_vm0, %v319_v21, 0.0  ;;  %v1917_v27 = vpop.f32.mrf.mxu0 }
  0xa8   : > { %326 = vadd.xlane.f32.xlu1 %v325_v22  ;;  %v359_v28 = vsel %vm300_vm1, %v1917_v27, -inf }
  0xae   : > { %v607_v24 = vpop.permute.xlu0 %606 }
  0xaf   : > { %v612_v26 = vsel %vm305_vm0, %v607_v24, 0.0  ;;  %v1927_v30 = vpop.f32.mrf.mxu0 }
  0xb0   : > { %613 = vadd.xlane.f32.xlu0 %v612_v26  ;;  %v360_v31 = vsel %vm300_vm1, %v1927_v30, -inf }
  0xb8   : > { %361 = vmax.xlane.f32.xlu0 %v359_v28 }
  0xc0   : > { %310 = vadd.xlane.f32.xlu0 %v309_v29 }
  0xc1   : > { %608 = vrot.lane.b32.xlu1 %v1904_v16, %s1802_s15 }
  0xc8   : > { %363 = vmax.xlane.f32.xlu0 %v360_v31 }
 0x113   : > { %v324_v32 = vpop.xlane.xlu1 %323 }
 0x114   : > { %v328_v34 = vmul.f32 0.5, %v324_v32 }
 0x116   : > { %v383_v36 = vsub.f32 %v381_v33, %v328_v34 }
 0x118   : > { %v391_v37 = vsub.f32 %v383_v36, %v1936_v35 }
 0x11a   : > { %v393_v38 = vsel %vm300_vm1, %v391_v37, 0.0 }
 0x11b   : > { %v327_v39 = vpop.xlane.xlu1 %326  ;;  %v395_v41 = vmul.f32 1.442695, %v393_v38 }
 0x11c   : > { %v329_v42 = vmul.f32 0.5, %v327_v39 }
 0x11d   : > { %1729 = vpow2.f32 %v395_v41 }
 0x11e   : > { %v384_v43 = vsub.f32 %v382_v40, %v329_v42 }
 0x120   : > { %v392_v44 = vsub.f32 %v384_v43, %v1936_v35 }
 0x122   : > { %v394_v46 = vsel %vm300_vm1, %v392_v44, 0.0 }
 0x123   : > { %v1730_v47 = vpop.eup %1729  ;;  %v397_v48 = vmul.f32 1.442695, %v394_v46  ;;  %v614_v49 = vpop.xlane.xlu0 %613 }
 0x124   : > { %v618_v51 = vmul.f32 0.5, %v614_v49  ;;  %v399_v52 = vadd.f32 0.0001, %v1730_v47 }
 0x125   : > { %1731 = vpow2.f32 %v397_v48 }
 0x126   : > { %v401_v54 = vmul.f32 0.15075567, %v399_v52  ;;  %v676_v55 = vsub.f32 %v1610_v53, %v618_v51 }
 0x128   : > { %v403_v56 = vsel %vm300_vm1, %v401_v54, 0.0  ;;  %v678_v58 = vsub.f32 %v676_v55, %v1936_v35 }
 0x129   : > { %418 = vxpose.xlu2.b32.start [1/2] (short) %v403_v56, 128 }
 0x12a   : > { %v680_v62 = vsel %vm300_vm1, %v678_v58, 0.0 }
 0x12b   : > { %v1732_v57 = vpop.eup %1731  ;;  %v682_v0 = vmul.f32 1.442695, %v680_v62  ;;  %v362_v55 = vpop.xlane.xlu0 %361 }
 0x12c   : > { %v400_v59 = vadd.f32 0.0001, %v1732_v57 }
 0x12d   : > { %1733 = vpow2.f32 %v682_v0 }
 0x12e   : > { %v402_v60 = vmul.f32 0.15075567, %v400_v59 }
 0x130   : > { %v404_v61 = vsel %vm300_vm1, %v402_v60, 0.0 }
 0x131   : > { %v1955_v63 = vadd.f32 %v404_v61, %v403_v56  ;;  %419 = vxpose.xlu2.b32.end [2/2] (short) %v404_v61, 128 }
 0x133   : > { %v609_v1 = vpop.permute.xlu1 %608  ;;  %v1734_v3 = vpop.eup %1733 }
 0x134   : > { %v615_v2 = vsel %vm305_vm0, %v609_v1, 0.0  ;;  %v686_v4 = vadd.f32 0.0001, %v1734_v3  ;;  %v311_v57 = vpop.xlane.xlu0 %310 }
 0x135   : > { %616 = vadd.xlane.f32.xlu1 %v615_v2 }
 0x136   : > { %v688_v5 = vmul.f32 0.15075567, %v686_v4 }
 0x138   : > { %v1960_v6 = vsel %vm300_vm1, %v688_v5, 0.0 }
 0x139   : > { %705 = vxpose.xlu0.b32.start [1/2] (short) %v1960_v6, 128 }
 0x13c   : > { %v364_v59 = vpop.xlane.xlu0 %363 }
 0x14e   : > { %1713 = vrot.lane.b32.xlu1 %v1963_v7, %s1804_s17 }
 0x156   : > { %620 = vrot.lane.b32.xlu1 %v1890_v12, %s1804_s17 }
 0x15e   : > { %622 = vrot.lane.b32.xlu1 %v1900_v15, %s1804_s17 }
 0x166   : > { %910 = vrot.lane.b32.xlu1 %v1895_v14, %s1805_s21 }
 0x16e   : > { %912 = vrot.lane.b32.xlu1 %v1904_v16, %s1805_s21 }
 0x176   : > { %594 = vrot.lane.b32.xlu1 %v1904_v16, %s1804_s17 }
 0x17e   : > { %1212 = vrot.lane.b32.xlu1 %v1895_v14, %s1806_s22 }
 0x186   : > { %1214 = vrot.lane.b32.xlu1 %v1904_v16, %s1806_s22 }
 0x1a8   : > { %v617_v8 = vpop.xlane.xlu1 %616 }
 0x1a9   : > { %v619_v10 = vmul.f32 0.5, %v617_v8 }
 0x1ab   : > { %v677_v11 = vsub.f32 %v1611_v9, %v619_v10 }
 0x1ad   : > { %v679_v13 = vsub.f32 %v677_v11, %v1936_v35 }
 0x1af   : > { %v681_v17 = vsel %vm300_vm1, %v679_v13, 0.0 }
 0x1b0   : > { %v684_v19 = vmul.f32 1.442695, %v681_v17 }
 0x1b2   : > { %1735 = vpow2.f32 %v684_v19 }
 0x1b8   : > { %v1736_v20 = vpop.eup %1735 }
 0x1b9   : > { %v687_v21 = vadd.f32 0.0001, %v1736_v20 }
 0x1bb   : > { %v689_v22 = vmul.f32 0.15075567, %v687_v21 }
 0x1bd   : > { %v1987_v23 = vsel %vm300_vm1, %v689_v22, 0.0 }
 0x1be   : > { %706 = vxpose.xlu0.b32.end [2/2] (short) %v1987_v23, 128 }
 0x1c0   : > { %v1990_v24 = vpop.permute.xlu1 %1713 }
 0x1c2   : > { %v434_v26 = vpop.trf.xlu2 }
 0x1c3   : > { %1590 = vmatmul.msk.f32.vlgmr.msra.gmra.mxu1 %vm305_vm0, %v434_v26 }
 0x1c8   : > { %v621_v28 = vpop.permute.xlu1 %620 }
 0x1c9   : > { %1608 = vmatmul.msk.f32.vlgmr.msra.gmra.mxu3 %vm305_vm0, %v621_v28 }
 0x1ca   : > { %v435_v29 = vpop.trf.xlu2 }
 0x1cb   : > { %1591 = vmatmul.msk.f32.gmra.mxu1 %vm305_vm0, %v435_v29  ;;  %v313_v29 = vmul.f32 0.5, %v311_v57 }
 0x1d0   : > { %v623_v31 = vpop.permute.xlu1 %622 }
 0x1d1   : > { %1609 = vmatmul.msk.f32.gmra.mxu3 %vm305_vm0, %v623_v31 }
 0x1d2   : > { %v436_v32 = vpop.trf.xlu2 }
 0x1d3   : > { %1592 = vmatmul.msk.f32.gmra.mxu1 %vm305_vm0, %v436_v32 }
 0x1d8   : > { %v911_v33 = vpop.permute.xlu1 %910 }
 0x1d9   : > { %v916_v34 = vsel %vm305_vm0, %v911_v33, 0.0  ;;  %v366_v33 = vsub.f32 %v1927_v30, %v313_v29 }
 0x1da   : > { %917 = vadd.xlane.f32.xlu1 %v916_v34  ;;  %v437_v36 = vpop.trf.xlu2 }
 0x1db   : > { %1593 = vmatmul.msk.f32.gmra.mxu1 %vm305_vm0, %v437_v36 }
 0x1e0   : > { %v913_v37 = vpop.permute.xlu1 %912 }
 0x1e1   : > { %v919_v38 = vsel %vm305_vm0, %v913_v37, 0.0  ;;  %v368_v37 = vsub.f32 %v366_v33, %v364_v59 }
 0x1e2   : > { %920 = vadd.xlane.f32.xlu1 %v919_v38  ;;  %v438_v39 = vpop.trf.xlu2 }
 0x1e3   : > { %1594 = vmatmul.msk.f32.gmra.mxu1 %vm305_vm0, %v438_v39 }
 0x1ea   : > { %v439_v40 = vpop.trf.xlu2 }
 0x1eb   : > { %1595 = vmatmul.msk.f32.gmra.mxu1 %vm305_vm0, %v439_v40 }
 0x1f2   : > { %v440_v41 = vpop.trf.xlu2 }
 0x1f3   : > { %1596 = vmatmul.msk.f32.gmra.mxu1 %vm305_vm0, %v440_v41 }
 0x1fa   : > { %v441_v42 = vpop.trf.xlu2 }
 0x1fb   : > { %1597 = vmatmul.msk.f32.gmra.mxu1 %vm305_vm0, %v441_v42 }
 0x202   : > { %v442_v43 = vpop.trf.xlu2 }
 0x203   : > { %1598 = vmatmul.msk.f32.gmra.mxu1 %vm305_vm0, %v442_v43 }
 0x20a   : > { %v443_v44 = vpop.trf.xlu2 }
 0x20b   : > { %1599 = vmatmul.msk.f32.gmra.mxu1 %vm305_vm0, %v443_v44  ;;  %v1715_v44 = vunpack.i.l.bf16 %v1990_v24 }
 0x212   : > { %307 = vadd.xlane.f32.xlu2 %v306_v45  ;;  %v444_v46 = vpop.trf.xlu2  ;;  %v1716_v45 = vunpack.i.h.bf16 %v1990_v24 }
 0x213   : > { %1600 = vmatmul.msk.f32.gmra.mxu1 %vm305_vm0, %v444_v46 }
 0x21a   : > { %v445_v47 = vpop.trf.xlu2 }
 0x21b   : > { %1601 = vmatmul.msk.f32.gmra.mxu1 %vm305_vm0, %v445_v47 }
 0x222   : > { %v446_v48 = vpop.trf.xlu2 }
 0x223   : > { %1602 = vmatmul.msk.f32.gmra.mxu1 %vm305_vm0, %v446_v48 }
 0x225   : > { %1727 = vset.pattern.permute.xlu0 %v1803_v18 }
 0x22a   : > { %v447_v49 = vpop.trf.xlu2  ;;  %926 = vrot.lane.b32.xlu2 %v1900_v15, %s1807_s24 }
 0x22b   : > { %1603 = vmatmul.msk.f32.gmra.mxu1 %vm305_vm0, %v447_v49 }
 0x232   : > { %v448_v50 = vpop.trf.xlu2  ;;  %1723 = vrot.lane.b32.xlu2 %v1963_v7, %s1808_s25 }
 0x233   : > { %1604 = vmatmul.msk.f32.gmra.mxu1 %vm305_vm0, %v448_v50 }
 0x23a   : > { %v449_v51 = vpop.trf.xlu2 }
 0x23b   : > { %1605 = vmatmul.msk.f32.gmra.mxu1 %vm305_vm0, %v449_v51 }
 0x240   : > { %v2015_v52 = vpop.f32.mrf.mxu1 }
 0x248   : > { %v518_v53 = vpop.f32.mrf.mxu1 }
 0x250   : > { %v521_v54 = vpop.f32.mrf.mxu1 }
 0x258   : > { %v524_v56 = vpop.f32.mrf.mxu1 }
 0x25a   : > { %v2017_v18 = vpop.trf.xlu0 }
 0x260   : > { %v527_v58 = vpop.f32.mrf.mxu1 }
 0x262   : > { %v2019_v0 = vpop.trf.xlu0 }
 0x268   : > { %v530_v60 = vpop.f32.mrf.mxu1 }
 0x26a   : > { %v2021_v2 = vpop.trf.xlu0 }
 0x270   : > { %v533_v61 = vpop.f32.mrf.mxu1 }
 0x272   : > { %v2023_v4 = vpop.trf.xlu0 }
 0x278   : > { %v536_v62 = vpop.f32.mrf.mxu1 }
 0x27a   : > { %v2025_v8 = vpop.trf.xlu0 }
 0x280   : > { %v539_v1 = vpop.f32.mrf.mxu1 }
 0x282   : > { %v2029_v11 = vpop.trf.xlu0 }
 0x285   : > { %v308_v20 = vpop.xlane.xlu2 %307 }
 0x286   : > { %v312_v22 = vmul.f32 0.5, %v308_v20 }
 0x288   : > { %v542_v3 = vpop.f32.mrf.mxu1  ;;  %v365_v28 = vsub.f32 %v1917_v27, %v312_v22  ;;  %v370_v27 = vsel %vm300_vm1, %v368_v37, 0.0 }
 0x289   : > { %v373_v39 = vmul.f32 1.442695, %v370_v27 }
 0x28a   : > { %v2031_v17 = vpop.trf.xlu0  ;;  %v367_v31 = vsub.f32 %v365_v28, %v362_v55  ;;  %v595_v55 = vpop.permute.xlu1 %594 }
 0x28c   : > { %v369_v34 = vsel %vm300_vm1, %v367_v31, 0.0 }
 0x28d   : > { %v371_v36 = vmul.f32 1.442695, %v369_v34 }
 0x28f   : > { %1737 = vpow2.f32 %v371_v36 }
 0x290   : > { %v545_v5 = vpop.f32.mrf.mxu1  ;;  %1739 = vpow2.f32 %v373_v39 }
 0x292   : > { %v2033_v21 = vpop.trf.xlu0  ;;  %v1213_v59 = vpop.permute.xlu1 %1212 }
 0x295   : > { %v1738_v40 = vpop.eup %1737 }
 0x296   : > { %v375_v30 = vadd.f32 0.0001, %v1738_v40  ;;  %v1740_v43 = vpop.eup %1739 }
 0x297   : > { %v376_v46 = vadd.f32 0.0001, %v1740_v43 }
 0x298   : > { %v548_v9 = vpop.f32.mrf.mxu1  ;;  %v2047_v42 = vmul.f32 0.15075567, %v375_v30 }
 0x299   : > { %v2057_v48 = vmul.f32 0.15075567, %v376_v46 }
 0x29a   : > { %v2036_v32 = vpop.trf.xlu0 }
 0x29c   : > { %592 = vrot.lane.b32.xlu0 %v1895_v14, %s1804_s17 }
 0x2a0   : > { %v551_v10 = vpop.f32.mrf.mxu1 }
 0x2a2   : > { %v730_v38 = vpop.trf.xlu0 }
 0x2a4   : > { %896 = vrot.lane.b32.xlu0 %v1895_v14, %s1807_s24 }
 0x2a8   : > { %v554_v13 = vpop.f32.mrf.mxu1 }
 0x2aa   : > { %v731_v41 = vpop.trf.xlu0 }
 0x2ac   : > { %898 = vrot.lane.b32.xlu0 %v1904_v16, %s1807_s24 }
 0x2b0   : > { %v557_v19 = vpop.f32.mrf.mxu1 }
 0x2b2   : > { %v732_v47 = vpop.trf.xlu0 }
 0x2b4   : > { %1200 = vrot.lane.b32.xlu0 %v1904_v16, %s1808_s25 }
 0x2b8   : > { %v560_v26 = vpop.f32.mrf.mxu1 }
 0x2b9   : > { %563 = vmatpush.msrb.mxu0 %v560_v26 }
 0x2ba   : > { %v733_v49 = vpop.trf.xlu0 }
 0x2bb   : > { %564 = vmatpush.msrb.mxu0 %v557_v19 }
 0x2bd   : > { %565 = vmatpush.msrb.mxu0 %v554_v13 }
 0x2bf   : > { %566 = vmatpush.msrb.mxu0 %v551_v10 }
 0x2c1   : > { %567 = vmatpush.msrb.mxu0 %v548_v9 }
 0x2c2   : > { %v734_v24 = vpop.trf.xlu0 }
 0x2c3   : > { %568 = vmatpush.msrb.mxu0 %v545_v5 }
 0x2c5   : > { %569 = vmatpush.msrb.mxu0 %v542_v3 }
 0x2c7   : > { %570 = vmatpush.msrb.mxu0 %v539_v1 }
 0x2c9   : > { %571 = vmatpush.msrb.mxu0 %v536_v62 }
 0x2ca   : > { %v735_v50 = vpop.trf.xlu0 }
 0x2cb   : > { %572 = vmatpush.msrb.mxu0 %v533_v61 }
 0x2cd   : > { %573 = vmatpush.msrb.mxu0 %v530_v60  ;;  %v1218_v60 = vsel %vm305_vm0, %v1213_v59, 0.0 }
 0x2cf   : > { %574 = vmatpush.msrb.mxu0 %v527_v58 }
 0x2d1   : > { %575 = vmatpush.msrb.mxu0 %v524_v56  ;;  %v601_v56 = vsel %vm305_vm0, %v595_v55, 0.0 }
 0x2d2   : > { %v736_v51 = vpop.trf.xlu0 }
 0x2d3   : > { %576 = vmatpush.msrb.mxu0 %v521_v54 }
 0x2d5   : > { %577 = vmatpush.msrb.mxu0 %v518_v53  ;;  %v645_v53 = vpop.f32.mrf.mxu3 }
 0x2d6   : > { %v651_v54 = vsel %vm300_vm1, %v645_v53, -inf }
 0x2d7   : > { %578 = vmatpush.msrb.mxu0 %v2015_v52 }
 0x2d8   : > { %1606 = vmatmul.msk.f32.vlgmr.msrb.gmra.mxu0 %vm300_vm1, %v2047_v42 }
 0x2d9   : > { %807 = vmatpush.msra.mxu0 %v1715_v44 }
 0x2db   : > { %808 = vmatpush.msra.mxu0 %v1716_v45 }
 0x2dd   : > { %v648_v57 = vpop.f32.mrf.mxu3 }
 0x2de   : > { %v652_v58 = vsel %vm300_vm1, %v648_v57, -inf }
 0x2e0   : > { %1607 = vmatmul.msk.f32.gmra.mxu0 %vm300_vm1, %v2057_v48 }
 0x2e8   : > { %1612 = vmatmul.msk.f32.vlgmr.msra.gmra.mxu0 %vm305_vm0, %v2017_v18  ;;  %v1215_v18 = vpop.permute.xlu1 %1214 }
 0x2e9   : > { %v1221_v61 = vsel %vm305_vm0, %v1215_v18, 0.0 }
 0x2f0   : > { %1613 = vmatmul.msk.f32.gmra.mxu0 %vm305_vm0, %v2019_v0  ;;  %v918_v3 = vpop.xlane.xlu1 %917 }
 0x2f1   : > { %v922_v5 = vmul.f32 0.5, %v918_v3 }
 0x2f8   : > { %1614 = vmatmul.msk.f32.gmra.mxu0 %vm305_vm0, %v2021_v2  ;;  %v921_v9 = vpop.xlane.xlu1 %920 }
 0x2f9   : > { %v923_v13 = vmul.f32 0.5, %v921_v9 }
 0x300   : > { %1615 = vmatmul.msk.f32.gmra.mxu0 %vm305_vm0, %v2023_v4 }
 0x308   : > { %1616 = vmatmul.msk.f32.gmra.mxu0 %vm305_vm0, %v2025_v8  ;;  %v1632_v8 = vld [vmem:[%s1933_s3 + $0x20] sm:$0xff] }
 0x309   : > { %v980_v10 = vsub.f32 %v1632_v8, %v922_v5 }
 0x30e   : > { %v593_v16 = vpop.permute.xlu0 %592 }
 0x30f   : > { %v598_v52 = vsel %vm305_vm0, %v593_v16, 0.0 }
 0x310   : > { %599 = vadd.xlane.f32.xlu1 %v598_v52  ;;  %1617 = vmatmul.msk.f32.gmra.mxu0 %vm305_vm0, %v2029_v11 }
 0x316   : > { %v897_v18 = vpop.permute.xlu0 %896 }
 0x317   : > { %v902_v3 = vsel %vm305_vm0, %v897_v18, 0.0 }
 0x318   : > { %653 = vmax.xlane.f32.xlu1 %v651_v54  ;;  %1618 = vmatmul.msk.f32.gmra.mxu0 %vm305_vm0, %v2031_v17  ;;  %v1633_v17 = vld [vmem:[%s1933_s3 + $0x28] sm:$0xff] }
 0x319   : > { %903 = vadd.xlane.f32.xlu0 %v902_v3 }
 0x320   : > { %602 = vadd.xlane.f32.xlu1 %v601_v56  ;;  %1619 = vmatmul.msk.f32.gmra.mxu0 %vm305_vm0, %v2033_v21 }
 0x328   : > { %655 = vmax.xlane.f32.xlu1 %v652_v58  ;;  %1620 = vmatmul.msk.f32.gmra.mxu0 %vm305_vm0, %v2036_v32 }
 0x330   : > { %1219 = vadd.xlane.f32.xlu1 %v1218_v60  ;;  %1621 = vmatmul.msk.f32.gmra.mxu0 %vm305_vm0, %v730_v38 }
 0x338   : > { %1222 = vadd.xlane.f32.xlu1 %v1221_v61  ;;  %1622 = vmatmul.msk.f32.gmra.mxu0 %vm305_vm0, %v731_v41 }
 0x340   : > { %1623 = vmatmul.msk.f32.gmra.mxu0 %vm305_vm0, %v732_v47 }
 0x348   : > { %1624 = vmatmul.msk.f32.gmra.mxu0 %vm305_vm0, %v733_v49 }
 0x350   : > { %1625 = vmatmul.msk.f32.gmra.mxu0 %vm305_vm0, %v734_v24  ;;  %v1654_v24 = vld [vmem:[%s1933_s3 + $0x30] sm:$0xff] }
 0x351   : > { %924 = vrot.lane.b32.xlu1 %v1890_v12, %s1807_s24 }
 0x355   : > { %v2097_v62 = vpop.f32.mrf.mxu0 }
 0x358   : > { %1626 = vmatmul.msk.f32.gmra.mxu0 %vm305_vm0, %v735_v50 }
 0x359   : > { %1718 = vrot.lane.b32.xlu1 %v1963_v7, %s1807_s24 }
 0x35d   : > { %v2102_v0 = vpop.f32.mrf.mxu0 }
 0x360   : > { %1627 = vmatmul.msk.f32.gmra.mxu0 %vm305_vm0, %v736_v51 }
 0x361   : > { %1226 = vrot.lane.b32.xlu1 %v1890_v12, %s1808_s25  ;;  %v982_v12 = vsub.f32 %v980_v10, %v1936_v35 }
 0x363   : > { %v984_v21 = vsel %vm300_vm1, %v982_v12, 0.0 }
 0x364   : > { %v986_v22 = vmul.f32 1.442695, %v984_v21 }
 0x365   : > { %v2107_v1 = vpop.f32.mrf.mxu0 }
 0x366   : > { %1741 = vpow2.f32 %v986_v22 }
 0x369   : > { %1228 = vrot.lane.b32.xlu1 %v1900_v15, %s1808_s25  ;;  %v981_v15 = vsub.f32 %v1633_v17, %v923_v13 }
 0x36b   : > { %v983_v26 = vsub.f32 %v981_v15, %v1936_v35 }
 0x36c   : > { %v1742_v36 = vpop.eup %1741 }
 0x36d   : > { %v2111_v2 = vpop.f32.mrf.mxu0  ;;  %v985_v32 = vsel %vm300_vm1, %v983_v26, 0.0  ;;  %v990_v27 = vadd.f32 0.0001, %v1742_v36 }
 0x36e   : > { %v988_v34 = vmul.f32 1.442695, %v985_v32  ;;  %v927_v32 = vpop.permute.xlu2 %926 }
 0x36f   : > { %v992_v40 = vmul.f32 0.15075567, %v990_v27 }
 0x370   : > { %1743 = vpow2.f32 %v988_v34 }
 0x371   : > { %v2141_v47 = vsel %vm300_vm1, %v992_v40, 0.0 }
 0x375   : > { %v2115_v4 = vpop.f32.mrf.mxu0 }
 0x376   : > { %v1744_v30 = vpop.eup %1743 }
 0x377   : > { %v991_v46 = vadd.f32 0.0001, %v1744_v30 }
 0x379   : > { %v993_v49 = vmul.f32 0.15075567, %v991_v46 }
 0x37b   : > { %v2147_v16 = vsel %vm300_vm1, %v993_v49, 0.0 }
 0x37d   : > { %v2118_v11 = vpop.f32.mrf.mxu0 }
 0x383   : > { %v600_v19 = vpop.xlane.xlu1 %599 }
 0x384   : > { %v604_v7 = vmul.f32 0.5, %v600_v19 }
 0x385   : > { %v2122_v20 = vpop.f32.mrf.mxu0 }
 0x386   : > { %v657_v28 = vsub.f32 %v645_v53, %v604_v7 }
 0x38b   : > { %v654_v29 = vpop.xlane.xlu1 %653 }
 0x38c   : > { %v2127_v31 = vsub.f32 %v657_v28, %v654_v29 }
 0x38d   : > { %v2131_v33 = vpop.f32.mrf.mxu0 }
 0x38e   : > { %v661_v30 = vsel %vm300_vm1, %v2127_v31, 0.0 }
 0x393   : > { %v603_v37 = vpop.xlane.xlu1 %602 }
 0x394   : > { %v605_v39 = vmul.f32 0.5, %v603_v37 }
 0x395   : > { %v2133_v38 = vpop.f32.mrf.mxu0 }
 0x396   : > { %v658_v41 = vsub.f32 %v648_v57, %v605_v39  ;;  %v1655_v57 = vld [vmem:[%s1933_s3 + $0x38] sm:$0xff] }
 0x39b   : > { %v656_v43 = vpop.xlane.xlu1 %655 }
 0x39c   : > { %v2135_v44 = vsub.f32 %v658_v41, %v656_v43  ;;  %v663_v41 = vmul.f32 1.442695, %v661_v30 }
 0x39d   : > { %v2137_v45 = vpop.f32.mrf.mxu0 }
 0x39e   : > { %1009 = vxpose.xlu1.b32.start [1/2] (short) %v2141_v47, 128  ;;  %v662_v43 = vsel %vm300_vm1, %v2135_v44, 0.0 }
 0x39f   : > { %v665_v46 = vmul.f32 1.442695, %v662_v43 }
 0x3a3   : > { %v1220_v50 = vpop.xlane.xlu1 %1219 }
 0x3a4   : > { %v1224_v51 = vmul.f32 0.5, %v1220_v50 }
 0x3a5   : > { %v834_v52 = vpop.f32.mrf.mxu0 }
 0x3a6   : > { %v1282_v53 = vsub.f32 %v1654_v24, %v1224_v51  ;;  %1010 = vxpose.xlu1.b32.end [2/2] (short) %v2147_v16, 128 }
 0x3a8   : > { %v1284_v54 = vsub.f32 %v1282_v53, %v1936_v35  ;;  %v899_v53 = vpop.permute.xlu0 %898 }
 0x3aa   : > { %v1286_v55 = vsel %vm300_vm1, %v1284_v54, 0.0  ;;  %v905_v54 = vsel %vm305_vm0, %v899_v53, 0.0 }
 0x3ab   : > { %v1288_v56 = vmul.f32 1.442695, %v1286_v55  ;;  %v1223_v58 = vpop.xlane.xlu1 %1222 }
 0x3ac   : > { %v1225_v59 = vmul.f32 0.5, %v1223_v58 }
 0x3ad   : > { %1745 = vpow2.f32 %v1288_v56  ;;  %v837_v60 = vpop.f32.mrf.mxu0 }
 0x3ae   : > { %v1283_v61 = vsub.f32 %v1655_v57, %v1225_v59 }
 0x3b0   : > { %v1285_v5 = vsub.f32 %v1283_v61, %v1936_v35 }
 0x3b2   : > { %v1287_v8 = vsel %vm300_vm1, %v1285_v5, 0.0 }
 0x3b3   : > { %v1746_v9 = vpop.eup %1745  ;;  %v1290_v10 = vmul.f32 1.442695, %v1287_v8 }
 0x3b4   : > { %v1292_v12 = vadd.f32 0.0001, %v1746_v9 }
 0x3b5   : > { %1747 = vpow2.f32 %v1290_v10  ;;  %v840_v13 = vpop.f32.mrf.mxu0 }
 0x3b6   : > { %v1294_v17 = vmul.f32 0.15075567, %v1292_v12  ;;  %1749 = vpow2.f32 %v663_v41 }
 0x3b7   : > { %1751 = vpow2.f32 %v665_v46 }
 0x3b8   : > { %v1296_v19 = vsel %vm300_vm1, %v1294_v17, 0.0 }
 0x3b9   : > { %1311 = vxpose.xlu2.b32.start [1/2] (short) %v1296_v19, 128 }
 0x3bb   : > { %v1748_v15 = vpop.eup %1747 }
 0x3bc   : > { %v1293_v21 = vadd.f32 0.0001, %v1748_v15  ;;  %v1750_v49 = vpop.eup %1749 }
 0x3bd   : > { %v843_v7 = vpop.f32.mrf.mxu0  ;;  %v667_v31 = vadd.f32 0.0001, %v1750_v49  ;;  %v1752_v24 = vpop.eup %1751 }
 0x3be   : > { %v1295_v22 = vmul.f32 0.15075567, %v1293_v21 }
 0x3c0   : > { %v1297_v35 = vsel %vm300_vm1, %v1295_v22, 0.0 }
 0x3c1   : > { %v2162_v26 = vadd.f32 %v1297_v35, %v1296_v19  ;;  %1312 = vxpose.xlu2.b32.end [2/2] (short) %v1297_v35, 128 }
 0x3c3   : > { %v925_v28 = vpop.permute.xlu1 %924 }
 0x3c4   : > { %1630 = vmatmul.msk.f32.vlgmr.msra.gmra.mxu2 %vm305_vm0, %v925_v28 }
 0x3c5   : > { %v846_v29 = vpop.f32.mrf.mxu0 }
 0x3cb   : > { %v1719_v34 = vpop.permute.xlu1 %1718 }
 0x3cc   : > { %1631 = vmatmul.msk.f32.gmra.mxu2 %vm305_vm0, %v927_v32  ;;  %v1720_v44 = vunpack.i.l.bf16 %v1719_v34 }
 0x3cd   : > { %v849_v36 = vpop.f32.mrf.mxu0 }
 0x3d3   : > { %v1227_v37 = vpop.permute.xlu1 %1226 }
 0x3d4   : > { %1652 = vmatmul.msk.f32.vlgmr.msrb.gmra.mxu2 %vm305_vm0, %v1227_v37 }
 0x3d5   : > { %v852_v27 = vpop.f32.mrf.mxu0 }
 0x3db   : > { %v1229_v39 = vpop.permute.xlu1 %1228 }
 0x3dc   : > { %1653 = vmatmul.msk.f32.gmra.mxu2 %vm305_vm0, %v1229_v39 }
 0x3dd   : > { %v855_v40 = vpop.f32.mrf.mxu0 }
 0x3de   : > { %858 = vmatpush.msrb.mxu3 %v855_v40  ;;  %v2237_v40 = vpop.permute.xlu0 %1200 }
 0x3e0   : > { %859 = vmatpush.msrb.mxu3 %v852_v27 }
 0x3e2   : > { %860 = vmatpush.msrb.mxu3 %v849_v36  ;;  %v379_v36 = vsel %vm300_vm1, %v2047_v42, 0.0 }
 0x3e4   : > { %861 = vmatpush.msrb.mxu3 %v846_v29 }
 0x3e6   : > { %862 = vmatpush.msrb.mxu3 %v843_v7  ;;  %v904_v46 = vpop.xlane.xlu0 %903 }
 0x3e8   : > { %863 = vmatpush.msrb.mxu3 %v840_v13 }
 0x3ea   : > { %864 = vmatpush.msrb.mxu3 %v837_v60 }
 0x3ec   : > { %865 = vmatpush.msrb.mxu3 %v834_v52 }
 0x3ee   : > { %866 = vmatpush.msrb.mxu3 %v2137_v45  ;;  %v2181_v45 = vmul.f32 0.15075567, %v667_v31  ;;  %v908_v31 = vmul.f32 0.5, %v904_v46 }
 0x3f0   : > { %867 = vmatpush.msrb.mxu3 %v2133_v38 }
 0x3f2   : > { %868 = vmatpush.msrb.mxu3 %v2131_v33  ;;  %v1721_v33 = vunpack.i.h.bf16 %v1719_v34 }
 0x3f4   : > { %869 = vmatpush.msrb.mxu3 %v2122_v20  ;;  %v668_v20 = vadd.f32 0.0001, %v1752_v24 }
 0x3f6   : > { %870 = vmatpush.msrb.mxu3 %v2118_v11  ;;  %v2187_v11 = vmul.f32 0.15075567, %v668_v20 }
 0x3f8   : > { %871 = vmatpush.msrb.mxu3 %v2115_v4 }
 0x3fa   : > { %872 = vmatpush.msrb.mxu3 %v2111_v2  ;;  %v1724_v2 = vpop.permute.xlu2 %1723 }
 0x3fb   : > { %v1726_v4 = vunpack.i.h.bf16 %v1724_v2  ;;  %v1725_v38 = vunpack.i.l.bf16 %v1724_v2 }
 0x3fc   : > { %873 = vmatpush.msrb.mxu3 %v2107_v1 }
 0x3fd   : > { %1628 = vmatmul.msk.f32.vlgmr.msrb.gmra.mxu3 %vm300_vm1, %v2181_v45  ;;  %1411 = vmatpush.msra.mxu2 %v1725_v38 }
 0x3fe   : > { %1109 = vmatpush.msra.mxu3 %v1720_v44 }
 0x3ff   : > { %1412 = vmatpush.msra.mxu2 %v1726_v4 }
 0x400   : > { %1110 = vmatpush.msra.mxu3 %v1721_v33 }
 0x405   : > { %1629 = vmatmul.msk.f32.gmra.mxu3 %vm300_vm1, %v2187_v11 }
 0x442   : > { %v1025_v1 = vpop.trf.xlu1 }
 0x443   : > { %1634 = vmatmul.msk.f32.vlgmr.msra.gmra.mxu3 %vm305_vm0, %v1025_v1  ;;  %v996_v1 = vadd.f32 %v2147_v16, %v2141_v47 }
 0x447   : > { %v2193_v50 = vpop.f32.mrf.mxu2 }
 0x448   : > { %v955_v51 = vsel %vm300_vm1, %v2193_v50, -inf  ;;  %v961_v33 = vsub.f32 %v2193_v50, %v908_v31  ;;  %v997_v50 = vrot.slane %v996_v1, 4 }
 0x449   : > { %957 = vmax.xlane.f32.xlu0 %v955_v51 }
 0x44a   : > { %v1026_v52 = vpop.trf.xlu1 }
 0x44b   : > { %1635 = vmatmul.msk.f32.gmra.mxu3 %vm305_vm0, %v1026_v52 }
 0x44f   : > { %v2202_v57 = vpop.f32.mrf.mxu2 }
 0x450   : > { %v956_v58 = vsel %vm300_vm1, %v2202_v57, -inf }
 0x451   : > { %906 = vadd.xlane.f32.xlu0 %v905_v54 }
 0x452   : > { %v1027_v55 = vpop.trf.xlu1  ;;  %v1327_v56 = vpop.trf.xlu2 }
 0x453   : > { %1636 = vmatmul.msk.f32.gmra.mxu3 %vm305_vm0, %v1027_v55  ;;  %1656 = vmatmul.msk.f32.vlgmr.msra.gmra.mxu2 %vm305_vm0, %v1327_v56 }
 0x457   : > { %v2253_v51 = vpop.f32.mrf.mxu2 }
 0x459   : > { %959 = vmax.xlane.f32.xlu0 %v956_v58  ;;  %v998_v58 = vadd.f32 %v997_v50, %v996_v1  ;;  %v671_v1 = vsel %vm300_vm1, %v2181_v45, 0.0 }
 0x45a   : > { %v1028_v59 = vpop.trf.xlu1  ;;  %v1328_v60 = vpop.trf.xlu2 }
 0x45b   : > { %1637 = vmatmul.msk.f32.gmra.mxu3 %vm305_vm0, %v1028_v59  ;;  %1657 = vmatmul.msk.f32.gmra.mxu2 %vm305_vm0, %v1328_v60  ;;  %v999_v16 = vrot.slane %v998_v58, 2 }
 0x462   : > { %v1029_v18 = vpop.trf.xlu1  ;;  %v1329_v61 = vpop.trf.xlu2 }
 0x463   : > { %1638 = vmatmul.msk.f32.gmra.mxu3 %vm305_vm0, %v1029_v18  ;;  %1658 = vmatmul.msk.f32.gmra.mxu2 %vm305_vm0, %v1329_v61  ;;  %v2259_v18 = vpop.f32.mrf.mxu2 }
 0x46a   : > { %v1030_v3 = vpop.trf.xlu1  ;;  %v1330_v5 = vpop.trf.xlu2 }
 0x46b   : > { %1639 = vmatmul.msk.f32.gmra.mxu3 %vm305_vm0, %v1030_v3  ;;  %1659 = vmatmul.msk.f32.gmra.mxu2 %vm305_vm0, %v1330_v5  ;;  %v1000_v5 = vadd.f32 %v999_v16, %v998_v58 }
 0x470   : > { %1198 = vrot.lane.b32.xlu1 %v1895_v14, %s1808_s25  ;;  %v406_v14 = vrot.slane %v1955_v63, 4 }
 0x472   : > { %v1031_v8 = vpop.trf.xlu1  ;;  %v1331_v9 = vpop.trf.xlu2  ;;  %v407_v21 = vadd.f32 %v406_v14, %v1955_v63 }
 0x473   : > { %1640 = vmatmul.msk.f32.gmra.mxu3 %vm305_vm0, %v1031_v8  ;;  %1660 = vmatmul.msk.f32.gmra.mxu2 %vm305_vm0, %v1331_v9 }
 0x474   : > { %v408_v7 = vrot.slane %v407_v21, 2 }
 0x476   : > { %v409_v28 = vadd.f32 %v408_v7, %v407_v21 }
 0x478   : > { %v410_v32 = vrot.slane %v409_v28, 1 }
 0x47a   : > { %v1032_v10 = vpop.trf.xlu1  ;;  %v1332_v12 = vpop.trf.xlu2  ;;  %v2232_v63 = vadd.f32 %v410_v32, %v409_v28 }
 0x47b   : > { %1641 = vmatmul.msk.f32.gmra.mxu3 %vm305_vm0, %v1032_v10  ;;  %1661 = vmatmul.msk.f32.gmra.mxu2 %vm305_vm0, %v1332_v12  ;;  %v1001_v10 = vrot.slane %v1000_v5, 1 }
 0x47c   : > { %v412_v37 = vmul.f32 %v2232_v63, %v379_v36  ;;  %v692_v36 = vadd.f32 %v1987_v23, %v1960_v6  ;;  %v380_v23 = vsel %vm300_vm1, %v2057_v48, 0.0 }
 0x480   : > { %v2243_v49 = vpop.f32.mrf.mxu3 }
 0x482   : > { %v1033_v13 = vpop.trf.xlu1  ;;  %v1333_v17 = vpop.trf.xlu2 }
 0x483   : > { %1642 = vmatmul.msk.f32.gmra.mxu3 %vm305_vm0, %v1033_v13  ;;  %1662 = vmatmul.msk.f32.gmra.mxu2 %vm305_vm0, %v1333_v17  ;;  %v1002_v17 = vadd.f32 %v1001_v10, %v1000_v5 }
 0x488   : > { %v2248_v4 = vpop.f32.mrf.mxu3 }
 0x48a   : > { %v1034_v19 = vpop.trf.xlu1  ;;  %v1334_v15 = vpop.trf.xlu2 }
 0x48b   : > { %1643 = vmatmul.msk.f32.gmra.mxu3 %vm305_vm0, %v1034_v19  ;;  %1663 = vmatmul.msk.f32.gmra.mxu2 %vm305_vm0, %v1334_v15 }
 0x492   : > { %v1035_v22 = vpop.trf.xlu1  ;;  %v1335_v35 = vpop.trf.xlu2 }
 0x493   : > { %1644 = vmatmul.msk.f32.gmra.mxu3 %vm305_vm0, %v1035_v22  ;;  %1664 = vmatmul.msk.f32.gmra.mxu2 %vm305_vm0, %v1335_v35 }
 0x49a   : > { %v1036_v29 = vpop.trf.xlu1  ;;  %v1336_v34 = vpop.trf.xlu2 }
 0x49b   : > { %1645 = vmatmul.msk.f32.gmra.mxu3 %vm305_vm0, %v1036_v29  ;;  %1665 = vmatmul.msk.f32.gmra.mxu2 %vm305_vm0, %v1336_v34  ;;  %v1257_v29 = vsel %vm300_vm1, %v2253_v51, -inf }
 0x4a2   : > { %v1037_v27 = vpop.trf.xlu1  ;;  %414 = vadd.xlane.f32.xlu2 %v412_v37  ;;  %v1337_v39 = vpop.trf.xlu2  ;;  %v1207_v37 = vsel %vm305_vm0, %v2237_v40, 0.0 }
 0x4a3   : > { %1646 = vmatmul.msk.f32.gmra.mxu3 %vm305_vm0, %v1037_v27  ;;  %1666 = vmatmul.msk.f32.gmra.mxu2 %vm305_vm0, %v1337_v39  ;;  %v693_v27 = vrot.slane %v692_v36, 4 }
 0x4aa   : > { %v1038_v30 = vpop.trf.xlu1  ;;  %v1338_v41 = vpop.trf.xlu2 }
 0x4ab   : > { %1647 = vmatmul.msk.f32.gmra.mxu3 %vm305_vm0, %v1038_v30  ;;  %1667 = vmatmul.msk.f32.gmra.mxu2 %vm305_vm0, %v1338_v41  ;;  %v694_v41 = vadd.f32 %v693_v27, %v692_v36  ;;  %v1299_v27 = vrot.slane %v2162_v26, 4 }
 0x4b2   : > { %v1039_v42 = vpop.trf.xlu1  ;;  %v1339_v43 = vpop.trf.xlu2 }
 0x4b3   : > { %1648 = vmatmul.msk.f32.gmra.mxu3 %vm305_vm0, %v1039_v42  ;;  %1668 = vmatmul.msk.f32.gmra.mxu2 %vm305_vm0, %v1339_v43  ;;  %v1258_v42 = vsel %vm300_vm1, %v2259_v18, -inf  ;;  %v695_v43 = vrot.slane %v694_v41, 2 }
 0x4b5   : > { %v696_v40 = vadd.f32 %v695_v43, %v694_v41 }
 0x4ba   : > { %v1040_v24 = vpop.trf.xlu1  ;;  %v1340_v44 = vpop.trf.xlu2 }
 0x4bb   : > { %1649 = vmatmul.msk.f32.gmra.mxu3 %vm305_vm0, %v1040_v24  ;;  %1669 = vmatmul.msk.f32.gmra.mxu2 %vm305_vm0, %v1340_v44  ;;  %v413_v44 = vmul.f32 %v2232_v63, %v380_v23  ;;  %v672_v63 = vsel %vm300_vm1, %v2187_v11, 0.0 }
 0x4bc   : > { %v958_v20 = vpop.xlane.xlu0 %957 }
 0x4bd   : > { %v963_v2 = vsub.f32 %v961_v33, %v958_v20  ;;  %v697_v33 = vrot.slane %v696_v40, 1 }
 0x4bf   : > { %v965_v6 = vsel %vm300_vm1, %v963_v2, 0.0 }
 0x4c0   : > { %v967_v24 = vmul.f32 1.442695, %v965_v6 }
 0x4c2   : > { %v1341_v38 = vpop.trf.xlu2 }
 0x4c3   : > { %1670 = vmatmul.msk.f32.gmra.mxu2 %vm305_vm0, %v1341_v38 }
 0x4c4   : > { %v907_v52 = vpop.xlane.xlu0 %906 }
 0x4c5   : > { %v909_v53 = vmul.f32 0.5, %v907_v52  ;;  %v698_v52 = vadd.f32 %v697_v33, %v696_v40 }
 0x4c6   : > { %v2255_v54 = vpop.f32.mrf.mxu3 }
 0x4c7   : > { %v962_v55 = vsub.f32 %v2202_v57, %v909_v53  ;;  %v699_v2 = vmul.f32 %v698_v52, %v671_v1 }
 0x4ca   : > { %v1342_v56 = vpop.trf.xlu2 }
 0x4cb   : > { %1671 = vmatmul.msk.f32.gmra.mxu2 %vm305_vm0, %v1342_v56  ;;  %v700_v56 = vmul.f32 %v698_v52, %v672_v63 }
 0x4cc   : > { %v960_v59 = vpop.xlane.xlu0 %959 }
 0x4cd   : > { %v964_v60 = vsub.f32 %v962_v55, %v960_v59 }
 0x4ce   : > { %v2261_v61 = vpop.f32.mrf.mxu3 }
 0x4cf   : > { %v966_v47 = vsel %vm300_vm1, %v964_v60, 0.0 }
 0x4d0   : > { %v969_v3 = vmul.f32 1.442695, %v966_v47 }
 0x4d2   : > { %1753 = vpow2.f32 %v969_v3 }
 0x4d3   : > { %1755 = vpow2.f32 %v967_v24 }
 0x4d6   : > { %v2265_v8 = vpop.f32.mrf.mxu3  ;;  %v2267_v57 = vpop.f32.mrf.mxu2 }
 0x4d8   : > { %v1754_v9 = vpop.eup %1753 }
 0x4d9   : > { %v972_v12 = vadd.f32 0.0001, %v1754_v9  ;;  %v1756_v53 = vpop.eup %1755 }
 0x4da   : > { %v971_v55 = vadd.f32 0.0001, %v1756_v53 }
 0x4db   : > { %v2269_v13 = vmul.f32 0.15075567, %v972_v12 }
 0x4dc   : > { %v973_v58 = vmul.f32 0.15075567, %v971_v55 }
 0x4dd   : > { %v976_v14 = vsel %vm300_vm1, %v2269_v13, 0.0 }
 0x4de   : > { %v2274_v19 = vpop.f32.mrf.mxu3  ;;  %v1004_v15 = vmul.f32 %v1002_v17, %v976_v14  ;;  %v2276_v21 = vpop.f32.mrf.mxu2  ;;  %v975_v47 = vsel %vm300_vm1, %v973_v58, 0.0 }
 0x4df   : > { %v1003_v16 = vmul.f32 %v1002_v17, %v975_v47 }
 0x4e0   : > { %1007 = vadd.xlane.f32.xlu1 %v1004_v15 }
 0x4e2   : > { %v1199_v7 = vpop.permute.xlu1 %1198 }
 0x4e3   : > { %v1204_v22 = vsel %vm305_vm0, %v1199_v7, 0.0 }
 0x4e4   : > { %1205 = vadd.xlane.f32.xlu0 %v1204_v22 }
 0x4e6   : > { %v2279_v35 = vpop.f32.mrf.mxu3  ;;  %v2281_v28 = vpop.f32.mrf.mxu2 }
 0x4ec   : > { %1259 = vmax.xlane.f32.xlu0 %v1257_v29 }
 0x4ee   : > { %v2286_v32 = vpop.f32.mrf.mxu3  ;;  %v2288_v34 = vpop.f32.mrf.mxu2 }
 0x4f4   : > { %1208 = vadd.xlane.f32.xlu0 %v1207_v37 }
 0x4f6   : > { %v1130_v39 = vpop.f32.mrf.mxu3  ;;  %v2294_v30 = vpop.f32.mrf.mxu2 }
 0x4fc   : > { %1261 = vmax.xlane.f32.xlu0 %v1258_v42 }
 0x4fe   : > { %v1133_v46 = vpop.f32.mrf.mxu3  ;;  %v2299_v31 = vpop.f32.mrf.mxu2 }
 0x504   : > { %416 = vadd.xlane.f32.xlu0 %v413_v44 }
 0x506   : > { %v1136_v20 = vpop.f32.mrf.mxu3  ;;  %v2307_v38 = vpop.f32.mrf.mxu2 }
 0x50c   : > { %701 = vadd.xlane.f32.xlu0 %v699_v2 }
 0x50e   : > { %v1139_v48 = vpop.f32.mrf.mxu3  ;;  %v2312_v50 = vpop.f32.mrf.mxu2 }
 0x514   : > { %703 = vadd.xlane.f32.xlu0 %v700_v56 }
 0x515   : > { %v415_v59 = vpop.xlane.xlu2 %414 }
 0x516   : > { %1757 = vrcp.f32 %v415_v59  ;;  %v1142_v60 = vpop.f32.mrf.mxu3  ;;  %v1438_v45 = vpop.f32.mrf.mxu2 }
 0x51c   : > { %v1758_v3 = vpop.eup %1757  ;;  %1005 = vadd.xlane.f32.xlu0 %v1003_v16 }
 0x51d   : > { %v588_v11 = vmul.f32 %v1758_v3, %v2097_v62 }
 0x51e   : > { %v1145_v5 = vpop.f32.mrf.mxu3  ;;  %v1441_v9 = vpop.f32.mrf.mxu2 }
 0x51f   : > { %590 = vst.msk [vmem:[%s2323_s29] sm:$0xff] %vm305_vm0, %v588_v11 }
 0x526   : > { %v1148_v10 = vpop.f32.mrf.mxu3  ;;  %v1444_v12 = vpop.f32.mrf.mxu2 }
 0x52e   : > { %v1151_v14 = vpop.f32.mrf.mxu3  ;;  %v1447_v15 = vpop.f32.mrf.mxu2 }
 0x536   : > { %v1154_v7 = vpop.f32.mrf.mxu3  ;;  %v1450_v22 = vpop.f32.mrf.mxu2 }
 0x53e   : > { %v1157_v17 = vpop.f32.mrf.mxu3  ;;  %v1453_v29 = vpop.f32.mrf.mxu2 }
 0x53f   : > { %1160 = vmatpush.msrb.mxu1 %v1157_v17 }
 0x541   : > { %1161 = vmatpush.msrb.mxu1 %v1154_v7 }
 0x543   : > { %1162 = vmatpush.msrb.mxu1 %v1151_v14 }
 0x545   : > { %1163 = vmatpush.msrb.mxu1 %v1148_v10 }
 0x546   : > { %v1456_v62 = vpop.f32.mrf.mxu2 }
 0x547   : > { %1164 = vmatpush.msrb.mxu1 %v1145_v5 }
 0x549   : > { %1165 = vmatpush.msrb.mxu1 %v1142_v60 }
 0x54b   : > { %1166 = vmatpush.msrb.mxu1 %v1139_v48 }
 0x54d   : > { %1167 = vmatpush.msrb.mxu1 %v1136_v20 }
 0x54e   : > { %v1459_v41 = vpop.f32.mrf.mxu2 }
 0x54f   : > { %1168 = vmatpush.msrb.mxu1 %v1133_v46 }
 0x551   : > { %1169 = vmatpush.msrb.mxu1 %v1130_v39 }
 0x553   : > { %1170 = vmatpush.msrb.mxu1 %v2286_v32  ;;  %v1008_v56 = vpop.xlane.xlu1 %1007 }
 0x555   : > { %1171 = vmatpush.msrb.mxu1 %v2279_v35  ;;  %v1300_v35 = vadd.f32 %v1299_v27, %v2162_v26 }
 0x557   : > { %1172 = vmatpush.msrb.mxu1 %v2274_v19  ;;  %v1206_v36 = vpop.xlane.xlu0 %1205 }
 0x558   : > { %v1210_v37 = vmul.f32 0.5, %v1206_v36 }
 0x559   : > { %1173 = vmatpush.msrb.mxu1 %v2265_v8 }
 0x55a   : > { %v1263_v32 = vsub.f32 %v2253_v51, %v1210_v37 }
 0x55b   : > { %1174 = vmatpush.msrb.mxu1 %v2261_v61  ;;  %v1301_v61 = vrot.slane %v1300_v35, 2 }
 0x55d   : > { %1175 = vmatpush.msrb.mxu1 %v2255_v54  ;;  %v1302_v54 = vadd.f32 %v1301_v61, %v1300_v35 }
 0x55e   : > { %1650 = vmatmul.msk.f32.vlgmr.msrb.gmra.mxu1 %vm300_vm1, %v973_v58 }
 0x55f   : > { %1462 = vmatpush.msra.mxu1 %v1459_v41  ;;  %v1260_v19 = vpop.xlane.xlu0 %1259  ;;  %v1303_v46 = vrot.slane %v1302_v54, 1 }
 0x560   : > { %v1265_v39 = vsub.f32 %v1263_v32, %v1260_v19 }
 0x561   : > { %1463 = vmatpush.msra.mxu1 %v1456_v62  ;;  %v1304_v44 = vadd.f32 %v1303_v46, %v1302_v54 }
 0x562   : > { %v1267_v8 = vsel %vm300_vm1, %v1265_v39, 0.0 }
 0x563   : > { %v1269_v42 = vmul.f32 1.442695, %v1267_v8  ;;  %1464 = vmatpush.msra.mxu1 %v1453_v29 }
 0x565   : > { %1759 = vpow2.f32 %v1269_v42  ;;  %1465 = vmatpush.msra.mxu1 %v1450_v22 }
 0x566   : > { %1651 = vmatmul.msk.f32.gmra.mxu1 %vm300_vm1, %v2269_v13 }
 0x567   : > { %1466 = vmatpush.msra.mxu1 %v1447_v15  ;;  %v1209_v51 = vpop.xlane.xlu0 %1208 }
 0x568   : > { %v1211_v26 = vmul.f32 0.5, %v1209_v51 }
 0x569   : > { %1467 = vmatpush.msra.mxu1 %v1444_v12 }
 0x56a   : > { %v1264_v23 = vsub.f32 %v2259_v18, %v1211_v26 }
 0x56b   : > { %v1760_v43 = vpop.eup %1759  ;;  %1468 = vmatpush.msra.mxu1 %v1441_v9 }
 0x56c   : > { %v1273_v6 = vadd.f32 0.0001, %v1760_v43 }
 0x56d   : > { %1469 = vmatpush.msra.mxu1 %v1438_v45 }
 0x56e   : > { %v1275_v40 = vmul.f32 0.15075567, %v1273_v6 }
 0x56f   : > { %1470 = vmatpush.msra.mxu1 %v2312_v50  ;;  %v1262_v24 = vpop.xlane.xlu0 %1261 }
 0x570   : > { %v1266_v33 = vsub.f32 %v1264_v23, %v1262_v24  ;;  %v1277_v13 = vsel %vm300_vm1, %v1275_v40, 0.0 }
 0x571   : > { %1471 = vmatpush.msra.mxu1 %v2307_v38  ;;  %v1305_v20 = vmul.f32 %v1304_v44, %v1277_v13 }
 0x572   : > { %v1268_v1 = vsel %vm300_vm1, %v1266_v33, 0.0 }
 0x573   : > { %v1271_v52 = vmul.f32 1.442695, %v1268_v1  ;;  %1472 = vmatpush.msra.mxu1 %v2299_v31  ;;  %1307 = vadd.xlane.f32.xlu0 %v1305_v20 }
 0x575   : > { %1761 = vpow2.f32 %v1271_v52  ;;  %1473 = vmatpush.msra.mxu1 %v2294_v30 }
 0x577   : > { %1474 = vmatpush.msra.mxu1 %v2288_v34  ;;  %v417_v18 = vpop.xlane.xlu0 %416 }
 0x578   : > { %1763 = vrcp.f32 %v417_v18 }
 0x579   : > { %1475 = vmatpush.msra.mxu1 %v2281_v28 }
 0x57b   : > { %v1762_v2 = vpop.eup %1761  ;;  %1476 = vmatpush.msra.mxu1 %v2276_v21 }
 0x57c   : > { %v1274_v38 = vadd.f32 0.0001, %v1762_v2 }
 0x57d   : > { %1477 = vmatpush.msra.mxu1 %v2267_v57 }
 0x57e   : > { %v1764_v53 = vpop.eup %1763  ;;  %1672 = vmatmul.msk.f32.vlgmr.msra.gmra.mxu1 %vm300_vm1, %v1275_v40  ;;  %v1276_v31 = vmul.f32 0.15075567, %v1274_v38 }
 0x57f   : > { %v589_v30 = vmul.f32 %v1764_v53, %v2102_v0  ;;  %v702_v48 = vpop.xlane.xlu0 %701 }
 0x580   : > { %1765 = vrcp.f32 %v702_v48  ;;  %v1278_v34 = vsel %vm300_vm1, %v1276_v31, 0.0 }
 0x581   : > { %591 = vst.msk [vmem:[%s2323_s29 + $0x8] sm:$0xff] %vm305_vm0, %v589_v30  ;;  %v1306_v28 = vmul.f32 %v1304_v44, %v1278_v34 }
 0x586   : > { %v1766_v50 = vpop.eup %1765  ;;  %1673 = vmatmul.msk.f32.gmra.mxu1 %vm300_vm1, %v1276_v31 }
 0x587   : > { %v704_v57 = vpop.xlane.xlu0 %703  ;;  %v883_v21 = vmul.f32 %v1766_v50, %v2243_v49 }
 0x588   : > { %1767 = vrcp.f32 %v704_v57 }
 0x589   : > { %887 = vrot.lane.b32.xlu0 %v883_v21, %s1806_s22 }
 0x58e   : > { %v1768_v63 = vpop.eup %1767 }
 0x58f   : > { %v884_v0 = vmul.f32 %v1768_v63, %v2248_v4  ;;  %v1006_v55 = vpop.xlane.xlu0 %1005 }
 0x590   : > { %1769 = vrcp.f32 %v1006_v55 }
 0x591   : > { %889 = vrot.lane.b32.xlu0 %v884_v0, %s1806_s22  ;;  %1771 = vrcp.f32 %v1008_v56 }
 0x596   : > { %v1770_v58 = vpop.eup %1769 }
 0x597   : > { %v1772_v25 = vpop.eup %1771 }
 0x5db   : > { %v1177_v59 = vpop.f32.mrf.mxu1 }
 0x5dc   : > { %v1185_v60 = vmul.f32 %v1770_v58, %v1177_v59 }
 0x5de   : > { %1189 = vrot.lane.b32.xlu0 %v1185_v60, %s1805_s21 }
 0x5e3   : > { %v1180_v49 = vpop.f32.mrf.mxu1 }
 0x5e4   : > { %v1186_v45 = vmul.f32 %v1772_v25, %v1180_v49 }
 0x5e6   : > { %1191 = vrot.lane.b32.xlu2 %v1186_v45, %s1805_s21  ;;  %v1308_v4 = vpop.xlane.xlu0 %1307 }
 0x5e7   : > { %1773 = vrcp.f32 %v1308_v4 }
 0x5ed   : > { %v1774_v47 = vpop.eup %1773 }
 0x5fb   : > { %v1479_v16 = vpop.f32.mrf.mxu1  ;;  %v888_v3 = vpop.permute.xlu0 %887 }
 0x5fc   : > { %v1487_v11 = vmul.f32 %v1774_v47, %v1479_v16  ;;  %894 = vst.msk [vmem:[%s2323_s29] sm:$0xff] %vm893_vm2, %v888_v3 }
 0x5fe   : > { %1491 = vrot.lane.b32.xlu1 %v1487_v11, %s1802_s15 }
 0x603   : > { %v890_v5 = vpop.permute.xlu0 %889  ;;  %v1482_v7 = vpop.f32.mrf.mxu1 }
 0x604   : > { %895 = vst.msk [vmem:[%s2323_s29 + $0x8] sm:$0xff] %vm893_vm2, %v890_v5 }
 0x60f   : > { %1309 = vadd.xlane.f32.xlu2 %v1306_v28 }
 0x640   : > { %v1192_v10 = vpop.permute.xlu2 %1191 }
 0x641   : > { %1197 = vst.msk [vmem:[%s2323_s29 + $0x8] sm:$0xff] %vm1195_vm3, %v1192_v10 }
 0x650   : > { %v1190_v9 = vpop.permute.xlu0 %1189 }
 0x651   : > { %1196 = vst.msk [vmem:[%s2323_s29] sm:$0xff] %vm1195_vm3, %v1190_v9 }
 0x670   : > { %v1492_v12 = vpop.permute.xlu1 %1491 }
 0x671   : > { %1498 = vst.msk [vmem:[%s2323_s29] sm:$0xff] %vm1497_vm4, %v1492_v12 }
 0x682   : > { %v1310_v14 = vpop.xlane.xlu2 %1309 }
 0x683   : > { %1775 = vrcp.f32 %v1310_v14 }
 0x689   : > { %v1776_v15 = vpop.eup %1775 }
 0x68a   : > { %v1488_v17 = vmul.f32 %v1776_v15, %v1482_v7 }
 0x68c   : > { %1493 = vrot.lane.b32.xlu0 %v1488_v17, %s1802_s15 }
 0x6fe   : > { %v1494_v22 = vpop.permute.xlu0 %1493 }
 0x6ff   : > { %1499 = vst.msk [vmem:[%s2323_s29 + $0x8] sm:$0xff] %vm1497_vm4, %v1494_v22 }
 0x700 PF: > { %p13_p9 = scmp.ge.s32.totalorder %s1854_s20, 4   ;;  %s2395_s17 = smov %s1795_s18 }
 0x701   : > { %s2396_s18 = smov %s1863_s23  ;;  %s2397_s19 = smov %s1854_s20 }
 0x702   :  { %15 = sbr.rel (!%p13_p9) target bundleno = 5 (0x5), region = 115 }

// kernel: performer_lm_forward.25
= control target key start
LH: loop header
LB: loop body
LE: loop exit
PB: predicated region body
PF: predicated region fallthrough
CT: control target
= control target key end

     0   :  { %vm25_vm0 = vcmask 523264   ;;  %s473_s0 = inlined_call_operand.vmem [shape: f32[32,64], index: 0, kind: input, shape index: {}]   ;;  %s474_s1 = inlined_call_operand.vmem [shape: f32[64,256], index: 1, kind: input, shape index: {}]   ;;  %s475_s2 = inlined_call_operand.vmem [shape: f32[1,64], index: 2, kind: input, shape index: {}]   ;;  %s476_s3 = inlined_call_operand.vmem [shape: f32[1,64], index: 3, kind: input, shape index: {}]   ;;  %s477_s4 = inlined_call_operand.vmem [shape: f32[1,256], index: 4, kind: input, shape index: {}]   ;;  %s478_s5 = inlined_call_operand.hbm [shape: f32[32,256], index: 5, kind: output, shape index: {}]  }
   0x1   :  { %v24_v0 = vld [vmem:[%s473_s0 + $0x18] sm:$0xff]  ;;  %v23_v1 = vld [vmem:[%s473_s0 + $0x10] sm:$0xff] }
   0x2   :  { %v35_v2 = vsel %vm25_vm0, %v24_v0, 0.0  ;;  %v32_v3 = vsel %vm25_vm0, %v23_v1, 0.0 }
   0x3   :  { %36 = vadd.xlane.f32.xlu1 %v35_v2  ;;  %33 = vadd.xlane.f32.xlu0 %v32_v3 }
   0x4   :  { %10 = vsyncpa [#allocation3], 0  ;;  %v22_v4 = vld [vmem:[%s473_s0 + $0x8] sm:$0xff]  ;;  %v21_v5 = vld [vmem:[%s473_s0] sm:$0xff]  ;;  %v321_v8 = vmov 64.0   ;;  %s322_s9 = smov [#allocation2]  }
   0x5   :  { %v29_v6 = vsel %vm25_vm0, %v22_v4, 0.0  ;;  %v26_v7 = vsel %vm25_vm0, %v21_v5, 0.0  ;;  %285 = vrcp.f32 %v321_v8  ;;  %v151_v35 = vld [vmem:[%s474_s1 + $0x70] sm:$0xff]  ;;  %v152_v36 = vld [vmem:[%s474_s1 + $0x78] sm:$0xff]  ;;  %v149_v37 = vld [vmem:[%s474_s1 + $0x60] sm:$0xff]  ;;  %s243_s12 = sshll.u32 %s478_s5, 4  ;;  %s244_s12 = int_to_ptr.hbm [resolvable:$true] %s243_s12 }
   0x6   :  { %263 = vmatpush.msra.mxu2 %v151_v35  ;;  %271 = vmatpush.msra.mxu3 %v152_v36  ;;  %v150_v38 = vld [vmem:[%s474_s1 + $0x68] sm:$0xff]  ;;  %v147_v39 = vld [vmem:[%s474_s1 + $0x50] sm:$0xff]  ;;  %v148_v40 = vld [vmem:[%s474_s1 + $0x58] sm:$0xff]  ;;  %s323_s13 = smov 256   ;;  %s324_s14 = smov 16  }
   0x7   :  { %179 = vmatpush.msra.mxu0 %v151_v35  ;;  %208 = vmatpush.msra.mxu1 %v152_v36  ;;  %v145_v41 = vld [vmem:[%s474_s1 + $0x40] sm:$0xff]  ;;  %v146_v42 = vld [vmem:[%s474_s1 + $0x48] sm:$0xff]  ;;  %v143_v43 = vld [vmem:[%s474_s1 + $0x30] sm:$0xff] }
   0x8   :  { %264 = vmatpush.msra.mxu2 %v149_v37  ;;  %272 = vmatpush.msra.mxu3 %v150_v38  ;;  %v144_v44 = vld [vmem:[%s474_s1 + $0x38] sm:$0xff]  ;;  %v141_v45 = vld [vmem:[%s474_s1 + $0x20] sm:$0xff]  ;;  %v142_v46 = vld [vmem:[%s474_s1 + $0x28] sm:$0xff] }
   0x9   :  { %180 = vmatpush.msra.mxu0 %v149_v37  ;;  %209 = vmatpush.msra.mxu1 %v150_v38  ;;  %v139_v47 = vld [vmem:[%s474_s1 + $0x10] sm:$0xff]  ;;  %v140_v48 = vld [vmem:[%s474_s1 + $0x18] sm:$0xff]  ;;  %v137_v49 = vld [vmem:[%s474_s1] sm:$0xff] }
   0xa   :  { %265 = vmatpush.msra.mxu2 %v147_v39  ;;  %273 = vmatpush.msra.mxu3 %v148_v40  ;;  %v138_v50 = vld [vmem:[%s474_s1 + $0x8] sm:$0xff] }
   0xb   :  { %30 = vadd.xlane.f32.xlu1 %v29_v6  ;;  %27 = vadd.xlane.f32.xlu0 %v26_v7  ;;  %v286_v9 = vpop.eup %285 }
   0xc   :  { %v39_v10 = vmul.f32 64.0, %v286_v9  ;;  %vm43_vm1 = vweird.f32 %v286_v9  ;;  %181 = vmatpush.msra.mxu0 %v147_v39  ;;  %210 = vmatpush.msra.mxu1 %v148_v40 }
   0xd   :  { %266 = vmatpush.msra.mxu2 %v145_v41  ;;  %274 = vmatpush.msra.mxu3 %v146_v42 }
   0xe   :  { %v40_v11 = vsub.f32 1.0, %v39_v10  ;;  %182 = vmatpush.msra.mxu0 %v145_v41  ;;  %211 = vmatpush.msra.mxu1 %v146_v42 }
   0xf   :  { %267 = vmatpush.msra.mxu2 %v143_v43  ;;  %275 = vmatpush.msra.mxu3 %v144_v44 }
  0x10   :  { %v41_v12 = vmul.f32 %v286_v9, %v40_v11  ;;  %183 = vmatpush.msra.mxu0 %v143_v43  ;;  %212 = vmatpush.msra.mxu1 %v144_v44 }
  0x11   :  { %268 = vmatpush.msra.mxu2 %v141_v45  ;;  %276 = vmatpush.msra.mxu3 %v142_v46 }
  0x12   :  { %v42_v13 = vadd.f32 %v286_v9, %v41_v12  ;;  %184 = vmatpush.msra.mxu0 %v141_v45  ;;  %213 = vmatpush.msra.mxu1 %v142_v46 }
  0x13   :  { %269 = vmatpush.msra.mxu2 %v139_v47  ;;  %277 = vmatpush.msra.mxu3 %v140_v48 }
  0x14   :  { %v371_v14 = vsel %vm43_vm1, %v286_v9, %v42_v13  ;;  %185 = vmatpush.msra.mxu0 %v139_v47  ;;  %214 = vmatpush.msra.mxu1 %v140_v48 }
  0x15   :  { %270 = vmatpush.msra.mxu2 %v137_v49  ;;  %278 = vmatpush.msra.mxu3 %v138_v50 }
  0x16   :  { %186 = vmatpush.msra.mxu0 %v137_v49  ;;  %215 = vmatpush.msra.mxu1 %v138_v50 }
  0x76   :  { %v37_v15 = vpop.xlane.xlu1 %36  ;;  %v34_v16 = vpop.xlane.xlu0 %33 }
  0x77   :  { %v48_v17 = vmul.f32 %v371_v14, %v37_v15  ;;  %v47_v18 = vmul.f32 %v371_v14, %v34_v16  ;;  %v283_v15 = vld [vmem:[%s475_s2] ss:$0 sm:$0xff] }
  0x79   :  { %v375_v19 = vsub.f32 %v24_v0, %v48_v17  ;;  %v377_v20 = vsub.f32 %v23_v1, %v47_v18 }
  0x7b   :  { %v55_v21 = vmul.f32 %v377_v20, %v377_v20  ;;  %v56_v22 = vmul.f32 %v375_v19, %v375_v19 }
  0x7d   :  { %v63_v23 = vsel %vm25_vm0, %v55_v21, 0.0  ;;  %v66_v24 = vsel %vm25_vm0, %v56_v22, 0.0  ;;  %v284_v22 = vld [vmem:[%s476_s3] ss:$0 sm:$0xff] }
  0x7e   :  { %64 = vadd.xlane.f32.xlu2 %v63_v23  ;;  %v31_v25 = vpop.xlane.xlu1 %30  ;;  %67 = vadd.xlane.f32.xlu0 %v66_v24  ;;  %v28_v26 = vpop.xlane.xlu0 %27 }
  0x7f   :  { %v46_v27 = vmul.f32 %v371_v14, %v31_v25  ;;  %v45_v28 = vmul.f32 %v371_v14, %v28_v26 }
  0x81   :  { %v387_v29 = vsub.f32 %v22_v4, %v46_v27  ;;  %v389_v30 = vsub.f32 %v21_v5, %v45_v28 }
  0x83   :  { %v54_v31 = vmul.f32 %v387_v29, %v387_v29  ;;  %v53_v32 = vmul.f32 %v389_v30, %v389_v30 }
  0x85   :  { %v60_v33 = vsel %vm25_vm0, %v54_v31, 0.0  ;;  %v57_v34 = vsel %vm25_vm0, %v53_v32, 0.0 }
  0x86   :  { %61 = vadd.xlane.f32.xlu1 %v60_v33  ;;  %58 = vadd.xlane.f32.xlu2 %v57_v34 }
  0xf1   :  { %v65_v51 = vpop.xlane.xlu2 %64  ;;  %v68_v52 = vpop.xlane.xlu0 %67 }
  0xf2   :  { %v71_v53 = vmul.f32 %v65_v51, %v371_v14  ;;  %v72_v54 = vmul.f32 %v68_v52, %v371_v14 }
  0xf4   :  { %v75_v55 = vadd.f32 1e-05, %v71_v53  ;;  %v76_v56 = vadd.f32 1e-05, %v72_v54 }
  0xf6   :  { %287 = vrsqrt.f32 %v75_v55  ;;  %vm103_vm3 = vweird.f32 %v75_v55  ;;  %vm113_vm4 = vweird.f32 %v76_v56 }
  0xf7   :  { %289 = vrsqrt.f32 %v76_v56 }
  0xf9   :  { %v62_v57 = vpop.xlane.xlu1 %61  ;;  %v59_v58 = vpop.xlane.xlu2 %58 }
  0xfa   :  { %v70_v59 = vmul.f32 %v62_v57, %v371_v14  ;;  %v69_v60 = vmul.f32 %v59_v58, %v371_v14 }
  0xfc   :  { %v288_v61 = vpop.eup %287  ;;  %v74_v62 = vadd.f32 1e-05, %v70_v59  ;;  %v73_v63 = vadd.f32 1e-05, %v69_v60 }
  0xfd   :  { %v290_v0 = vpop.eup %289  ;;  %v98_v1 = vmul.f32 %v288_v61, %v75_v55  ;;  %vm104_vm2 = vweird.f32 %v288_v61 }
  0xfe   :  { %v108_v2 = vmul.f32 %v290_v0, %v76_v56  ;;  %291 = vrsqrt.f32 %v74_v62  ;;  %vm114_vm5 = vweird.f32 %v290_v0  ;;  %vm105_vm6 = vmor %vm103_vm3, %vm104_vm2  ;;  %vm93_vm9 = vweird.f32 %v74_v62 }
  0xff   :  { %v99_v3 = vmul.f32 %v288_v61, %v98_v1  ;;  %293 = vrsqrt.f32 %v73_v63  ;;  %vm115_vm7 = vmor %vm113_vm4, %vm114_vm5  ;;  %vm83_vm11 = vweird.f32 %v73_v63 }
 0x100   :  { %v109_v4 = vmul.f32 %v290_v0, %v108_v2 }
 0x101   :  { %v100_v5 = vmul.f32 0.5, %v99_v3 }
 0x102   :  { %v110_v6 = vmul.f32 0.5, %v109_v4 }
 0x103   :  { %v101_v7 = vsub.f32 1.5, %v100_v5 }
 0x104   :  { %v292_v8 = vpop.eup %291  ;;  %v111_v9 = vsub.f32 1.5, %v110_v6 }
 0x105   :  { %v294_v10 = vpop.eup %293  ;;  %v102_v11 = vmul.f32 %v288_v61, %v101_v7  ;;  %v88_v12 = vmul.f32 %v292_v8, %v74_v62  ;;  %vm94_vm10 = vweird.f32 %v292_v8 }
 0x106   :  { %v112_v13 = vmul.f32 %v290_v0, %v111_v9  ;;  %v78_v14 = vmul.f32 %v294_v10, %v73_v63  ;;  %vm84_vm8 = vweird.f32 %v294_v10  ;;  %vm95_vm13 = vmor %vm93_vm9, %vm94_vm10 }
 0x107   :  { %v106_v16 = vsel %vm105_vm6, %v288_v61, %v102_v11  ;;  %v89_v17 = vmul.f32 %v292_v8, %v88_v12  ;;  %vm85_vm12 = vmor %vm83_vm11, %vm84_vm8 }
 0x108   :  { %v79_v18 = vmul.f32 %v294_v10, %v78_v14  ;;  %v119_v21 = vmul.f32 %v106_v16, %v377_v20  ;;  %v116_v23 = vsel %vm115_vm7, %v290_v0, %v112_v13 }
 0x109   :  { %v90_v24 = vmul.f32 0.5, %v89_v17  ;;  %v120_v32 = vmul.f32 %v116_v23, %v375_v19 }
 0x10a   :  { %v80_v25 = vmul.f32 0.5, %v79_v18  ;;  %v127_v26 = vmul.f32 %v283_v15, %v119_v21 }
 0x10b   :  { %v91_v27 = vsub.f32 1.5, %v90_v24  ;;  %v128_v35 = vmul.f32 %v283_v15, %v120_v32 }
 0x10c   :  { %v81_v28 = vsub.f32 1.5, %v80_v25  ;;  %v135_v31 = vadd.f32 %v284_v22, %v127_v26 }
 0x10d   :  { %v92_v33 = vmul.f32 %v292_v8, %v91_v27  ;;  %v136_v39 = vadd.f32 %v284_v22, %v128_v35 }
 0x10e   :  { %v82_v34 = vmul.f32 %v294_v10, %v81_v28  ;;  %257 = vmatmul.msk.f32.vlgmr.msra.gmra.mxu2 %vm25_vm0, %v135_v31  ;;  %261 = vmatmul.msk.f32.vlgmr.msra.gmra.mxu3 %vm25_vm0, %v135_v31 }
 0x10f   :  { %v96_v37 = vsel %vm95_vm13, %v292_v8, %v92_v33 }
 0x110   :  { %v86_v20 = vsel %vm85_vm12, %v294_v10, %v82_v34  ;;  %v118_v19 = vmul.f32 %v96_v37, %v387_v29 }
 0x111   :  { %v117_v36 = vmul.f32 %v86_v20, %v389_v30  ;;  %v153_v30 = vld [vmem:[%s477_s4] sm:$0x3]  ;;  %s241_s4 = sshll.u32 %s322_s9, 4  ;;  %s242_s4 = int_to_ptr.vmem [resolvable:$true] %s241_s4 }
 0x112   :  { %v126_v41 = vmul.f32 %v283_v15, %v118_v19  ;;  %v155_v43 = vperm.slane %v153_v30, 0  ;;  %v156_v29 = vperm.slane %v153_v30, 1 }
 0x113   :  { %v125_v38 = vmul.f32 %v283_v15, %v117_v36 }
 0x114   :  { %v134_v42 = vadd.f32 %v284_v22, %v126_v41 }
 0x115   :  { %v133_v40 = vadd.f32 %v284_v22, %v125_v38 }
 0x116   :  { %258 = vmatmul.msk.f32.gmra.mxu2 %vm25_vm0, %v136_v39  ;;  %262 = vmatmul.msk.f32.gmra.mxu3 %vm25_vm0, %v136_v39 }
 0x117   :  { %255 = vmatmul.msk.f32.vlgmr.msra.gmra.mxu0 %vm25_vm0, %v133_v40  ;;  %259 = vmatmul.msk.f32.vlgmr.msra.gmra.mxu1 %vm25_vm0, %v133_v40 }
 0x11f   :  { %256 = vmatmul.msk.f32.gmra.mxu0 %vm25_vm0, %v134_v42  ;;  %260 = vmatmul.msk.f32.gmra.mxu1 %vm25_vm0, %v134_v42 }
 0x191   :  { %v194_v44 = vpop.f32.mrf.mxu2  ;;  %v223_v45 = vpop.f32.mrf.mxu3 }
 0x192   :  { %v195_v46 = vadd.f32 %v194_v44, %v155_v43  ;;  %v224_v47 = vadd.f32 %v223_v45, %v156_v29 }
 0x194   :  { %233 = vst [vmem:[#allocation2 + $0x20] sm:$0xff] %v195_v46  ;;  %v188_v48 = vpop.f32.mrf.mxu0  ;;  %v217_v49 = vpop.f32.mrf.mxu1 }
 0x195   :  { %234 = vst [vmem:[#allocation2 + $0x28] sm:$0xff] %v224_v47  ;;  %v189_v50 = vadd.f32 %v188_v48, %v155_v43  ;;  %v218_v51 = vadd.f32 %v217_v49, %v156_v29 }
 0x197   :  { %229 = vst [vmem:[#allocation2] sm:$0xff] %v189_v50 }
 0x198   :  { %230 = vst [vmem:[#allocation2 + $0x8] sm:$0xff] %v218_v51 }
 0x199   :  { %v197_v52 = vpop.f32.mrf.mxu2  ;;  %v226_v53 = vpop.f32.mrf.mxu3 }
 0x19a   :  { %v198_v54 = vadd.f32 %v197_v52, %v155_v43  ;;  %v227_v55 = vadd.f32 %v226_v53, %v156_v29 }
 0x19c   :  { %235 = vst [vmem:[#allocation2 + $0x30] sm:$0xff] %v198_v54  ;;  %v191_v56 = vpop.f32.mrf.mxu0  ;;  %v220_v57 = vpop.f32.mrf.mxu1 }
 0x19d   :  { %236 = vst [vmem:[#allocation2 + $0x38] sm:$0xff] %v227_v55  ;;  %v192_v58 = vadd.f32 %v191_v56, %v155_v43  ;;  %v221_v59 = vadd.f32 %v220_v57, %v156_v29 }
 0x19f   :  { %231 = vst [vmem:[#allocation2 + $0x10] sm:$0xff] %v192_v58 }
 0x1a0   :  { %232 = vst [vmem:[#allocation2 + $0x18] sm:$0xff] %v221_v59 }
 0x1a1   :  { %249 = dma.vmem_to_hbm [thread:$0]  %s242_s4, 1024, %s244_s12, [#allocation3], %s323_s13, %s323_s13, %s324_s14  }
 0x1a2   :  { %319 = dma.done.wait [#allocation3], 1024  }
 0x1a3   :  { %320 = vsyncadd [#allocation3], 4294966272 }
 0x1a4   :  { %254 = vsyncpa [#allocation3], 1 }

// kernel: performer_lm_forward.18
= control target key start
LH: loop header
LB: loop body
LE: loop exit
PB: predicated region body
PF: predicated region fallthrough
CT: control target
= control target key end

     0   :  { %s340_s1 = inlined_call_operand.vmem [shape: f32[256,128], index: 1, kind: input, shape index: {}]   ;;  %s341_s2 = inlined_call_operand.vmem [shape: f32[1,128], index: 2, kind: input, shape index: {}]   ;;  %s342_s0 = inlined_call_operand.vmem [shape: f32[32,256], index: 0, kind: input, shape index: {}]   ;;  %s343_s3 = inlined_call_operand.vmem [shape: f32[32,128], index: 3, kind: input, shape index: {}]   ;;  %s344_s4 = inlined_call_operand.vmem [shape: f32[32,128], index: 4, kind: output, shape index: {}]  }
   0x1   :  { %v40_v0 = vld [vmem:[%s340_s1 + $0x78] sm:$0xff]  ;;  %v39_v1 = vld [vmem:[%s340_s1 + $0x70] sm:$0xff]  ;;  %v38_v4 = vld [vmem:[%s340_s1 + $0x68] sm:$0xff] }
   0x2   :  { %v56_v2 = vld [vmem:[%s340_s1 + $0xf8] sm:$0xff]  ;;  %135 = vmatpush.msra.mxu2 %v40_v0  ;;  %v55_v3 = vld [vmem:[%s340_s1 + $0xf0] sm:$0xff]  ;;  %61 = vmatpush.msra.mxu0 %v40_v0  ;;  %v54_v5 = vld [vmem:[%s340_s1 + $0xe8] sm:$0xff] }
   0x3   :  { %151 = vmatpush.msra.mxu3 %v56_v2  ;;  %90 = vmatpush.msra.mxu1 %v56_v2  ;;  %v37_v6 = vld [vmem:[%s340_s1 + $0x60] sm:$0xff]  ;;  %v36_v8 = vld [vmem:[%s340_s1 + $0x58] sm:$0xff]  ;;  %v35_v10 = vld [vmem:[%s340_s1 + $0x50] sm:$0xff] }
   0x4   :  { %136 = vmatpush.msra.mxu2 %v39_v1  ;;  %62 = vmatpush.msra.mxu0 %v39_v1  ;;  %v53_v7 = vld [vmem:[%s340_s1 + $0xe0] sm:$0xff]  ;;  %v52_v9 = vld [vmem:[%s340_s1 + $0xd8] sm:$0xff]  ;;  %v51_v11 = vld [vmem:[%s340_s1 + $0xd0] sm:$0xff] }
   0x5   :  { %152 = vmatpush.msra.mxu3 %v55_v3  ;;  %91 = vmatpush.msra.mxu1 %v55_v3  ;;  %v34_v12 = vld [vmem:[%s340_s1 + $0x48] sm:$0xff]  ;;  %v33_v14 = vld [vmem:[%s340_s1 + $0x40] sm:$0xff]  ;;  %v32_v16 = vld [vmem:[%s340_s1 + $0x38] sm:$0xff] }
   0x6   :  { %137 = vmatpush.msra.mxu2 %v38_v4  ;;  %63 = vmatpush.msra.mxu0 %v38_v4  ;;  %v50_v13 = vld [vmem:[%s340_s1 + $0xc8] sm:$0xff]  ;;  %v49_v15 = vld [vmem:[%s340_s1 + $0xc0] sm:$0xff]  ;;  %v48_v17 = vld [vmem:[%s340_s1 + $0xb8] sm:$0xff] }
   0x7   :  { %153 = vmatpush.msra.mxu3 %v54_v5  ;;  %92 = vmatpush.msra.mxu1 %v54_v5  ;;  %v31_v18 = vld [vmem:[%s340_s1 + $0x30] sm:$0xff]  ;;  %v30_v20 = vld [vmem:[%s340_s1 + $0x28] sm:$0xff]  ;;  %v29_v22 = vld [vmem:[%s340_s1 + $0x20] sm:$0xff] }
   0x8   :  { %138 = vmatpush.msra.mxu2 %v37_v6  ;;  %64 = vmatpush.msra.mxu0 %v37_v6  ;;  %v47_v19 = vld [vmem:[%s340_s1 + $0xb0] sm:$0xff]  ;;  %v46_v21 = vld [vmem:[%s340_s1 + $0xa8] sm:$0xff]  ;;  %v45_v23 = vld [vmem:[%s340_s1 + $0xa0] sm:$0xff] }
   0x9   :  { %154 = vmatpush.msra.mxu3 %v53_v7  ;;  %93 = vmatpush.msra.mxu1 %v53_v7  ;;  %v28_v24 = vld [vmem:[%s340_s1 + $0x18] sm:$0xff]  ;;  %v27_v26 = vld [vmem:[%s340_s1 + $0x10] sm:$0xff]  ;;  %v26_v28 = vld [vmem:[%s340_s1 + $0x8] sm:$0xff] }
   0xa   :  { %139 = vmatpush.msra.mxu2 %v36_v8  ;;  %65 = vmatpush.msra.mxu0 %v36_v8  ;;  %v44_v25 = vld [vmem:[%s340_s1 + $0x98] sm:$0xff]  ;;  %v43_v27 = vld [vmem:[%s340_s1 + $0x90] sm:$0xff]  ;;  %v42_v29 = vld [vmem:[%s340_s1 + $0x88] sm:$0xff] }
   0xb   :  { %155 = vmatpush.msra.mxu3 %v52_v9  ;;  %94 = vmatpush.msra.mxu1 %v52_v9  ;;  %v25_v30 = vld [vmem:[%s340_s1] sm:$0xff]  ;;  %v22_v33 = vld [vmem:[%s342_s0 + $0x28] sm:$0xff]  ;;  %v23_v36 = vld [vmem:[%s342_s0 + $0x30] sm:$0xff] }
   0xc   :  { %140 = vmatpush.msra.mxu2 %v35_v10  ;;  %66 = vmatpush.msra.mxu0 %v35_v10  ;;  %v41_v31 = vld [vmem:[%s340_s1 + $0x80] sm:$0xff]  ;;  %v18_v35 = vld [vmem:[%s342_s0 + $0x8] sm:$0xff]  ;;  %v24_v37 = vld [vmem:[%s342_s0 + $0x38] sm:$0xff] }
   0xd   :  { %156 = vmatpush.msra.mxu3 %v51_v11  ;;  %95 = vmatpush.msra.mxu1 %v51_v11  ;;  %v21_v32 = vld [vmem:[%s342_s0 + $0x20] sm:$0xff]  ;;  %v19_v38 = vld [vmem:[%s342_s0 + $0x10] sm:$0xff]  ;;  %v20_v39 = vld [vmem:[%s342_s0 + $0x18] sm:$0xff] }
   0xe   :  { %141 = vmatpush.msra.mxu2 %v34_v12  ;;  %67 = vmatpush.msra.mxu0 %v34_v12  ;;  %v17_v34 = vld [vmem:[%s342_s0] sm:$0xff]  ;;  %v121_v50 = vld [vmem:[%s343_s3 + $0x10] sm:$0xff]  ;;  %v120_v56 = vld [vmem:[%s343_s3 + $0x8] sm:$0xff] }
   0xf   :  { %157 = vmatpush.msra.mxu3 %v50_v13  ;;  %96 = vmatpush.msra.mxu1 %v50_v13  ;;  %v167_v40 = vld [vmem:[%s341_s2] ss:$0 sm:$0xff]  ;;  %v122_v62 = vld [vmem:[%s343_s3 + $0x18] sm:$0xff] }
  0x10   :  { %142 = vmatpush.msra.mxu2 %v33_v14  ;;  %68 = vmatpush.msra.mxu0 %v33_v14  ;;  %v119_v44 = vld [vmem:[%s343_s3] sm:$0xff] }
  0x11   :  { %158 = vmatpush.msra.mxu3 %v49_v15  ;;  %97 = vmatpush.msra.mxu1 %v49_v15 }
  0x12   :  { %143 = vmatpush.msra.mxu2 %v32_v16  ;;  %69 = vmatpush.msra.mxu0 %v32_v16 }
  0x13   :  { %159 = vmatpush.msra.mxu3 %v48_v17  ;;  %98 = vmatpush.msra.mxu1 %v48_v17 }
  0x14   :  { %144 = vmatpush.msra.mxu2 %v31_v18  ;;  %70 = vmatpush.msra.mxu0 %v31_v18 }
  0x15   :  { %160 = vmatpush.msra.mxu3 %v47_v19  ;;  %99 = vmatpush.msra.mxu1 %v47_v19 }
  0x16   :  { %145 = vmatpush.msra.mxu2 %v30_v20  ;;  %71 = vmatpush.msra.mxu0 %v30_v20 }
  0x17   :  { %161 = vmatpush.msra.mxu3 %v46_v21  ;;  %100 = vmatpush.msra.mxu1 %v46_v21 }
  0x18   :  { %146 = vmatpush.msra.mxu2 %v29_v22  ;;  %72 = vmatpush.msra.mxu0 %v29_v22 }
  0x19   :  { %162 = vmatpush.msra.mxu3 %v45_v23  ;;  %101 = vmatpush.msra.mxu1 %v45_v23 }
  0x1a   :  { %147 = vmatpush.msra.mxu2 %v28_v24  ;;  %73 = vmatpush.msra.mxu0 %v28_v24 }
  0x1b   :  { %163 = vmatpush.msra.mxu3 %v44_v25  ;;  %102 = vmatpush.msra.mxu1 %v44_v25 }
  0x1c   :  { %148 = vmatpush.msra.mxu2 %v27_v26  ;;  %74 = vmatpush.msra.mxu0 %v27_v26 }
  0x1d   :  { %164 = vmatpush.msra.mxu3 %v43_v27  ;;  %103 = vmatpush.msra.mxu1 %v43_v27 }
  0x1e   :  { %149 = vmatpush.msra.mxu2 %v26_v28  ;;  %75 = vmatpush.msra.mxu0 %v26_v28 }
  0x1f   :  { %165 = vmatpush.msra.mxu3 %v42_v29  ;;  %104 = vmatpush.msra.mxu1 %v42_v29 }
  0x20   :  { %150 = vmatpush.msra.mxu2 %v25_v30  ;;  %76 = vmatpush.msra.mxu0 %v25_v30 }
  0x21   :  { %166 = vmatpush.msra.mxu3 %v41_v31  ;;  %83 = vmatmul.f32.vlgmr.msra.gmra.mxu2 %v21_v32 }
  0x22   :  { %112 = vmatmul.f32.vlgmr.msra.gmra.mxu3 %v22_v33  ;;  %105 = vmatpush.msra.mxu1 %v41_v31 }
  0x23   :  { %77 = vmatmul.f32.vlgmr.msra.gmra.mxu0 %v17_v34  ;;  %106 = vmatmul.f32.vlgmr.msra.gmra.mxu1 %v18_v35 }
  0x29   :  { %86 = vmatmul.f32.gmra.mxu2 %v23_v36 }
  0x2a   :  { %115 = vmatmul.f32.gmra.mxu3 %v24_v37 }
  0x2b   :  { %80 = vmatmul.f32.gmra.mxu0 %v19_v38  ;;  %109 = vmatmul.f32.gmra.mxu1 %v20_v39 }
  0xa0   :  { %v78_v41 = vpop.f32.mrf.mxu0  ;;  %v107_v42 = vpop.f32.mrf.mxu1 }
  0xa1   :  { %v79_v43 = vadd.f32 %v167_v40, %v78_v41 }
  0xa3   :  { %v108_v45 = vadd.f32 %v107_v42, %v79_v43 }
  0xa4   :  { %v84_v46 = vpop.f32.mrf.mxu2 }
  0xa5   :  { %v113_v47 = vpop.f32.mrf.mxu3  ;;  %v85_v48 = vadd.f32 %v167_v40, %v84_v46  ;;  %v123_v49 = vadd.f32 %v119_v44, %v108_v45 }
  0xa7   :  { %127 = vst [vmem:[%s344_s4] sm:$0xff] %v123_v49  ;;  %v114_v51 = vadd.f32 %v113_v47, %v85_v48 }
  0xa8   :  { %v81_v52 = vpop.f32.mrf.mxu0  ;;  %v110_v53 = vpop.f32.mrf.mxu1 }
  0xa9   :  { %v125_v54 = vadd.f32 %v121_v50, %v114_v51  ;;  %v82_v55 = vadd.f32 %v167_v40, %v81_v52 }
  0xab   :  { %129 = vst [vmem:[%s344_s4 + $0x10] sm:$0xff] %v125_v54  ;;  %v111_v57 = vadd.f32 %v110_v53, %v82_v55 }
  0xac   :  { %v87_v58 = vpop.f32.mrf.mxu2 }
  0xad   :  { %v116_v59 = vpop.f32.mrf.mxu3  ;;  %v88_v60 = vadd.f32 %v167_v40, %v87_v58  ;;  %v124_v61 = vadd.f32 %v120_v56, %v111_v57 }
  0xaf   :  { %128 = vst [vmem:[%s344_s4 + $0x8] sm:$0xff] %v124_v61  ;;  %v117_v63 = vadd.f32 %v116_v59, %v88_v60 }
  0xb1   :  { %v126_v0 = vadd.f32 %v122_v62, %v117_v63 }
  0xb3   :  { %130 = vst [vmem:[%s344_s4 + $0x18] sm:$0xff] %v126_v0 }

// kernel: performer_lm_forward.17
= control target key start
LH: loop header
LB: loop body
LE: loop exit
PB: predicated region body
PF: predicated region fallthrough
CT: control target
= control target key end

     0   :  { %vm24_vm0 = vcmask 523264   ;;  %v365_v8 = vmov 64.0   ;;  %s556_s0 = inlined_call_operand.vmem [shape: f32[32,64], index: 0, kind: input, shape index: {}]   ;;  %s557_s2 = inlined_call_operand.vmem [shape: f32[1,64], index: 2, kind: input, shape index: {}]   ;;  %s558_s3 = inlined_call_operand.vmem [shape: f32[1,64], index: 3, kind: input, shape index: {}]   ;;  %s559_s1 = inlined_call_operand.vmem [shape: f32[64,256], index: 1, kind: input, shape index: {}]   ;;  %s560_s4 = inlined_call_operand.vmem [shape: f32[1,256], index: 4, kind: input, shape index: {}]   ;;  %s561_s5 = inlined_call_operand.vmem [shape: f32[32,256], index: 5, kind: output, shape index: {}]  }
   0x1   :  { %v23_v0 = vld [vmem:[%s556_s0 + $0x18] sm:$0xff]  ;;  %v22_v1 = vld [vmem:[%s556_s0 + $0x10] sm:$0xff]  ;;  %v21_v4 = vld [vmem:[%s556_s0 + $0x8] sm:$0xff]  ;;  %339 = vrcp.f32 %v365_v8 }
   0x2   :  { %v34_v2 = vsel %vm24_vm0, %v23_v0, 0.0  ;;  %v31_v3 = vsel %vm24_vm0, %v22_v1, 0.0  ;;  %v20_v5 = vld [vmem:[%s556_s0] sm:$0xff]  ;;  %v28_v6 = vsel %vm24_vm0, %v21_v4, 0.0  ;;  %v150_v35 = vld [vmem:[%s559_s1 + $0x70] sm:$0xff]  ;;  %v151_v36 = vld [vmem:[%s559_s1 + $0x78] sm:$0xff] }
   0x3   :  { %35 = vadd.xlane.f32.xlu1 %v34_v2  ;;  %32 = vadd.xlane.f32.xlu0 %v31_v3  ;;  %v25_v7 = vsel %vm24_vm0, %v20_v5, 0.0  ;;  %v148_v37 = vld [vmem:[%s559_s1 + $0x60] sm:$0xff]  ;;  %v149_v38 = vld [vmem:[%s559_s1 + $0x68] sm:$0xff]  ;;  %v146_v39 = vld [vmem:[%s559_s1 + $0x50] sm:$0xff] }
   0x4   :  { %320 = vmatpush.msra.mxu2 %v150_v35  ;;  %328 = vmatpush.msra.mxu3 %v151_v36  ;;  %v147_v40 = vld [vmem:[%s559_s1 + $0x58] sm:$0xff]  ;;  %v144_v41 = vld [vmem:[%s559_s1 + $0x40] sm:$0xff]  ;;  %v145_v42 = vld [vmem:[%s559_s1 + $0x48] sm:$0xff] }
   0x5   :  { %178 = vmatpush.msra.mxu0 %v150_v35  ;;  %207 = vmatpush.msra.mxu1 %v151_v36  ;;  %v142_v43 = vld [vmem:[%s559_s1 + $0x30] sm:$0xff]  ;;  %v143_v44 = vld [vmem:[%s559_s1 + $0x38] sm:$0xff]  ;;  %v140_v45 = vld [vmem:[%s559_s1 + $0x20] sm:$0xff] }
   0x6   :  { %321 = vmatpush.msra.mxu2 %v148_v37  ;;  %329 = vmatpush.msra.mxu3 %v149_v38  ;;  %v141_v46 = vld [vmem:[%s559_s1 + $0x28] sm:$0xff]  ;;  %v138_v47 = vld [vmem:[%s559_s1 + $0x10] sm:$0xff]  ;;  %v139_v48 = vld [vmem:[%s559_s1 + $0x18] sm:$0xff] }
   0x7   :  { %v340_v9 = vpop.eup %339  ;;  %179 = vmatpush.msra.mxu0 %v148_v37  ;;  %208 = vmatpush.msra.mxu1 %v149_v38  ;;  %v136_v49 = vld [vmem:[%s559_s1] sm:$0xff]  ;;  %v137_v50 = vld [vmem:[%s559_s1 + $0x8] sm:$0xff] }
   0x8   :  { %v38_v10 = vmul.f32 64.0, %v340_v9  ;;  %vm42_vm1 = vweird.f32 %v340_v9  ;;  %322 = vmatpush.msra.mxu2 %v146_v39  ;;  %330 = vmatpush.msra.mxu3 %v147_v40 }
   0x9   :  { %180 = vmatpush.msra.mxu0 %v146_v39  ;;  %209 = vmatpush.msra.mxu1 %v147_v40 }
   0xa   :  { %v39_v11 = vsub.f32 1.0, %v38_v10  ;;  %323 = vmatpush.msra.mxu2 %v144_v41  ;;  %331 = vmatpush.msra.mxu3 %v145_v42 }
   0xb   :  { %29 = vadd.xlane.f32.xlu1 %v28_v6  ;;  %26 = vadd.xlane.f32.xlu0 %v25_v7 }
   0xc   :  { %v40_v12 = vmul.f32 %v340_v9, %v39_v11  ;;  %181 = vmatpush.msra.mxu0 %v144_v41  ;;  %210 = vmatpush.msra.mxu1 %v145_v42 }
   0xd   :  { %324 = vmatpush.msra.mxu2 %v142_v43  ;;  %332 = vmatpush.msra.mxu3 %v143_v44 }
   0xe   :  { %v41_v13 = vadd.f32 %v340_v9, %v40_v12  ;;  %182 = vmatpush.msra.mxu0 %v142_v43  ;;  %211 = vmatpush.msra.mxu1 %v143_v44 }
   0xf   :  { %325 = vmatpush.msra.mxu2 %v140_v45  ;;  %333 = vmatpush.msra.mxu3 %v141_v46 }
  0x10   :  { %v412_v14 = vsel %vm42_vm1, %v340_v9, %v41_v13  ;;  %183 = vmatpush.msra.mxu0 %v140_v45  ;;  %212 = vmatpush.msra.mxu1 %v141_v46 }
  0x11   :  { %326 = vmatpush.msra.mxu2 %v138_v47  ;;  %334 = vmatpush.msra.mxu3 %v139_v48 }
  0x12   :  { %184 = vmatpush.msra.mxu0 %v138_v47  ;;  %213 = vmatpush.msra.mxu1 %v139_v48 }
  0x13   :  { %327 = vmatpush.msra.mxu2 %v136_v49  ;;  %335 = vmatpush.msra.mxu3 %v137_v50 }
  0x14   :  { %185 = vmatpush.msra.mxu0 %v136_v49  ;;  %214 = vmatpush.msra.mxu1 %v137_v50 }
  0x76   :  { %v36_v15 = vpop.xlane.xlu1 %35  ;;  %v33_v16 = vpop.xlane.xlu0 %32 }
  0x77   :  { %v47_v17 = vmul.f32 %v412_v14, %v36_v15  ;;  %v46_v18 = vmul.f32 %v412_v14, %v33_v16  ;;  %v337_v15 = vld [vmem:[%s557_s2] ss:$0 sm:$0xff] }
  0x79   :  { %v416_v19 = vsub.f32 %v23_v0, %v47_v17  ;;  %v418_v20 = vsub.f32 %v22_v1, %v46_v18 }
  0x7b   :  { %v54_v21 = vmul.f32 %v418_v20, %v418_v20  ;;  %v55_v22 = vmul.f32 %v416_v19, %v416_v19 }
  0x7d   :  { %v62_v23 = vsel %vm24_vm0, %v54_v21, 0.0  ;;  %v65_v24 = vsel %vm24_vm0, %v55_v22, 0.0  ;;  %v338_v22 = vld [vmem:[%s558_s3] ss:$0 sm:$0xff] }
  0x7e   :  { %63 = vadd.xlane.f32.xlu2 %v62_v23  ;;  %v30_v25 = vpop.xlane.xlu1 %29  ;;  %66 = vadd.xlane.f32.xlu0 %v65_v24  ;;  %v27_v26 = vpop.xlane.xlu0 %26 }
  0x7f   :  { %v45_v27 = vmul.f32 %v412_v14, %v30_v25  ;;  %v44_v28 = vmul.f32 %v412_v14, %v27_v26 }
  0x81   :  { %v428_v29 = vsub.f32 %v21_v4, %v45_v27  ;;  %v430_v30 = vsub.f32 %v20_v5, %v44_v28 }
  0x83   :  { %v53_v31 = vmul.f32 %v428_v29, %v428_v29  ;;  %v52_v32 = vmul.f32 %v430_v30, %v430_v30 }
  0x85   :  { %v59_v33 = vsel %vm24_vm0, %v53_v31, 0.0  ;;  %v56_v34 = vsel %vm24_vm0, %v52_v32, 0.0 }
  0x86   :  { %60 = vadd.xlane.f32.xlu1 %v59_v33  ;;  %57 = vadd.xlane.f32.xlu2 %v56_v34 }
  0xf1   :  { %v64_v51 = vpop.xlane.xlu2 %63  ;;  %v67_v52 = vpop.xlane.xlu0 %66 }
  0xf2   :  { %v70_v53 = vmul.f32 %v64_v51, %v412_v14  ;;  %v71_v54 = vmul.f32 %v67_v52, %v412_v14 }
  0xf4   :  { %v74_v55 = vadd.f32 1e-05, %v70_v53  ;;  %v75_v56 = vadd.f32 1e-05, %v71_v54 }
  0xf6   :  { %341 = vrsqrt.f32 %v74_v55  ;;  %vm102_vm3 = vweird.f32 %v74_v55  ;;  %vm112_vm4 = vweird.f32 %v75_v56 }
  0xf7   :  { %343 = vrsqrt.f32 %v75_v56 }
  0xf9   :  { %v61_v57 = vpop.xlane.xlu1 %60  ;;  %v58_v58 = vpop.xlane.xlu2 %57 }
  0xfa   :  { %v69_v59 = vmul.f32 %v61_v57, %v412_v14  ;;  %v68_v60 = vmul.f32 %v58_v58, %v412_v14 }
  0xfc   :  { %v342_v61 = vpop.eup %341  ;;  %v73_v62 = vadd.f32 1e-05, %v69_v59  ;;  %v72_v63 = vadd.f32 1e-05, %v68_v60 }
  0xfd   :  { %v344_v0 = vpop.eup %343  ;;  %v97_v1 = vmul.f32 %v342_v61, %v74_v55  ;;  %vm103_vm2 = vweird.f32 %v342_v61 }
  0xfe   :  { %v107_v2 = vmul.f32 %v344_v0, %v75_v56  ;;  %345 = vrsqrt.f32 %v73_v62  ;;  %vm113_vm5 = vweird.f32 %v344_v0  ;;  %vm104_vm6 = vmor %vm102_vm3, %vm103_vm2  ;;  %vm92_vm9 = vweird.f32 %v73_v62 }
  0xff   :  { %v98_v3 = vmul.f32 %v342_v61, %v97_v1  ;;  %347 = vrsqrt.f32 %v72_v63  ;;  %vm114_vm7 = vmor %vm112_vm4, %vm113_vm5  ;;  %vm82_vm11 = vweird.f32 %v72_v63 }
 0x100   :  { %v108_v4 = vmul.f32 %v344_v0, %v107_v2 }
 0x101   :  { %v99_v5 = vmul.f32 0.5, %v98_v3 }
 0x102   :  { %v109_v6 = vmul.f32 0.5, %v108_v4 }
 0x103   :  { %v100_v7 = vsub.f32 1.5, %v99_v5 }
 0x104   :  { %v346_v8 = vpop.eup %345  ;;  %v110_v9 = vsub.f32 1.5, %v109_v6 }
 0x105   :  { %v348_v10 = vpop.eup %347  ;;  %v101_v11 = vmul.f32 %v342_v61, %v100_v7  ;;  %v87_v12 = vmul.f32 %v346_v8, %v73_v62  ;;  %vm93_vm10 = vweird.f32 %v346_v8 }
 0x106   :  { %v111_v13 = vmul.f32 %v344_v0, %v110_v9  ;;  %v77_v14 = vmul.f32 %v348_v10, %v72_v63  ;;  %vm83_vm8 = vweird.f32 %v348_v10  ;;  %vm94_vm13 = vmor %vm92_vm9, %vm93_vm10 }
 0x107   :  { %v105_v16 = vsel %vm104_vm6, %v342_v61, %v101_v11  ;;  %v88_v17 = vmul.f32 %v346_v8, %v87_v12  ;;  %vm84_vm12 = vmor %vm82_vm11, %vm83_vm8 }
 0x108   :  { %v78_v18 = vmul.f32 %v348_v10, %v77_v14  ;;  %v118_v21 = vmul.f32 %v105_v16, %v418_v20  ;;  %v115_v23 = vsel %vm114_vm7, %v344_v0, %v111_v13 }
 0x109   :  { %v89_v24 = vmul.f32 0.5, %v88_v17  ;;  %v119_v32 = vmul.f32 %v115_v23, %v416_v19 }
 0x10a   :  { %v79_v25 = vmul.f32 0.5, %v78_v18  ;;  %v126_v26 = vmul.f32 %v337_v15, %v118_v21 }
 0x10b   :  { %v90_v27 = vsub.f32 1.5, %v89_v24  ;;  %v127_v35 = vmul.f32 %v337_v15, %v119_v32 }
 0x10c   :  { %v80_v28 = vsub.f32 1.5, %v79_v25  ;;  %v134_v31 = vadd.f32 %v338_v22, %v126_v26 }
 0x10d   :  { %v91_v33 = vmul.f32 %v346_v8, %v90_v27  ;;  %v135_v39 = vadd.f32 %v338_v22, %v127_v35 }
 0x10e   :  { %v81_v34 = vmul.f32 %v348_v10, %v80_v28  ;;  %314 = vmatmul.msk.f32.vlgmr.msra.gmra.mxu2 %vm24_vm0, %v134_v31  ;;  %318 = vmatmul.msk.f32.vlgmr.msra.gmra.mxu3 %vm24_vm0, %v134_v31 }
 0x10f   :  { %v95_v37 = vsel %vm94_vm13, %v346_v8, %v91_v33 }
 0x110   :  { %v85_v20 = vsel %vm84_vm12, %v348_v10, %v81_v34  ;;  %v117_v19 = vmul.f32 %v95_v37, %v428_v29 }
 0x111   :  { %v116_v36 = vmul.f32 %v85_v20, %v430_v30  ;;  %v152_v30 = vld [vmem:[%s560_s4] sm:$0x3] }
 0x112   :  { %v125_v41 = vmul.f32 %v337_v15, %v117_v19  ;;  %v154_v43 = vperm.slane %v152_v30, 0  ;;  %v155_v29 = vperm.slane %v152_v30, 1 }
 0x113   :  { %v124_v38 = vmul.f32 %v337_v15, %v116_v36 }
 0x114   :  { %v133_v42 = vadd.f32 %v338_v22, %v125_v41 }
 0x115   :  { %v132_v40 = vadd.f32 %v338_v22, %v124_v38 }
 0x116   :  { %315 = vmatmul.msk.f32.gmra.mxu2 %vm24_vm0, %v135_v39  ;;  %319 = vmatmul.msk.f32.gmra.mxu3 %vm24_vm0, %v135_v39 }
 0x117   :  { %312 = vmatmul.msk.f32.vlgmr.msra.gmra.mxu0 %vm24_vm0, %v132_v40  ;;  %316 = vmatmul.msk.f32.vlgmr.msra.gmra.mxu1 %vm24_vm0, %v132_v40 }
 0x11f   :  { %313 = vmatmul.msk.f32.gmra.mxu0 %vm24_vm0, %v133_v42  ;;  %317 = vmatmul.msk.f32.gmra.mxu1 %vm24_vm0, %v133_v42 }
 0x191   :  { %v193_v44 = vpop.f32.mrf.mxu2  ;;  %v222_v45 = vpop.f32.mrf.mxu3 }
 0x192   :  { %v194_v46 = vadd.f32 %v193_v44, %v154_v43  ;;  %v223_v47 = vadd.f32 %v222_v45, %v155_v29 }
 0x194   :  { %v240_v48 = vmul.f32 0.044715, %v194_v46  ;;  %v241_v49 = vmul.f32 0.044715, %v223_v47  ;;  %v187_v50 = vpop.f32.mrf.mxu0  ;;  %v216_v51 = vpop.f32.mrf.mxu1  ;;  %v232_v20 = vmul.f32 0.5, %v194_v46  ;;  %v233_v38 = vmul.f32 0.5, %v223_v47 }
 0x195   :  { %v188_v52 = vadd.f32 %v187_v50, %v154_v43  ;;  %v511_v53 = vadd.f32 %v216_v51, %v155_v29 }
 0x196   :  { %v248_v54 = vmul.f32 %v240_v48, %v194_v46  ;;  %v249_v55 = vmul.f32 %v241_v49, %v223_v47 }
 0x197   :  { %v236_v56 = vmul.f32 0.044715, %v188_v52  ;;  %v237_v57 = vmul.f32 0.044715, %v511_v53  ;;  %v228_v30 = vmul.f32 0.5, %v188_v52 }
 0x198   :  { %v256_v58 = vmul.f32 %v248_v54, %v194_v46  ;;  %v257_v59 = vmul.f32 %v249_v55, %v223_v47 }
 0x199   :  { %v244_v60 = vmul.f32 %v236_v56, %v188_v52  ;;  %v245_v61 = vmul.f32 %v237_v57, %v511_v53  ;;  %v196_v62 = vpop.f32.mrf.mxu2  ;;  %v225_v63 = vpop.f32.mrf.mxu3 }
 0x19a   :  { %v264_v0 = vadd.f32 %v256_v58, %v194_v46  ;;  %v265_v1 = vadd.f32 %v257_v59, %v223_v47  ;;  %v515_v2 = vadd.f32 %v196_v62, %v154_v43  ;;  %v517_v3 = vadd.f32 %v225_v63, %v155_v29 }
 0x19b   :  { %v252_v4 = vmul.f32 %v244_v60, %v188_v52  ;;  %v253_v5 = vmul.f32 %v245_v61, %v511_v53  ;;  %v229_v46 = vmul.f32 0.5, %v511_v53 }
 0x19c   :  { %v272_v6 = vmul.f32 0.7978846, %v264_v0  ;;  %v273_v7 = vmul.f32 0.7978846, %v265_v1  ;;  %v190_v8 = vpop.f32.mrf.mxu0  ;;  %v219_v9 = vpop.f32.mrf.mxu1  ;;  %v242_v12 = vmul.f32 0.044715, %v515_v2 }
 0x19d   :  { %v260_v10 = vadd.f32 %v252_v4, %v188_v52  ;;  %v261_v11 = vadd.f32 %v253_v5, %v511_v53  ;;  %v243_v13 = vmul.f32 0.044715, %v517_v3  ;;  %v191_v14 = vadd.f32 %v190_v8, %v154_v43 }
 0x19e   :  { %349 = vtanh.f32 %v272_v6  ;;  %v220_v15 = vadd.f32 %v219_v9, %v155_v29  ;;  %v250_v18 = vmul.f32 %v242_v12, %v515_v2  ;;  %v234_v54 = vmul.f32 0.5, %v515_v2 }
 0x19f   :  { %351 = vtanh.f32 %v273_v7  ;;  %v268_v16 = vmul.f32 0.7978846, %v260_v10  ;;  %v269_v17 = vmul.f32 0.7978846, %v261_v11  ;;  %v251_v21 = vmul.f32 %v243_v13, %v517_v3 }
 0x1a0   :  { %v238_v22 = vmul.f32 0.044715, %v191_v14  ;;  %v258_v23 = vmul.f32 %v250_v18, %v515_v2  ;;  %v239_v24 = vmul.f32 0.044715, %v220_v15  ;;  %v235_v56 = vmul.f32 0.5, %v517_v3 }
 0x1a1   :  { %353 = vtanh.f32 %v268_v16  ;;  %v259_v25 = vmul.f32 %v251_v21, %v517_v3  ;;  %v230_v62 = vmul.f32 0.5, %v191_v14  ;;  %v231_v0 = vmul.f32 0.5, %v220_v15 }
 0x1a2   :  { %355 = vtanh.f32 %v269_v17  ;;  %v246_v26 = vmul.f32 %v238_v22, %v191_v14  ;;  %v266_v27 = vadd.f32 %v258_v23, %v515_v2  ;;  %v247_v28 = vmul.f32 %v239_v24, %v220_v15 }
 0x1a3   :  { %v267_v32 = vadd.f32 %v259_v25, %v517_v3 }
 0x1a4   :  { %v350_v31 = vpop.eup %349  ;;  %v254_v33 = vmul.f32 %v246_v26, %v191_v14  ;;  %v274_v36 = vmul.f32 0.7978846, %v266_v27  ;;  %v255_v37 = vmul.f32 %v247_v28, %v220_v15 }
 0x1a5   :  { %v352_v34 = vpop.eup %351  ;;  %v288_v35 = vadd.f32 1.0, %v350_v31  ;;  %v275_v40 = vmul.f32 0.7978846, %v267_v32 }
 0x1a6   :  { %v289_v39 = vadd.f32 1.0, %v352_v34  ;;  %v262_v19 = vadd.f32 %v254_v33, %v191_v14  ;;  %357 = vtanh.f32 %v274_v36  ;;  %v263_v43 = vadd.f32 %v255_v37, %v220_v15 }
 0x1a7   :  { %v354_v41 = vpop.eup %353  ;;  %v296_v42 = vmul.f32 %v288_v35, %v232_v20  ;;  %359 = vtanh.f32 %v275_v40 }
 0x1a8   :  { %v356_v29 = vpop.eup %355  ;;  %v297_v44 = vmul.f32 %v289_v39, %v233_v38  ;;  %v284_v45 = vadd.f32 1.0, %v354_v41  ;;  %v270_v48 = vmul.f32 0.7978846, %v262_v19  ;;  %v271_v49 = vmul.f32 0.7978846, %v263_v43 }
 0x1a9   :  { %304 = vst [vmem:[%s561_s5 + $0x20] sm:$0xff] %v296_v42  ;;  %v285_v47 = vadd.f32 1.0, %v356_v29 }
 0x1aa   :  { %305 = vst [vmem:[%s561_s5 + $0x28] sm:$0xff] %v297_v44  ;;  %v292_v50 = vmul.f32 %v284_v45, %v228_v30  ;;  %361 = vtanh.f32 %v270_v48 }
 0x1ab   :  { %v293_v51 = vmul.f32 %v285_v47, %v229_v46  ;;  %363 = vtanh.f32 %v271_v49 }
 0x1ac   :  { %300 = vst [vmem:[%s561_s5] sm:$0xff] %v292_v50  ;;  %v358_v52 = vpop.eup %357 }
 0x1ad   :  { %301 = vst [vmem:[%s561_s5 + $0x8] sm:$0xff] %v293_v51  ;;  %v360_v53 = vpop.eup %359  ;;  %v290_v55 = vadd.f32 1.0, %v358_v52 }
 0x1ae   :  { %v291_v57 = vadd.f32 1.0, %v360_v53 }
 0x1af   :  { %v298_v59 = vmul.f32 %v290_v55, %v234_v54 }
 0x1b0   :  { %v362_v58 = vpop.eup %361  ;;  %v299_v61 = vmul.f32 %v291_v57, %v235_v56 }
 0x1b1   :  { %v364_v60 = vpop.eup %363  ;;  %v286_v63 = vadd.f32 1.0, %v362_v58  ;;  %306 = vst [vmem:[%s561_s5 + $0x30] sm:$0xff] %v298_v59 }
 0x1b2   :  { %v287_v1 = vadd.f32 1.0, %v364_v60  ;;  %307 = vst [vmem:[%s561_s5 + $0x38] sm:$0xff] %v299_v61 }
 0x1b3   :  { %v294_v2 = vmul.f32 %v286_v63, %v230_v62 }
 0x1b4   :  { %v295_v4 = vmul.f32 %v287_v1, %v231_v0 }
 0x1b5   :  { %302 = vst [vmem:[%s561_s5 + $0x10] sm:$0xff] %v294_v2 }
 0x1b6   :  { %303 = vst [vmem:[%s561_s5 + $0x18] sm:$0xff] %v295_v4 }

</bundles_post_ra>
